<compile_context>
chip_gen: v7x
topology: tpu7x:2x2x1
jax: 0.10.0
libtpu: 0.0.40
codegen_flags: <defaults>
</compile_context>

<pallas_src>
import jax
import jax.numpy as jnp
from jax.experimental import pallas as pl
from jax.experimental.pallas import tpu as pltpu

N1 = 10
N2 = 10
LANES = 128
MAX_TILE_ROWS = 512                 # up to 512*128 = 65536 batch elems per grid step

# Flat parameter table layout (all f32, row-major flattening).
_OFF_W1 = 0                         # w1 (1,10)   -> [0, 10)
_OFF_B1 = 10                        # b1 (1,10)   -> [10, 20)
_OFF_W2 = 20                        # w2 (10,10)  -> [20, 120), index = 20 + i*10 + j
_OFF_B2 = 120                       # b2 (1,10)   -> [120, 130)
_OFF_W3 = 130                       # w3 (10,2)   -> [130, 150), index = 130 + j*2 + col
_OFF_B3 = 150                       # b3 (1,2)    -> [150, 152)
_OFF_WN = 152                       # wn (1,1)
_OFF_BN = 153                       # bn (1,1)
_OFF_WO = 154                       # wo (1,1)
_OFF_BO = 155                       # bo (1,1)
_NPARAMS = 156


def _sigmoid1(z):
    # Single-transcendental sigmoid: one EUP tanh + one cheap FMA.
    return 0.5 * jnp.tanh(0.5 * z) + 0.5


def _make_kernel(cdt):
    """cdt = dtype used for the sigma sub-network (bf16 on v6e/v7x, f32 on v5e)."""

    def kernel(p_ref, s_ref, x_ref, y_ref, out_ref):
        # p_ref : SMEM f32[156]                 (all weights/biases as scalars)
        # s_ref / x_ref / y_ref : VMEM f32[tile_rows, 128]
        # out_ref: VMEM i32[tile_rows, 128]
        sig = s_ref[...].astype(cdt)
        x = x_ref[...]
        y = y_ref[...]

        def Pf(i):                  # f32 scalar param from SMEM
            return p_ref[i]

        def Pc(i):                  # param cast to the inner compute dtype
            return p_ref[i].astype(cdt)

        # fc_sigma layer 1+2 fused: acc2_j = sum_i sigmoid(sigma*w1_i+b1_i)*w2_ij + b2_j
        # Bias folded into the i == 0 step (no jnp.full broadcasts).
        h1_0 = _sigmoid1(sig * Pc(_OFF_W1 + 0) + Pc(_OFF_B1 + 0))
        acc2 = [h1_0 * Pc(_OFF_W2 + j) + Pc(_OFF_B2 + j) for j in range(N2)]
        for i in range(1, N1):
            h1_i = _sigmoid1(sig * Pc(_OFF_W1 + i) + Pc(_OFF_B1 + i))
            for j in range(N2):
                acc2[j] = acc2[j] + h1_i * Pc(_OFF_W2 + i * N2 + j)

        # fc_sigma layer 3: two width-1 heads kept in separate vregs (no lane slicing).
        h2_0 = _sigmoid1(acc2[0])
        c0 = h2_0 * Pc(_OFF_W3 + 0) + Pc(_OFF_B3 + 0)
        c1 = h2_0 * Pc(_OFF_W3 + 1) + Pc(_OFF_B3 + 1)
        for j in range(1, N2):
            h2_j = _sigmoid1(acc2[j])
            c0 = c0 + h2_j * Pc(_OFF_W3 + j * 2 + 0)
            c1 = c1 + h2_j * Pc(_OFF_W3 + j * 2 + 1)

        nabla_crit = jnp.maximum(c0.astype(jnp.float32), 0.0)
        omega_crit = jnp.maximum(c1.astype(jnp.float32), 0.0)

        # fc_nabla / fc_omega: Linear(1,1) + relu, pure f32 VPU broadcast math.
        nabla_out = jnp.maximum(x * Pf(_OFF_WN) + Pf(_OFF_BN), 0.0)
        omega_out = jnp.maximum(y * Pf(_OFF_WO) + Pf(_OFF_BO), 0.0)

        # dec_tree: 1 if (nabla < nabla_crit) and (omega > omega_crit) else 0
        cond = jnp.logical_and(nabla_out < nabla_crit, omega_out > omega_crit)
        out_ref[...] = cond.astype(jnp.int32)

    return kernel


def pack_params(p):
    return jnp.concatenate([
        p["w1"].reshape(-1), p["b1"].reshape(-1),
        p["w2"].reshape(-1), p["b2"].reshape(-1),
        p["w3"].reshape(-1), p["b3"].reshape(-1),
        p["wn"].reshape(-1), p["bn"].reshape(-1),
        p["wo"].reshape(-1), p["bo"].reshape(-1),
    ]).astype(jnp.float32)


def _round_up(v, m):
    return ((v + m - 1) // m) * m


def _default_inner_dtype():
    """bf16 inner network on bf16-capable VPU/EUP chips (v6e/v7x); f32 otherwise."""
    try:
        kind = jax.devices()[0].device_kind.lower()
    except Exception:
        return jnp.float32
    if any(old in kind for old in ("v2", "v3", "v4", "v5")):
        return jnp.float32           # v5e and earlier: no bf16 VPU/EUP
    return jnp.bfloat16


def mynetwork_forward(sigma, x, y, params, *, max_tile_rows=MAX_TILE_ROWS,
                      compute_dtype=None):
    if compute_dtype is None:
        compute_dtype = _default_inner_dtype()

    B = sigma.shape[0]
    rows_needed = pl.cdiv(max(B, 1), LANES)
    # Adaptive tile: as large as possible (fewer grid steps -> less per-step
    # pipeline overhead) but small batches are not padded up to a 512-row tile.
    tile_rows = min(max_tile_rows, _round_up(rows_needed, 8))
    grid_n = pl.cdiv(rows_needed, tile_rows)
    rows = grid_n * tile_rows
    b_pad = rows * LANES

    def to_plane(v):
        v = jnp.reshape(v.astype(jnp.float32), (-1,))
        v = jnp.pad(v, (0, b_pad - B))
        return jnp.reshape(v, (rows, LANES))

    p_flat = pack_params(params)                   # (156,) f32 -> SMEM

    plane_spec = pl.BlockSpec((tile_rows, LANES), lambda i: (i, 0))
    out = pl.pallas_call(
        _make_kernel(compute_dtype),
        out_shape=jax.ShapeDtypeStruct((rows, LANES), jnp.int32),
        grid=(grid_n,),
        in_specs=[
            pl.BlockSpec(memory_space=pltpu.MemorySpace.SMEM),   # params (scalars)
            plane_spec,                                          # sigma
            plane_spec,                                          # x
            plane_spec,                                          # y
        ],
        out_specs=pl.BlockSpec((tile_rows, LANES), lambda i: (i, 0)),
        compiler_params=pltpu.CompilerParams(
            # NOTE: on v7x, flip the batch axis to pltpu.CORE_PARALLEL (after
            # ensuring grid_n is divisible by the core count) to guarantee both
            # TensorCores execute the grid; "parallel" is kept here so the same
            # script compiles cleanly on v5e/v6e/v7x.
            dimension_semantics=("parallel",),
            vmem_limit_bytes=32 * 1024 * 1024,
        ),
    )(p_flat, to_plane(sigma), to_plane(x), to_plane(y))

    return jnp.reshape(out, (b_pad, 1))[:B]


def init_params(key):
    """Deterministic synthetic params; Linear stored as (in, out) + (1, out)."""
    def linear(k, fan_in, fan_out):
        kw, kb = jax.random.split(k)
        bound = 1.0 / jnp.sqrt(jnp.float32(fan_in))
        w = jax.random.uniform(kw, (fan_in, fan_out), jnp.float32, -bound, bound)
        b = jax.random.uniform(kb, (1, fan_out), jnp.float32, -bound, bound)
        return w, b

    k1, k2, k3, k4, k5 = jax.random.split(key, 5)
    w1, b1 = linear(k1, 1, N1)
    w2, b2 = linear(k2, N1, N2)
    w3, b3 = linear(k3, N2, 2)
    wn, bn = linear(k4, 1, 1)
    wo, bo = linear(k5, 1, 1)
    return dict(w1=w1, b1=b1, w2=w2, b2=b2, w3=w3, b3=b3,
                wn=wn, bn=bn, wo=wo, bo=bo)


def reference_forward(sigma, x, y, p):
    """Pure-JAX f32 reference. Also returns the decision margin per sample."""
    h1 = jax.nn.sigmoid(sigma @ p["w1"] + p["b1"])
    h2 = jax.nn.sigmoid(h1 @ p["w2"] + p["b2"])
    crit = h2 @ p["w3"] + p["b3"]
    nabla_crit = jnp.maximum(crit[:, 0:1], 0.0)
    omega_crit = jnp.maximum(crit[:, 1:2], 0.0)
    nabla_out = jnp.maximum(x @ p["wn"] + p["bn"], 0.0)
    omega_out = jnp.maximum(y @ p["wo"] + p["bo"], 0.0)
    out = jnp.where((nabla_out < nabla_crit) & (omega_out > omega_crit), 1, 0
                    ).astype(jnp.int32)
    margin = jnp.minimum(jnp.abs(nabla_out - nabla_crit),
                         jnp.abs(omega_out - omega_crit))
    return out, margin


def _check(out, ref, margin, boundary_tol=0.1):
    mism = (out != ref)[:, 0]
    n_mism = int(jnp.sum(mism))
    # Flips are only legitimate exactly at the decision boundary (bf16 inner
    # math / tanh-form sigmoid rounding); anything else is a real bug.
    assert n_mism <= max(1, out.shape[0] // 20), f"too many mismatches: {n_mism}"
    assert bool(jnp.all(jnp.where(mism, margin[:, 0] < boundary_tol, True))), \
        "mismatch away from the decision boundary"


if __name__ == "__main__":
    key = jax.random.PRNGKey(0)
    kp, ks, kx, ky = jax.random.split(key, 4)

    B = 1000   # ragged batch to exercise the pad/slice path
    params = init_params(kp)
    sigma = jax.random.normal(ks, (B, 1), jnp.float32)
    x = jax.random.normal(kx, (B, 1), jnp.float32)
    y = jax.random.normal(ky, (B, 1), jnp.float32)

    out = jax.block_until_ready(mynetwork_forward(sigma, x, y, params))
    assert out.shape == (B, 1) and out.dtype == jnp.int32
    ref, margin = reference_forward(sigma, x, y, params)
    _check(out, ref, margin)

    # Tiny-batch path (adaptive tile -> single (8,128) block).
    out_s = jax.block_until_ready(
        mynetwork_forward(sigma[:3], x[:3], y[:3], params))
    assert out_s.shape == (3, 1) and out_s.dtype == jnp.int32
    ref_s, margin_s = reference_forward(sigma[:3], x[:3], y[:3], params)
    _check(out_s, ref_s, margin_s)

    print("KERNEL_OK")
</pallas_src>

<mosaic_0001>
module attributes {stable_mosaic.version = 11 : i64} {
  func.func @kernel(%arg0: i32, %arg1: memref<156xf32, #tpu.memory_space<smem>>, %arg2: memref<8x128xf32, #tpu.memory_space<vmem>>, %arg3: memref<8x128xf32, #tpu.memory_space<vmem>>, %arg4: memref<8x128xf32, #tpu.memory_space<vmem>>, %arg5: memref<8x128xi32, #tpu.memory_space<vmem>>) attributes {dimension_semantics = [#tpu.dimension_semantics<parallel>], iteration_bounds = array<i64: 1>, scalar_prefetch = 0 : i64, scratch_operands = 0 : i64, tpu.core_type = #tpu.core_type<tc>, window_params = [{transform_indices = @transform_0, window_bounds = array<i64: 156>}, {transform_indices = @transform_1, window_bounds = array<i64: 8, 128>}, {transform_indices = @transform_2, window_bounds = array<i64: 8, 128>}, {transform_indices = @transform_3, window_bounds = array<i64: 8, 128>}, {transform_indices = @transform_4, window_bounds = array<i64: 8, 128>}]} {
    %c0 = arith.constant 0 : index
    %c0_0 = arith.constant 0 : index
    %0 = vector.load %arg2[%c0, %c0_0] : memref<8x128xf32, #tpu.memory_space<vmem>>, vector<8x128xf32>
    %1 = arith.truncf %0 : vector<8x128xf32> to vector<8x128xbf16>
    %c0_1 = arith.constant 0 : index
    %c0_2 = arith.constant 0 : index
    %2 = vector.load %arg3[%c0_1, %c0_2] : memref<8x128xf32, #tpu.memory_space<vmem>>, vector<8x128xf32>
    %c0_3 = arith.constant 0 : index
    %c0_4 = arith.constant 0 : index
    %3 = vector.load %arg4[%c0_3, %c0_4] : memref<8x128xf32, #tpu.memory_space<vmem>>, vector<8x128xf32>
    %c0_5 = arith.constant 0 : index
    %4 = memref.load %arg1[%c0_5] : memref<156xf32, #tpu.memory_space<smem>>
    %5 = arith.truncf %4 : f32 to bf16
    %6 = vector.broadcast %5 : bf16 to vector<8x128xbf16>
    %7 = arith.mulf %1, %6 : vector<8x128xbf16>
    %c10 = arith.constant 10 : index
    %8 = memref.load %arg1[%c10] : memref<156xf32, #tpu.memory_space<smem>>
    %9 = arith.truncf %8 : f32 to bf16
    %10 = vector.broadcast %9 : bf16 to vector<8x128xbf16>
    %11 = arith.addf %7, %10 : vector<8x128xbf16>
    %cst = arith.constant 5.000000e-01 : bf16
    %12 = vector.broadcast %cst : bf16 to vector<8x128xbf16>
    %13 = arith.mulf %12, %11 : vector<8x128xbf16>
    %14 = math.tanh %13 : vector<8x128xbf16>
    %cst_6 = arith.constant 5.000000e-01 : bf16
    %15 = vector.broadcast %cst_6 : bf16 to vector<8x128xbf16>
    %16 = arith.mulf %15, %14 : vector<8x128xbf16>
    %cst_7 = arith.constant 5.000000e-01 : bf16
    %17 = vector.broadcast %cst_7 : bf16 to vector<8x128xbf16>
    %18 = arith.addf %16, %17 : vector<8x128xbf16>
    %c20 = arith.constant 20 : index
    %19 = memref.load %arg1[%c20] : memref<156xf32, #tpu.memory_space<smem>>
    %20 = arith.truncf %19 : f32 to bf16
    %21 = vector.broadcast %20 : bf16 to vector<8x128xbf16>
    %22 = arith.mulf %18, %21 : vector<8x128xbf16>
    %c120 = arith.constant 120 : index
    %23 = memref.load %arg1[%c120] : memref<156xf32, #tpu.memory_space<smem>>
    %24 = arith.truncf %23 : f32 to bf16
    %25 = vector.broadcast %24 : bf16 to vector<8x128xbf16>
    %26 = arith.addf %22, %25 : vector<8x128xbf16>
    %c21 = arith.constant 21 : index
    %27 = memref.load %arg1[%c21] : memref<156xf32, #tpu.memory_space<smem>>
    %28 = arith.truncf %27 : f32 to bf16
    %29 = vector.broadcast %28 : bf16 to vector<8x128xbf16>
    %30 = arith.mulf %18, %29 : vector<8x128xbf16>
    %c121 = arith.constant 121 : index
    %31 = memref.load %arg1[%c121] : memref<156xf32, #tpu.memory_space<smem>>
    %32 = arith.truncf %31 : f32 to bf16
    %33 = vector.broadcast %32 : bf16 to vector<8x128xbf16>
    %34 = arith.addf %30, %33 : vector<8x128xbf16>
    %c22 = arith.constant 22 : index
    %35 = memref.load %arg1[%c22] : memref<156xf32, #tpu.memory_space<smem>>
    %36 = arith.truncf %35 : f32 to bf16
    %37 = vector.broadcast %36 : bf16 to vector<8x128xbf16>
    %38 = arith.mulf %18, %37 : vector<8x128xbf16>
    %c122 = arith.constant 122 : index
    %39 = memref.load %arg1[%c122] : memref<156xf32, #tpu.memory_space<smem>>
    %40 = arith.truncf %39 : f32 to bf16
    %41 = vector.broadcast %40 : bf16 to vector<8x128xbf16>
    %42 = arith.addf %38, %41 : vector<8x128xbf16>
    %c23 = arith.constant 23 : index
    %43 = memref.load %arg1[%c23] : memref<156xf32, #tpu.memory_space<smem>>
    %44 = arith.truncf %43 : f32 to bf16
    %45 = vector.broadcast %44 : bf16 to vector<8x128xbf16>
    %46 = arith.mulf %18, %45 : vector<8x128xbf16>
    %c123 = arith.constant 123 : index
    %47 = memref.load %arg1[%c123] : memref<156xf32, #tpu.memory_space<smem>>
    %48 = arith.truncf %47 : f32 to bf16
    %49 = vector.broadcast %48 : bf16 to vector<8x128xbf16>
    %50 = arith.addf %46, %49 : vector<8x128xbf16>
    %c24 = arith.constant 24 : index
    %51 = memref.load %arg1[%c24] : memref<156xf32, #tpu.memory_space<smem>>
    %52 = arith.truncf %51 : f32 to bf16
    %53 = vector.broadcast %52 : bf16 to vector<8x128xbf16>
    %54 = arith.mulf %18, %53 : vector<8x128xbf16>
    %c124 = arith.constant 124 : index
    %55 = memref.load %arg1[%c124] : memref<156xf32, #tpu.memory_space<smem>>
    %56 = arith.truncf %55 : f32 to bf16
    %57 = vector.broadcast %56 : bf16 to vector<8x128xbf16>
    %58 = arith.addf %54, %57 : vector<8x128xbf16>
    %c25 = arith.constant 25 : index
    %59 = memref.load %arg1[%c25] : memref<156xf32, #tpu.memory_space<smem>>
    %60 = arith.truncf %59 : f32 to bf16
    %61 = vector.broadcast %60 : bf16 to vector<8x128xbf16>
    %62 = arith.mulf %18, %61 : vector<8x128xbf16>
    %c125 = arith.constant 125 : index
    %63 = memref.load %arg1[%c125] : memref<156xf32, #tpu.memory_space<smem>>
    %64 = arith.truncf %63 : f32 to bf16
    %65 = vector.broadcast %64 : bf16 to vector<8x128xbf16>
    %66 = arith.addf %62, %65 : vector<8x128xbf16>
    %c26 = arith.constant 26 : index
    %67 = memref.load %arg1[%c26] : memref<156xf32, #tpu.memory_space<smem>>
    %68 = arith.truncf %67 : f32 to bf16
    %69 = vector.broadcast %68 : bf16 to vector<8x128xbf16>
    %70 = arith.mulf %18, %69 : vector<8x128xbf16>
    %c126 = arith.constant 126 : index
    %71 = memref.load %arg1[%c126] : memref<156xf32, #tpu.memory_space<smem>>
    %72 = arith.truncf %71 : f32 to bf16
    %73 = vector.broadcast %72 : bf16 to vector<8x128xbf16>
    %74 = arith.addf %70, %73 : vector<8x128xbf16>
    %c27 = arith.constant 27 : index
    %75 = memref.load %arg1[%c27] : memref<156xf32, #tpu.memory_space<smem>>
    %76 = arith.truncf %75 : f32 to bf16
    %77 = vector.broadcast %76 : bf16 to vector<8x128xbf16>
    %78 = arith.mulf %18, %77 : vector<8x128xbf16>
    %c127 = arith.constant 127 : index
    %79 = memref.load %arg1[%c127] : memref<156xf32, #tpu.memory_space<smem>>
    %80 = arith.truncf %79 : f32 to bf16
    %81 = vector.broadcast %80 : bf16 to vector<8x128xbf16>
    %82 = arith.addf %78, %81 : vector<8x128xbf16>
    %c28 = arith.constant 28 : index
    %83 = memref.load %arg1[%c28] : memref<156xf32, #tpu.memory_space<smem>>
    %84 = arith.truncf %83 : f32 to bf16
    %85 = vector.broadcast %84 : bf16 to vector<8x128xbf16>
    %86 = arith.mulf %18, %85 : vector<8x128xbf16>
    %c128 = arith.constant 128 : index
    %87 = memref.load %arg1[%c128] : memref<156xf32, #tpu.memory_space<smem>>
    %88 = arith.truncf %87 : f32 to bf16
    %89 = vector.broadcast %88 : bf16 to vector<8x128xbf16>
    %90 = arith.addf %86, %89 : vector<8x128xbf16>
    %c29 = arith.constant 29 : index
    %91 = memref.load %arg1[%c29] : memref<156xf32, #tpu.memory_space<smem>>
    %92 = arith.truncf %91 : f32 to bf16
    %93 = vector.broadcast %92 : bf16 to vector<8x128xbf16>
    %94 = arith.mulf %18, %93 : vector<8x128xbf16>
    %c129 = arith.constant 129 : index
    %95 = memref.load %arg1[%c129] : memref<156xf32, #tpu.memory_space<smem>>
    %96 = arith.truncf %95 : f32 to bf16
    %97 = vector.broadcast %96 : bf16 to vector<8x128xbf16>
    %98 = arith.addf %94, %97 : vector<8x128xbf16>
    %c1 = arith.constant 1 : index
    %99 = memref.load %arg1[%c1] : memref<156xf32, #tpu.memory_space<smem>>
    %100 = arith.truncf %99 : f32 to bf16
    %101 = vector.broadcast %100 : bf16 to vector<8x128xbf16>
    %102 = arith.mulf %1, %101 : vector<8x128xbf16>
    %c11 = arith.constant 11 : index
    %103 = memref.load %arg1[%c11] : memref<156xf32, #tpu.memory_space<smem>>
    %104 = arith.truncf %103 : f32 to bf16
    %105 = vector.broadcast %104 : bf16 to vector<8x128xbf16>
    %106 = arith.addf %102, %105 : vector<8x128xbf16>
    %cst_8 = arith.constant 5.000000e-01 : bf16
    %107 = vector.broadcast %cst_8 : bf16 to vector<8x128xbf16>
    %108 = arith.mulf %107, %106 : vector<8x128xbf16>
    %109 = math.tanh %108 : vector<8x128xbf16>
    %cst_9 = arith.constant 5.000000e-01 : bf16
    %110 = vector.broadcast %cst_9 : bf16 to vector<8x128xbf16>
    %111 = arith.mulf %110, %109 : vector<8x128xbf16>
    %cst_10 = arith.constant 5.000000e-01 : bf16
    %112 = vector.broadcast %cst_10 : bf16 to vector<8x128xbf16>
    %113 = arith.addf %111, %112 : vector<8x128xbf16>
    %c30 = arith.constant 30 : index
    %114 = memref.load %arg1[%c30] : memref<156xf32, #tpu.memory_space<smem>>
    %115 = arith.truncf %114 : f32 to bf16
    %116 = vector.broadcast %115 : bf16 to vector<8x128xbf16>
    %117 = arith.mulf %113, %116 : vector<8x128xbf16>
    %118 = arith.addf %26, %117 : vector<8x128xbf16>
    %c31 = arith.constant 31 : index
    %119 = memref.load %arg1[%c31] : memref<156xf32, #tpu.memory_space<smem>>
    %120 = arith.truncf %119 : f32 to bf16
    %121 = vector.broadcast %120 : bf16 to vector<8x128xbf16>
    %122 = arith.mulf %113, %121 : vector<8x128xbf16>
    %123 = arith.addf %34, %122 : vector<8x128xbf16>
    %c32 = arith.constant 32 : index
    %124 = memref.load %arg1[%c32] : memref<156xf32, #tpu.memory_space<smem>>
    %125 = arith.truncf %124 : f32 to bf16
    %126 = vector.broadcast %125 : bf16 to vector<8x128xbf16>
    %127 = arith.mulf %113, %126 : vector<8x128xbf16>
    %128 = arith.addf %42, %127 : vector<8x128xbf16>
    %c33 = arith.constant 33 : index
    %129 = memref.load %arg1[%c33] : memref<156xf32, #tpu.memory_space<smem>>
    %130 = arith.truncf %129 : f32 to bf16
    %131 = vector.broadcast %130 : bf16 to vector<8x128xbf16>
    %132 = arith.mulf %113, %131 : vector<8x128xbf16>
    %133 = arith.addf %50, %132 : vector<8x128xbf16>
    %c34 = arith.constant 34 : index
    %134 = memref.load %arg1[%c34] : memref<156xf32, #tpu.memory_space<smem>>
    %135 = arith.truncf %134 : f32 to bf16
    %136 = vector.broadcast %135 : bf16 to vector<8x128xbf16>
    %137 = arith.mulf %113, %136 : vector<8x128xbf16>
    %138 = arith.addf %58, %137 : vector<8x128xbf16>
    %c35 = arith.constant 35 : index
    %139 = memref.load %arg1[%c35] : memref<156xf32, #tpu.memory_space<smem>>
    %140 = arith.truncf %139 : f32 to bf16
    %141 = vector.broadcast %140 : bf16 to vector<8x128xbf16>
    %142 = arith.mulf %113, %141 : vector<8x128xbf16>
    %143 = arith.addf %66, %142 : vector<8x128xbf16>
    %c36 = arith.constant 36 : index
    %144 = memref.load %arg1[%c36] : memref<156xf32, #tpu.memory_space<smem>>
    %145 = arith.truncf %144 : f32 to bf16
    %146 = vector.broadcast %145 : bf16 to vector<8x128xbf16>
    %147 = arith.mulf %113, %146 : vector<8x128xbf16>
    %148 = arith.addf %74, %147 : vector<8x128xbf16>
    %c37 = arith.constant 37 : index
    %149 = memref.load %arg1[%c37] : memref<156xf32, #tpu.memory_space<smem>>
    %150 = arith.truncf %149 : f32 to bf16
    %151 = vector.broadcast %150 : bf16 to vector<8x128xbf16>
    %152 = arith.mulf %113, %151 : vector<8x128xbf16>
    %153 = arith.addf %82, %152 : vector<8x128xbf16>
    %c38 = arith.constant 38 : index
    %154 = memref.load %arg1[%c38] : memref<156xf32, #tpu.memory_space<smem>>
    %155 = arith.truncf %154 : f32 to bf16
    %156 = vector.broadcast %155 : bf16 to vector<8x128xbf16>
    %157 = arith.mulf %113, %156 : vector<8x128xbf16>
    %158 = arith.addf %90, %157 : vector<8x128xbf16>
    %c39 = arith.constant 39 : index
    %159 = memref.load %arg1[%c39] : memref<156xf32, #tpu.memory_space<smem>>
    %160 = arith.truncf %159 : f32 to bf16
    %161 = vector.broadcast %160 : bf16 to vector<8x128xbf16>
    %162 = arith.mulf %113, %161 : vector<8x128xbf16>
    %163 = arith.addf %98, %162 : vector<8x128xbf16>
    %c2 = arith.constant 2 : index
    %164 = memref.load %arg1[%c2] : memref<156xf32, #tpu.memory_space<smem>>
    %165 = arith.truncf %164 : f32 to bf16
    %166 = vector.broadcast %165 : bf16 to vector<8x128xbf16>
    %167 = arith.mulf %1, %166 : vector<8x128xbf16>
    %c12 = arith.constant 12 : index
    %168 = memref.load %arg1[%c12] : memref<156xf32, #tpu.memory_space<smem>>
    %169 = arith.truncf %168 : f32 to bf16
    %170 = vector.broadcast %169 : bf16 to vector<8x128xbf16>
    %171 = arith.addf %167, %170 : vector<8x128xbf16>
    %cst_11 = arith.constant 5.000000e-01 : bf16
    %172 = vector.broadcast %cst_11 : bf16 to vector<8x128xbf16>
    %173 = arith.mulf %172, %171 : vector<8x128xbf16>
    %174 = math.tanh %173 : vector<8x128xbf16>
    %cst_12 = arith.constant 5.000000e-01 : bf16
    %175 = vector.broadcast %cst_12 : bf16 to vector<8x128xbf16>
    %176 = arith.mulf %175, %174 : vector<8x128xbf16>
    %cst_13 = arith.constant 5.000000e-01 : bf16
    %177 = vector.broadcast %cst_13 : bf16 to vector<8x128xbf16>
    %178 = arith.addf %176, %177 : vector<8x128xbf16>
    %c40 = arith.constant 40 : index
    %179 = memref.load %arg1[%c40] : memref<156xf32, #tpu.memory_space<smem>>
    %180 = arith.truncf %179 : f32 to bf16
    %181 = vector.broadcast %180 : bf16 to vector<8x128xbf16>
    %182 = arith.mulf %178, %181 : vector<8x128xbf16>
    %183 = arith.addf %118, %182 : vector<8x128xbf16>
    %c41 = arith.constant 41 : index
    %184 = memref.load %arg1[%c41] : memref<156xf32, #tpu.memory_space<smem>>
    %185 = arith.truncf %184 : f32 to bf16
    %186 = vector.broadcast %185 : bf16 to vector<8x128xbf16>
    %187 = arith.mulf %178, %186 : vector<8x128xbf16>
    %188 = arith.addf %123, %187 : vector<8x128xbf16>
    %c42 = arith.constant 42 : index
    %189 = memref.load %arg1[%c42] : memref<156xf32, #tpu.memory_space<smem>>
    %190 = arith.truncf %189 : f32 to bf16
    %191 = vector.broadcast %190 : bf16 to vector<8x128xbf16>
    %192 = arith.mulf %178, %191 : vector<8x128xbf16>
    %193 = arith.addf %128, %192 : vector<8x128xbf16>
    %c43 = arith.constant 43 : index
    %194 = memref.load %arg1[%c43] : memref<156xf32, #tpu.memory_space<smem>>
    %195 = arith.truncf %194 : f32 to bf16
    %196 = vector.broadcast %195 : bf16 to vector<8x128xbf16>
    %197 = arith.mulf %178, %196 : vector<8x128xbf16>
    %198 = arith.addf %133, %197 : vector<8x128xbf16>
    %c44 = arith.constant 44 : index
    %199 = memref.load %arg1[%c44] : memref<156xf32, #tpu.memory_space<smem>>
    %200 = arith.truncf %199 : f32 to bf16
    %201 = vector.broadcast %200 : bf16 to vector<8x128xbf16>
    %202 = arith.mulf %178, %201 : vector<8x128xbf16>
    %203 = arith.addf %138, %202 : vector<8x128xbf16>
    %c45 = arith.constant 45 : index
    %204 = memref.load %arg1[%c45] : memref<156xf32, #tpu.memory_space<smem>>
    %205 = arith.truncf %204 : f32 to bf16
    %206 = vector.broadcast %205 : bf16 to vector<8x128xbf16>
    %207 = arith.mulf %178, %206 : vector<8x128xbf16>
    %208 = arith.addf %143, %207 : vector<8x128xbf16>
    %c46 = arith.constant 46 : index
    %209 = memref.load %arg1[%c46] : memref<156xf32, #tpu.memory_space<smem>>
    %210 = arith.truncf %209 : f32 to bf16
    %211 = vector.broadcast %210 : bf16 to vector<8x128xbf16>
    %212 = arith.mulf %178, %211 : vector<8x128xbf16>
    %213 = arith.addf %148, %212 : vector<8x128xbf16>
    %c47 = arith.constant 47 : index
    %214 = memref.load %arg1[%c47] : memref<156xf32, #tpu.memory_space<smem>>
    %215 = arith.truncf %214 : f32 to bf16
    %216 = vector.broadcast %215 : bf16 to vector<8x128xbf16>
    %217 = arith.mulf %178, %216 : vector<8x128xbf16>
    %218 = arith.addf %153, %217 : vector<8x128xbf16>
    %c48 = arith.constant 48 : index
    %219 = memref.load %arg1[%c48] : memref<156xf32, #tpu.memory_space<smem>>
    %220 = arith.truncf %219 : f32 to bf16
    %221 = vector.broadcast %220 : bf16 to vector<8x128xbf16>
    %222 = arith.mulf %178, %221 : vector<8x128xbf16>
    %223 = arith.addf %158, %222 : vector<8x128xbf16>
    %c49 = arith.constant 49 : index
    %224 = memref.load %arg1[%c49] : memref<156xf32, #tpu.memory_space<smem>>
    %225 = arith.truncf %224 : f32 to bf16
    %226 = vector.broadcast %225 : bf16 to vector<8x128xbf16>
    %227 = arith.mulf %178, %226 : vector<8x128xbf16>
    %228 = arith.addf %163, %227 : vector<8x128xbf16>
    %c3 = arith.constant 3 : index
    %229 = memref.load %arg1[%c3] : memref<156xf32, #tpu.memory_space<smem>>
    %230 = arith.truncf %229 : f32 to bf16
    %231 = vector.broadcast %230 : bf16 to vector<8x128xbf16>
    %232 = arith.mulf %1, %231 : vector<8x128xbf16>
    %c13 = arith.constant 13 : index
    %233 = memref.load %arg1[%c13] : memref<156xf32, #tpu.memory_space<smem>>
    %234 = arith.truncf %233 : f32 to bf16
    %235 = vector.broadcast %234 : bf16 to vector<8x128xbf16>
    %236 = arith.addf %232, %235 : vector<8x128xbf16>
    %cst_14 = arith.constant 5.000000e-01 : bf16
    %237 = vector.broadcast %cst_14 : bf16 to vector<8x128xbf16>
    %238 = arith.mulf %237, %236 : vector<8x128xbf16>
    %239 = math.tanh %238 : vector<8x128xbf16>
    %cst_15 = arith.constant 5.000000e-01 : bf16
    %240 = vector.broadcast %cst_15 : bf16 to vector<8x128xbf16>
    %241 = arith.mulf %240, %239 : vector<8x128xbf16>
    %cst_16 = arith.constant 5.000000e-01 : bf16
    %242 = vector.broadcast %cst_16 : bf16 to vector<8x128xbf16>
    %243 = arith.addf %241, %242 : vector<8x128xbf16>
    %c50 = arith.constant 50 : index
    %244 = memref.load %arg1[%c50] : memref<156xf32, #tpu.memory_space<smem>>
    %245 = arith.truncf %244 : f32 to bf16
    %246 = vector.broadcast %245 : bf16 to vector<8x128xbf16>
    %247 = arith.mulf %243, %246 : vector<8x128xbf16>
    %248 = arith.addf %183, %247 : vector<8x128xbf16>
    %c51 = arith.constant 51 : index
    %249 = memref.load %arg1[%c51] : memref<156xf32, #tpu.memory_space<smem>>
    %250 = arith.truncf %249 : f32 to bf16
    %251 = vector.broadcast %250 : bf16 to vector<8x128xbf16>
    %252 = arith.mulf %243, %251 : vector<8x128xbf16>
    %253 = arith.addf %188, %252 : vector<8x128xbf16>
    %c52 = arith.constant 52 : index
    %254 = memref.load %arg1[%c52] : memref<156xf32, #tpu.memory_space<smem>>
    %255 = arith.truncf %254 : f32 to bf16
    %256 = vector.broadcast %255 : bf16 to vector<8x128xbf16>
    %257 = arith.mulf %243, %256 : vector<8x128xbf16>
    %258 = arith.addf %193, %257 : vector<8x128xbf16>
    %c53 = arith.constant 53 : index
    %259 = memref.load %arg1[%c53] : memref<156xf32, #tpu.memory_space<smem>>
    %260 = arith.truncf %259 : f32 to bf16
    %261 = vector.broadcast %260 : bf16 to vector<8x128xbf16>
    %262 = arith.mulf %243, %261 : vector<8x128xbf16>
    %263 = arith.addf %198, %262 : vector<8x128xbf16>
    %c54 = arith.constant 54 : index
    %264 = memref.load %arg1[%c54] : memref<156xf32, #tpu.memory_space<smem>>
    %265 = arith.truncf %264 : f32 to bf16
    %266 = vector.broadcast %265 : bf16 to vector<8x128xbf16>
    %267 = arith.mulf %243, %266 : vector<8x128xbf16>
    %268 = arith.addf %203, %267 : vector<8x128xbf16>
    %c55 = arith.constant 55 : index
    %269 = memref.load %arg1[%c55] : memref<156xf32, #tpu.memory_space<smem>>
    %270 = arith.truncf %269 : f32 to bf16
    %271 = vector.broadcast %270 : bf16 to vector<8x128xbf16>
    %272 = arith.mulf %243, %271 : vector<8x128xbf16>
    %273 = arith.addf %208, %272 : vector<8x128xbf16>
    %c56 = arith.constant 56 : index
    %274 = memref.load %arg1[%c56] : memref<156xf32, #tpu.memory_space<smem>>
    %275 = arith.truncf %274 : f32 to bf16
    %276 = vector.broadcast %275 : bf16 to vector<8x128xbf16>
    %277 = arith.mulf %243, %276 : vector<8x128xbf16>
    %278 = arith.addf %213, %277 : vector<8x128xbf16>
    %c57 = arith.constant 57 : index
    %279 = memref.load %arg1[%c57] : memref<156xf32, #tpu.memory_space<smem>>
    %280 = arith.truncf %279 : f32 to bf16
    %281 = vector.broadcast %280 : bf16 to vector<8x128xbf16>
    %282 = arith.mulf %243, %281 : vector<8x128xbf16>
    %283 = arith.addf %218, %282 : vector<8x128xbf16>
    %c58 = arith.constant 58 : index
    %284 = memref.load %arg1[%c58] : memref<156xf32, #tpu.memory_space<smem>>
    %285 = arith.truncf %284 : f32 to bf16
    %286 = vector.broadcast %285 : bf16 to vector<8x128xbf16>
    %287 = arith.mulf %243, %286 : vector<8x128xbf16>
    %288 = arith.addf %223, %287 : vector<8x128xbf16>
    %c59 = arith.constant 59 : index
    %289 = memref.load %arg1[%c59] : memref<156xf32, #tpu.memory_space<smem>>
    %290 = arith.truncf %289 : f32 to bf16
    %291 = vector.broadcast %290 : bf16 to vector<8x128xbf16>
    %292 = arith.mulf %243, %291 : vector<8x128xbf16>
    %293 = arith.addf %228, %292 : vector<8x128xbf16>
    %c4 = arith.constant 4 : index
    %294 = memref.load %arg1[%c4] : memref<156xf32, #tpu.memory_space<smem>>
    %295 = arith.truncf %294 : f32 to bf16
    %296 = vector.broadcast %295 : bf16 to vector<8x128xbf16>
    %297 = arith.mulf %1, %296 : vector<8x128xbf16>
    %c14 = arith.constant 14 : index
    %298 = memref.load %arg1[%c14] : memref<156xf32, #tpu.memory_space<smem>>
    %299 = arith.truncf %298 : f32 to bf16
    %300 = vector.broadcast %299 : bf16 to vector<8x128xbf16>
    %301 = arith.addf %297, %300 : vector<8x128xbf16>
    %cst_17 = arith.constant 5.000000e-01 : bf16
    %302 = vector.broadcast %cst_17 : bf16 to vector<8x128xbf16>
    %303 = arith.mulf %302, %301 : vector<8x128xbf16>
    %304 = math.tanh %303 : vector<8x128xbf16>
    %cst_18 = arith.constant 5.000000e-01 : bf16
    %305 = vector.broadcast %cst_18 : bf16 to vector<8x128xbf16>
    %306 = arith.mulf %305, %304 : vector<8x128xbf16>
    %cst_19 = arith.constant 5.000000e-01 : bf16
    %307 = vector.broadcast %cst_19 : bf16 to vector<8x128xbf16>
    %308 = arith.addf %306, %307 : vector<8x128xbf16>
    %c60 = arith.constant 60 : index
    %309 = memref.load %arg1[%c60] : memref<156xf32, #tpu.memory_space<smem>>
    %310 = arith.truncf %309 : f32 to bf16
    %311 = vector.broadcast %310 : bf16 to vector<8x128xbf16>
    %312 = arith.mulf %308, %311 : vector<8x128xbf16>
    %313 = arith.addf %248, %312 : vector<8x128xbf16>
    %c61 = arith.constant 61 : index
    %314 = memref.load %arg1[%c61] : memref<156xf32, #tpu.memory_space<smem>>
    %315 = arith.truncf %314 : f32 to bf16
    %316 = vector.broadcast %315 : bf16 to vector<8x128xbf16>
    %317 = arith.mulf %308, %316 : vector<8x128xbf16>
    %318 = arith.addf %253, %317 : vector<8x128xbf16>
    %c62 = arith.constant 62 : index
    %319 = memref.load %arg1[%c62] : memref<156xf32, #tpu.memory_space<smem>>
    %320 = arith.truncf %319 : f32 to bf16
    %321 = vector.broadcast %320 : bf16 to vector<8x128xbf16>
    %322 = arith.mulf %308, %321 : vector<8x128xbf16>
    %323 = arith.addf %258, %322 : vector<8x128xbf16>
    %c63 = arith.constant 63 : index
    %324 = memref.load %arg1[%c63] : memref<156xf32, #tpu.memory_space<smem>>
    %325 = arith.truncf %324 : f32 to bf16
    %326 = vector.broadcast %325 : bf16 to vector<8x128xbf16>
    %327 = arith.mulf %308, %326 : vector<8x128xbf16>
    %328 = arith.addf %263, %327 : vector<8x128xbf16>
    %c64 = arith.constant 64 : index
    %329 = memref.load %arg1[%c64] : memref<156xf32, #tpu.memory_space<smem>>
    %330 = arith.truncf %329 : f32 to bf16
    %331 = vector.broadcast %330 : bf16 to vector<8x128xbf16>
    %332 = arith.mulf %308, %331 : vector<8x128xbf16>
    %333 = arith.addf %268, %332 : vector<8x128xbf16>
    %c65 = arith.constant 65 : index
    %334 = memref.load %arg1[%c65] : memref<156xf32, #tpu.memory_space<smem>>
    %335 = arith.truncf %334 : f32 to bf16
    %336 = vector.broadcast %335 : bf16 to vector<8x128xbf16>
    %337 = arith.mulf %308, %336 : vector<8x128xbf16>
    %338 = arith.addf %273, %337 : vector<8x128xbf16>
    %c66 = arith.constant 66 : index
    %339 = memref.load %arg1[%c66] : memref<156xf32, #tpu.memory_space<smem>>
    %340 = arith.truncf %339 : f32 to bf16
    %341 = vector.broadcast %340 : bf16 to vector<8x128xbf16>
    %342 = arith.mulf %308, %341 : vector<8x128xbf16>
    %343 = arith.addf %278, %342 : vector<8x128xbf16>
    %c67 = arith.constant 67 : index
    %344 = memref.load %arg1[%c67] : memref<156xf32, #tpu.memory_space<smem>>
    %345 = arith.truncf %344 : f32 to bf16
    %346 = vector.broadcast %345 : bf16 to vector<8x128xbf16>
    %347 = arith.mulf %308, %346 : vector<8x128xbf16>
    %348 = arith.addf %283, %347 : vector<8x128xbf16>
    %c68 = arith.constant 68 : index
    %349 = memref.load %arg1[%c68] : memref<156xf32, #tpu.memory_space<smem>>
    %350 = arith.truncf %349 : f32 to bf16
    %351 = vector.broadcast %350 : bf16 to vector<8x128xbf16>
    %352 = arith.mulf %308, %351 : vector<8x128xbf16>
    %353 = arith.addf %288, %352 : vector<8x128xbf16>
    %c69 = arith.constant 69 : index
    %354 = memref.load %arg1[%c69] : memref<156xf32, #tpu.memory_space<smem>>
    %355 = arith.truncf %354 : f32 to bf16
    %356 = vector.broadcast %355 : bf16 to vector<8x128xbf16>
    %357 = arith.mulf %308, %356 : vector<8x128xbf16>
    %358 = arith.addf %293, %357 : vector<8x128xbf16>
    %c5 = arith.constant 5 : index
    %359 = memref.load %arg1[%c5] : memref<156xf32, #tpu.memory_space<smem>>
    %360 = arith.truncf %359 : f32 to bf16
    %361 = vector.broadcast %360 : bf16 to vector<8x128xbf16>
    %362 = arith.mulf %1, %361 : vector<8x128xbf16>
    %c15 = arith.constant 15 : index
    %363 = memref.load %arg1[%c15] : memref<156xf32, #tpu.memory_space<smem>>
    %364 = arith.truncf %363 : f32 to bf16
    %365 = vector.broadcast %364 : bf16 to vector<8x128xbf16>
    %366 = arith.addf %362, %365 : vector<8x128xbf16>
    %cst_20 = arith.constant 5.000000e-01 : bf16
    %367 = vector.broadcast %cst_20 : bf16 to vector<8x128xbf16>
    %368 = arith.mulf %367, %366 : vector<8x128xbf16>
    %369 = math.tanh %368 : vector<8x128xbf16>
    %cst_21 = arith.constant 5.000000e-01 : bf16
    %370 = vector.broadcast %cst_21 : bf16 to vector<8x128xbf16>
    %371 = arith.mulf %370, %369 : vector<8x128xbf16>
    %cst_22 = arith.constant 5.000000e-01 : bf16
    %372 = vector.broadcast %cst_22 : bf16 to vector<8x128xbf16>
    %373 = arith.addf %371, %372 : vector<8x128xbf16>
    %c70 = arith.constant 70 : index
    %374 = memref.load %arg1[%c70] : memref<156xf32, #tpu.memory_space<smem>>
    %375 = arith.truncf %374 : f32 to bf16
    %376 = vector.broadcast %375 : bf16 to vector<8x128xbf16>
    %377 = arith.mulf %373, %376 : vector<8x128xbf16>
    %378 = arith.addf %313, %377 : vector<8x128xbf16>
    %c71 = arith.constant 71 : index
    %379 = memref.load %arg1[%c71] : memref<156xf32, #tpu.memory_space<smem>>
    %380 = arith.truncf %379 : f32 to bf16
    %381 = vector.broadcast %380 : bf16 to vector<8x128xbf16>
    %382 = arith.mulf %373, %381 : vector<8x128xbf16>
    %383 = arith.addf %318, %382 : vector<8x128xbf16>
    %c72 = arith.constant 72 : index
    %384 = memref.load %arg1[%c72] : memref<156xf32, #tpu.memory_space<smem>>
    %385 = arith.truncf %384 : f32 to bf16
    %386 = vector.broadcast %385 : bf16 to vector<8x128xbf16>
    %387 = arith.mulf %373, %386 : vector<8x128xbf16>
    %388 = arith.addf %323, %387 : vector<8x128xbf16>
    %c73 = arith.constant 73 : index
    %389 = memref.load %arg1[%c73] : memref<156xf32, #tpu.memory_space<smem>>
    %390 = arith.truncf %389 : f32 to bf16
    %391 = vector.broadcast %390 : bf16 to vector<8x128xbf16>
    %392 = arith.mulf %373, %391 : vector<8x128xbf16>
    %393 = arith.addf %328, %392 : vector<8x128xbf16>
    %c74 = arith.constant 74 : index
    %394 = memref.load %arg1[%c74] : memref<156xf32, #tpu.memory_space<smem>>
    %395 = arith.truncf %394 : f32 to bf16
    %396 = vector.broadcast %395 : bf16 to vector<8x128xbf16>
    %397 = arith.mulf %373, %396 : vector<8x128xbf16>
    %398 = arith.addf %333, %397 : vector<8x128xbf16>
    %c75 = arith.constant 75 : index
    %399 = memref.load %arg1[%c75] : memref<156xf32, #tpu.memory_space<smem>>
    %400 = arith.truncf %399 : f32 to bf16
    %401 = vector.broadcast %400 : bf16 to vector<8x128xbf16>
    %402 = arith.mulf %373, %401 : vector<8x128xbf16>
    %403 = arith.addf %338, %402 : vector<8x128xbf16>
    %c76 = arith.constant 76 : index
    %404 = memref.load %arg1[%c76] : memref<156xf32, #tpu.memory_space<smem>>
    %405 = arith.truncf %404 : f32 to bf16
    %406 = vector.broadcast %405 : bf16 to vector<8x128xbf16>
    %407 = arith.mulf %373, %406 : vector<8x128xbf16>
    %408 = arith.addf %343, %407 : vector<8x128xbf16>
    %c77 = arith.constant 77 : index
    %409 = memref.load %arg1[%c77] : memref<156xf32, #tpu.memory_space<smem>>
    %410 = arith.truncf %409 : f32 to bf16
    %411 = vector.broadcast %410 : bf16 to vector<8x128xbf16>
    %412 = arith.mulf %373, %411 : vector<8x128xbf16>
    %413 = arith.addf %348, %412 : vector<8x128xbf16>
    %c78 = arith.constant 78 : index
    %414 = memref.load %arg1[%c78] : memref<156xf32, #tpu.memory_space<smem>>
    %415 = arith.truncf %414 : f32 to bf16
    %416 = vector.broadcast %415 : bf16 to vector<8x128xbf16>
    %417 = arith.mulf %373, %416 : vector<8x128xbf16>
    %418 = arith.addf %353, %417 : vector<8x128xbf16>
    %c79 = arith.constant 79 : index
    %419 = memref.load %arg1[%c79] : memref<156xf32, #tpu.memory_space<smem>>
    %420 = arith.truncf %419 : f32 to bf16
    %421 = vector.broadcast %420 : bf16 to vector<8x128xbf16>
    %422 = arith.mulf %373, %421 : vector<8x128xbf16>
    %423 = arith.addf %358, %422 : vector<8x128xbf16>
    %c6 = arith.constant 6 : index
    %424 = memref.load %arg1[%c6] : memref<156xf32, #tpu.memory_space<smem>>
    %425 = arith.truncf %424 : f32 to bf16
    %426 = vector.broadcast %425 : bf16 to vector<8x128xbf16>
    %427 = arith.mulf %1, %426 : vector<8x128xbf16>
    %c16 = arith.constant 16 : index
    %428 = memref.load %arg1[%c16] : memref<156xf32, #tpu.memory_space<smem>>
    %429 = arith.truncf %428 : f32 to bf16
    %430 = vector.broadcast %429 : bf16 to vector<8x128xbf16>
    %431 = arith.addf %427, %430 : vector<8x128xbf16>
    %cst_23 = arith.constant 5.000000e-01 : bf16
    %432 = vector.broadcast %cst_23 : bf16 to vector<8x128xbf16>
    %433 = arith.mulf %432, %431 : vector<8x128xbf16>
    %434 = math.tanh %433 : vector<8x128xbf16>
    %cst_24 = arith.constant 5.000000e-01 : bf16
    %435 = vector.broadcast %cst_24 : bf16 to vector<8x128xbf16>
    %436 = arith.mulf %435, %434 : vector<8x128xbf16>
    %cst_25 = arith.constant 5.000000e-01 : bf16
    %437 = vector.broadcast %cst_25 : bf16 to vector<8x128xbf16>
    %438 = arith.addf %436, %437 : vector<8x128xbf16>
    %c80 = arith.constant 80 : index
    %439 = memref.load %arg1[%c80] : memref<156xf32, #tpu.memory_space<smem>>
    %440 = arith.truncf %439 : f32 to bf16
    %441 = vector.broadcast %440 : bf16 to vector<8x128xbf16>
    %442 = arith.mulf %438, %441 : vector<8x128xbf16>
    %443 = arith.addf %378, %442 : vector<8x128xbf16>
    %c81 = arith.constant 81 : index
    %444 = memref.load %arg1[%c81] : memref<156xf32, #tpu.memory_space<smem>>
    %445 = arith.truncf %444 : f32 to bf16
    %446 = vector.broadcast %445 : bf16 to vector<8x128xbf16>
    %447 = arith.mulf %438, %446 : vector<8x128xbf16>
    %448 = arith.addf %383, %447 : vector<8x128xbf16>
    %c82 = arith.constant 82 : index
    %449 = memref.load %arg1[%c82] : memref<156xf32, #tpu.memory_space<smem>>
    %450 = arith.truncf %449 : f32 to bf16
    %451 = vector.broadcast %450 : bf16 to vector<8x128xbf16>
    %452 = arith.mulf %438, %451 : vector<8x128xbf16>
    %453 = arith.addf %388, %452 : vector<8x128xbf16>
    %c83 = arith.constant 83 : index
    %454 = memref.load %arg1[%c83] : memref<156xf32, #tpu.memory_space<smem>>
    %455 = arith.truncf %454 : f32 to bf16
    %456 = vector.broadcast %455 : bf16 to vector<8x128xbf16>
    %457 = arith.mulf %438, %456 : vector<8x128xbf16>
    %458 = arith.addf %393, %457 : vector<8x128xbf16>
    %c84 = arith.constant 84 : index
    %459 = memref.load %arg1[%c84] : memref<156xf32, #tpu.memory_space<smem>>
    %460 = arith.truncf %459 : f32 to bf16
    %461 = vector.broadcast %460 : bf16 to vector<8x128xbf16>
    %462 = arith.mulf %438, %461 : vector<8x128xbf16>
    %463 = arith.addf %398, %462 : vector<8x128xbf16>
    %c85 = arith.constant 85 : index
    %464 = memref.load %arg1[%c85] : memref<156xf32, #tpu.memory_space<smem>>
    %465 = arith.truncf %464 : f32 to bf16
    %466 = vector.broadcast %465 : bf16 to vector<8x128xbf16>
    %467 = arith.mulf %438, %466 : vector<8x128xbf16>
    %468 = arith.addf %403, %467 : vector<8x128xbf16>
    %c86 = arith.constant 86 : index
    %469 = memref.load %arg1[%c86] : memref<156xf32, #tpu.memory_space<smem>>
    %470 = arith.truncf %469 : f32 to bf16
    %471 = vector.broadcast %470 : bf16 to vector<8x128xbf16>
    %472 = arith.mulf %438, %471 : vector<8x128xbf16>
    %473 = arith.addf %408, %472 : vector<8x128xbf16>
    %c87 = arith.constant 87 : index
    %474 = memref.load %arg1[%c87] : memref<156xf32, #tpu.memory_space<smem>>
    %475 = arith.truncf %474 : f32 to bf16
    %476 = vector.broadcast %475 : bf16 to vector<8x128xbf16>
    %477 = arith.mulf %438, %476 : vector<8x128xbf16>
    %478 = arith.addf %413, %477 : vector<8x128xbf16>
    %c88 = arith.constant 88 : index
    %479 = memref.load %arg1[%c88] : memref<156xf32, #tpu.memory_space<smem>>
    %480 = arith.truncf %479 : f32 to bf16
    %481 = vector.broadcast %480 : bf16 to vector<8x128xbf16>
    %482 = arith.mulf %438, %481 : vector<8x128xbf16>
    %483 = arith.addf %418, %482 : vector<8x128xbf16>
    %c89 = arith.constant 89 : index
    %484 = memref.load %arg1[%c89] : memref<156xf32, #tpu.memory_space<smem>>
    %485 = arith.truncf %484 : f32 to bf16
    %486 = vector.broadcast %485 : bf16 to vector<8x128xbf16>
    %487 = arith.mulf %438, %486 : vector<8x128xbf16>
    %488 = arith.addf %423, %487 : vector<8x128xbf16>
    %c7 = arith.constant 7 : index
    %489 = memref.load %arg1[%c7] : memref<156xf32, #tpu.memory_space<smem>>
    %490 = arith.truncf %489 : f32 to bf16
    %491 = vector.broadcast %490 : bf16 to vector<8x128xbf16>
    %492 = arith.mulf %1, %491 : vector<8x128xbf16>
    %c17 = arith.constant 17 : index
    %493 = memref.load %arg1[%c17] : memref<156xf32, #tpu.memory_space<smem>>
    %494 = arith.truncf %493 : f32 to bf16
    %495 = vector.broadcast %494 : bf16 to vector<8x128xbf16>
    %496 = arith.addf %492, %495 : vector<8x128xbf16>
    %cst_26 = arith.constant 5.000000e-01 : bf16
    %497 = vector.broadcast %cst_26 : bf16 to vector<8x128xbf16>
    %498 = arith.mulf %497, %496 : vector<8x128xbf16>
    %499 = math.tanh %498 : vector<8x128xbf16>
    %cst_27 = arith.constant 5.000000e-01 : bf16
    %500 = vector.broadcast %cst_27 : bf16 to vector<8x128xbf16>
    %501 = arith.mulf %500, %499 : vector<8x128xbf16>
    %cst_28 = arith.constant 5.000000e-01 : bf16
    %502 = vector.broadcast %cst_28 : bf16 to vector<8x128xbf16>
    %503 = arith.addf %501, %502 : vector<8x128xbf16>
    %c90 = arith.constant 90 : index
    %504 = memref.load %arg1[%c90] : memref<156xf32, #tpu.memory_space<smem>>
    %505 = arith.truncf %504 : f32 to bf16
    %506 = vector.broadcast %505 : bf16 to vector<8x128xbf16>
    %507 = arith.mulf %503, %506 : vector<8x128xbf16>
    %508 = arith.addf %443, %507 : vector<8x128xbf16>
    %c91 = arith.constant 91 : index
    %509 = memref.load %arg1[%c91] : memref<156xf32, #tpu.memory_space<smem>>
    %510 = arith.truncf %509 : f32 to bf16
    %511 = vector.broadcast %510 : bf16 to vector<8x128xbf16>
    %512 = arith.mulf %503, %511 : vector<8x128xbf16>
    %513 = arith.addf %448, %512 : vector<8x128xbf16>
    %c92 = arith.constant 92 : index
    %514 = memref.load %arg1[%c92] : memref<156xf32, #tpu.memory_space<smem>>
    %515 = arith.truncf %514 : f32 to bf16
    %516 = vector.broadcast %515 : bf16 to vector<8x128xbf16>
    %517 = arith.mulf %503, %516 : vector<8x128xbf16>
    %518 = arith.addf %453, %517 : vector<8x128xbf16>
    %c93 = arith.constant 93 : index
    %519 = memref.load %arg1[%c93] : memref<156xf32, #tpu.memory_space<smem>>
    %520 = arith.truncf %519 : f32 to bf16
    %521 = vector.broadcast %520 : bf16 to vector<8x128xbf16>
    %522 = arith.mulf %503, %521 : vector<8x128xbf16>
    %523 = arith.addf %458, %522 : vector<8x128xbf16>
    %c94 = arith.constant 94 : index
    %524 = memref.load %arg1[%c94] : memref<156xf32, #tpu.memory_space<smem>>
    %525 = arith.truncf %524 : f32 to bf16
    %526 = vector.broadcast %525 : bf16 to vector<8x128xbf16>
    %527 = arith.mulf %503, %526 : vector<8x128xbf16>
    %528 = arith.addf %463, %527 : vector<8x128xbf16>
    %c95 = arith.constant 95 : index
    %529 = memref.load %arg1[%c95] : memref<156xf32, #tpu.memory_space<smem>>
    %530 = arith.truncf %529 : f32 to bf16
    %531 = vector.broadcast %530 : bf16 to vector<8x128xbf16>
    %532 = arith.mulf %503, %531 : vector<8x128xbf16>
    %533 = arith.addf %468, %532 : vector<8x128xbf16>
    %c96 = arith.constant 96 : index
    %534 = memref.load %arg1[%c96] : memref<156xf32, #tpu.memory_space<smem>>
    %535 = arith.truncf %534 : f32 to bf16
    %536 = vector.broadcast %535 : bf16 to vector<8x128xbf16>
    %537 = arith.mulf %503, %536 : vector<8x128xbf16>
    %538 = arith.addf %473, %537 : vector<8x128xbf16>
    %c97 = arith.constant 97 : index
    %539 = memref.load %arg1[%c97] : memref<156xf32, #tpu.memory_space<smem>>
    %540 = arith.truncf %539 : f32 to bf16
    %541 = vector.broadcast %540 : bf16 to vector<8x128xbf16>
    %542 = arith.mulf %503, %541 : vector<8x128xbf16>
    %543 = arith.addf %478, %542 : vector<8x128xbf16>
    %c98 = arith.constant 98 : index
    %544 = memref.load %arg1[%c98] : memref<156xf32, #tpu.memory_space<smem>>
    %545 = arith.truncf %544 : f32 to bf16
    %546 = vector.broadcast %545 : bf16 to vector<8x128xbf16>
    %547 = arith.mulf %503, %546 : vector<8x128xbf16>
    %548 = arith.addf %483, %547 : vector<8x128xbf16>
    %c99 = arith.constant 99 : index
    %549 = memref.load %arg1[%c99] : memref<156xf32, #tpu.memory_space<smem>>
    %550 = arith.truncf %549 : f32 to bf16
    %551 = vector.broadcast %550 : bf16 to vector<8x128xbf16>
    %552 = arith.mulf %503, %551 : vector<8x128xbf16>
    %553 = arith.addf %488, %552 : vector<8x128xbf16>
    %c8 = arith.constant 8 : index
    %554 = memref.load %arg1[%c8] : memref<156xf32, #tpu.memory_space<smem>>
    %555 = arith.truncf %554 : f32 to bf16
    %556 = vector.broadcast %555 : bf16 to vector<8x128xbf16>
    %557 = arith.mulf %1, %556 : vector<8x128xbf16>
    %c18 = arith.constant 18 : index
    %558 = memref.load %arg1[%c18] : memref<156xf32, #tpu.memory_space<smem>>
    %559 = arith.truncf %558 : f32 to bf16
    %560 = vector.broadcast %559 : bf16 to vector<8x128xbf16>
    %561 = arith.addf %557, %560 : vector<8x128xbf16>
    %cst_29 = arith.constant 5.000000e-01 : bf16
    %562 = vector.broadcast %cst_29 : bf16 to vector<8x128xbf16>
    %563 = arith.mulf %562, %561 : vector<8x128xbf16>
    %564 = math.tanh %563 : vector<8x128xbf16>
    %cst_30 = arith.constant 5.000000e-01 : bf16
    %565 = vector.broadcast %cst_30 : bf16 to vector<8x128xbf16>
    %566 = arith.mulf %565, %564 : vector<8x128xbf16>
    %cst_31 = arith.constant 5.000000e-01 : bf16
    %567 = vector.broadcast %cst_31 : bf16 to vector<8x128xbf16>
    %568 = arith.addf %566, %567 : vector<8x128xbf16>
    %c100 = arith.constant 100 : index
    %569 = memref.load %arg1[%c100] : memref<156xf32, #tpu.memory_space<smem>>
    %570 = arith.truncf %569 : f32 to bf16
    %571 = vector.broadcast %570 : bf16 to vector<8x128xbf16>
    %572 = arith.mulf %568, %571 : vector<8x128xbf16>
    %573 = arith.addf %508, %572 : vector<8x128xbf16>
    %c101 = arith.constant 101 : index
    %574 = memref.load %arg1[%c101] : memref<156xf32, #tpu.memory_space<smem>>
    %575 = arith.truncf %574 : f32 to bf16
    %576 = vector.broadcast %575 : bf16 to vector<8x128xbf16>
    %577 = arith.mulf %568, %576 : vector<8x128xbf16>
    %578 = arith.addf %513, %577 : vector<8x128xbf16>
    %c102 = arith.constant 102 : index
    %579 = memref.load %arg1[%c102] : memref<156xf32, #tpu.memory_space<smem>>
    %580 = arith.truncf %579 : f32 to bf16
    %581 = vector.broadcast %580 : bf16 to vector<8x128xbf16>
    %582 = arith.mulf %568, %581 : vector<8x128xbf16>
    %583 = arith.addf %518, %582 : vector<8x128xbf16>
    %c103 = arith.constant 103 : index
    %584 = memref.load %arg1[%c103] : memref<156xf32, #tpu.memory_space<smem>>
    %585 = arith.truncf %584 : f32 to bf16
    %586 = vector.broadcast %585 : bf16 to vector<8x128xbf16>
    %587 = arith.mulf %568, %586 : vector<8x128xbf16>
    %588 = arith.addf %523, %587 : vector<8x128xbf16>
    %c104 = arith.constant 104 : index
    %589 = memref.load %arg1[%c104] : memref<156xf32, #tpu.memory_space<smem>>
    %590 = arith.truncf %589 : f32 to bf16
    %591 = vector.broadcast %590 : bf16 to vector<8x128xbf16>
    %592 = arith.mulf %568, %591 : vector<8x128xbf16>
    %593 = arith.addf %528, %592 : vector<8x128xbf16>
    %c105 = arith.constant 105 : index
    %594 = memref.load %arg1[%c105] : memref<156xf32, #tpu.memory_space<smem>>
    %595 = arith.truncf %594 : f32 to bf16
    %596 = vector.broadcast %595 : bf16 to vector<8x128xbf16>
    %597 = arith.mulf %568, %596 : vector<8x128xbf16>
    %598 = arith.addf %533, %597 : vector<8x128xbf16>
    %c106 = arith.constant 106 : index
    %599 = memref.load %arg1[%c106] : memref<156xf32, #tpu.memory_space<smem>>
    %600 = arith.truncf %599 : f32 to bf16
    %601 = vector.broadcast %600 : bf16 to vector<8x128xbf16>
    %602 = arith.mulf %568, %601 : vector<8x128xbf16>
    %603 = arith.addf %538, %602 : vector<8x128xbf16>
    %c107 = arith.constant 107 : index
    %604 = memref.load %arg1[%c107] : memref<156xf32, #tpu.memory_space<smem>>
    %605 = arith.truncf %604 : f32 to bf16
    %606 = vector.broadcast %605 : bf16 to vector<8x128xbf16>
    %607 = arith.mulf %568, %606 : vector<8x128xbf16>
    %608 = arith.addf %543, %607 : vector<8x128xbf16>
    %c108 = arith.constant 108 : index
    %609 = memref.load %arg1[%c108] : memref<156xf32, #tpu.memory_space<smem>>
    %610 = arith.truncf %609 : f32 to bf16
    %611 = vector.broadcast %610 : bf16 to vector<8x128xbf16>
    %612 = arith.mulf %568, %611 : vector<8x128xbf16>
    %613 = arith.addf %548, %612 : vector<8x128xbf16>
    %c109 = arith.constant 109 : index
    %614 = memref.load %arg1[%c109] : memref<156xf32, #tpu.memory_space<smem>>
    %615 = arith.truncf %614 : f32 to bf16
    %616 = vector.broadcast %615 : bf16 to vector<8x128xbf16>
    %617 = arith.mulf %568, %616 : vector<8x128xbf16>
    %618 = arith.addf %553, %617 : vector<8x128xbf16>
    %c9 = arith.constant 9 : index
    %619 = memref.load %arg1[%c9] : memref<156xf32, #tpu.memory_space<smem>>
    %620 = arith.truncf %619 : f32 to bf16
    %621 = vector.broadcast %620 : bf16 to vector<8x128xbf16>
    %622 = arith.mulf %1, %621 : vector<8x128xbf16>
    %c19 = arith.constant 19 : index
    %623 = memref.load %arg1[%c19] : memref<156xf32, #tpu.memory_space<smem>>
    %624 = arith.truncf %623 : f32 to bf16
    %625 = vector.broadcast %624 : bf16 to vector<8x128xbf16>
    %626 = arith.addf %622, %625 : vector<8x128xbf16>
    %cst_32 = arith.constant 5.000000e-01 : bf16
    %627 = vector.broadcast %cst_32 : bf16 to vector<8x128xbf16>
    %628 = arith.mulf %627, %626 : vector<8x128xbf16>
    %629 = math.tanh %628 : vector<8x128xbf16>
    %cst_33 = arith.constant 5.000000e-01 : bf16
    %630 = vector.broadcast %cst_33 : bf16 to vector<8x128xbf16>
    %631 = arith.mulf %630, %629 : vector<8x128xbf16>
    %cst_34 = arith.constant 5.000000e-01 : bf16
    %632 = vector.broadcast %cst_34 : bf16 to vector<8x128xbf16>
    %633 = arith.addf %631, %632 : vector<8x128xbf16>
    %c110 = arith.constant 110 : index
    %634 = memref.load %arg1[%c110] : memref<156xf32, #tpu.memory_space<smem>>
    %635 = arith.truncf %634 : f32 to bf16
    %636 = vector.broadcast %635 : bf16 to vector<8x128xbf16>
    %637 = arith.mulf %633, %636 : vector<8x128xbf16>
    %638 = arith.addf %573, %637 : vector<8x128xbf16>
    %c111 = arith.constant 111 : index
    %639 = memref.load %arg1[%c111] : memref<156xf32, #tpu.memory_space<smem>>
    %640 = arith.truncf %639 : f32 to bf16
    %641 = vector.broadcast %640 : bf16 to vector<8x128xbf16>
    %642 = arith.mulf %633, %641 : vector<8x128xbf16>
    %643 = arith.addf %578, %642 : vector<8x128xbf16>
    %c112 = arith.constant 112 : index
    %644 = memref.load %arg1[%c112] : memref<156xf32, #tpu.memory_space<smem>>
    %645 = arith.truncf %644 : f32 to bf16
    %646 = vector.broadcast %645 : bf16 to vector<8x128xbf16>
    %647 = arith.mulf %633, %646 : vector<8x128xbf16>
    %648 = arith.addf %583, %647 : vector<8x128xbf16>
    %c113 = arith.constant 113 : index
    %649 = memref.load %arg1[%c113] : memref<156xf32, #tpu.memory_space<smem>>
    %650 = arith.truncf %649 : f32 to bf16
    %651 = vector.broadcast %650 : bf16 to vector<8x128xbf16>
    %652 = arith.mulf %633, %651 : vector<8x128xbf16>
    %653 = arith.addf %588, %652 : vector<8x128xbf16>
    %c114 = arith.constant 114 : index
    %654 = memref.load %arg1[%c114] : memref<156xf32, #tpu.memory_space<smem>>
    %655 = arith.truncf %654 : f32 to bf16
    %656 = vector.broadcast %655 : bf16 to vector<8x128xbf16>
    %657 = arith.mulf %633, %656 : vector<8x128xbf16>
    %658 = arith.addf %593, %657 : vector<8x128xbf16>
    %c115 = arith.constant 115 : index
    %659 = memref.load %arg1[%c115] : memref<156xf32, #tpu.memory_space<smem>>
    %660 = arith.truncf %659 : f32 to bf16
    %661 = vector.broadcast %660 : bf16 to vector<8x128xbf16>
    %662 = arith.mulf %633, %661 : vector<8x128xbf16>
    %663 = arith.addf %598, %662 : vector<8x128xbf16>
    %c116 = arith.constant 116 : index
    %664 = memref.load %arg1[%c116] : memref<156xf32, #tpu.memory_space<smem>>
    %665 = arith.truncf %664 : f32 to bf16
    %666 = vector.broadcast %665 : bf16 to vector<8x128xbf16>
    %667 = arith.mulf %633, %666 : vector<8x128xbf16>
    %668 = arith.addf %603, %667 : vector<8x128xbf16>
    %c117 = arith.constant 117 : index
    %669 = memref.load %arg1[%c117] : memref<156xf32, #tpu.memory_space<smem>>
    %670 = arith.truncf %669 : f32 to bf16
    %671 = vector.broadcast %670 : bf16 to vector<8x128xbf16>
    %672 = arith.mulf %633, %671 : vector<8x128xbf16>
    %673 = arith.addf %608, %672 : vector<8x128xbf16>
    %c118 = arith.constant 118 : index
    %674 = memref.load %arg1[%c118] : memref<156xf32, #tpu.memory_space<smem>>
    %675 = arith.truncf %674 : f32 to bf16
    %676 = vector.broadcast %675 : bf16 to vector<8x128xbf16>
    %677 = arith.mulf %633, %676 : vector<8x128xbf16>
    %678 = arith.addf %613, %677 : vector<8x128xbf16>
    %c119 = arith.constant 119 : index
    %679 = memref.load %arg1[%c119] : memref<156xf32, #tpu.memory_space<smem>>
    %680 = arith.truncf %679 : f32 to bf16
    %681 = vector.broadcast %680 : bf16 to vector<8x128xbf16>
    %682 = arith.mulf %633, %681 : vector<8x128xbf16>
    %683 = arith.addf %618, %682 : vector<8x128xbf16>
    %cst_35 = arith.constant 5.000000e-01 : bf16
    %684 = vector.broadcast %cst_35 : bf16 to vector<8x128xbf16>
    %685 = arith.mulf %684, %638 : vector<8x128xbf16>
    %686 = math.tanh %685 : vector<8x128xbf16>
    %cst_36 = arith.constant 5.000000e-01 : bf16
    %687 = vector.broadcast %cst_36 : bf16 to vector<8x128xbf16>
    %688 = arith.mulf %687, %686 : vector<8x128xbf16>
    %cst_37 = arith.constant 5.000000e-01 : bf16
    %689 = vector.broadcast %cst_37 : bf16 to vector<8x128xbf16>
    %690 = arith.addf %688, %689 : vector<8x128xbf16>
    %c130 = arith.constant 130 : index
    %691 = memref.load %arg1[%c130] : memref<156xf32, #tpu.memory_space<smem>>
    %692 = arith.truncf %691 : f32 to bf16
    %693 = vector.broadcast %692 : bf16 to vector<8x128xbf16>
    %694 = arith.mulf %690, %693 : vector<8x128xbf16>
    %c150 = arith.constant 150 : index
    %695 = memref.load %arg1[%c150] : memref<156xf32, #tpu.memory_space<smem>>
    %696 = arith.truncf %695 : f32 to bf16
    %697 = vector.broadcast %696 : bf16 to vector<8x128xbf16>
    %698 = arith.addf %694, %697 : vector<8x128xbf16>
    %c131 = arith.constant 131 : index
    %699 = memref.load %arg1[%c131] : memref<156xf32, #tpu.memory_space<smem>>
    %700 = arith.truncf %699 : f32 to bf16
    %701 = vector.broadcast %700 : bf16 to vector<8x128xbf16>
    %702 = arith.mulf %690, %701 : vector<8x128xbf16>
    %c151 = arith.constant 151 : index
    %703 = memref.load %arg1[%c151] : memref<156xf32, #tpu.memory_space<smem>>
    %704 = arith.truncf %703 : f32 to bf16
    %705 = vector.broadcast %704 : bf16 to vector<8x128xbf16>
    %706 = arith.addf %702, %705 : vector<8x128xbf16>
    %cst_38 = arith.constant 5.000000e-01 : bf16
    %707 = vector.broadcast %cst_38 : bf16 to vector<8x128xbf16>
    %708 = arith.mulf %707, %643 : vector<8x128xbf16>
    %709 = math.tanh %708 : vector<8x128xbf16>
    %cst_39 = arith.constant 5.000000e-01 : bf16
    %710 = vector.broadcast %cst_39 : bf16 to vector<8x128xbf16>
    %711 = arith.mulf %710, %709 : vector<8x128xbf16>
    %cst_40 = arith.constant 5.000000e-01 : bf16
    %712 = vector.broadcast %cst_40 : bf16 to vector<8x128xbf16>
    %713 = arith.addf %711, %712 : vector<8x128xbf16>
    %c132 = arith.constant 132 : index
    %714 = memref.load %arg1[%c132] : memref<156xf32, #tpu.memory_space<smem>>
    %715 = arith.truncf %714 : f32 to bf16
    %716 = vector.broadcast %715 : bf16 to vector<8x128xbf16>
    %717 = arith.mulf %713, %716 : vector<8x128xbf16>
    %718 = arith.addf %698, %717 : vector<8x128xbf16>
    %c133 = arith.constant 133 : index
    %719 = memref.load %arg1[%c133] : memref<156xf32, #tpu.memory_space<smem>>
    %720 = arith.truncf %719 : f32 to bf16
    %721 = vector.broadcast %720 : bf16 to vector<8x128xbf16>
    %722 = arith.mulf %713, %721 : vector<8x128xbf16>
    %723 = arith.addf %706, %722 : vector<8x128xbf16>
    %cst_41 = arith.constant 5.000000e-01 : bf16
    %724 = vector.broadcast %cst_41 : bf16 to vector<8x128xbf16>
    %725 = arith.mulf %724, %648 : vector<8x128xbf16>
    %726 = math.tanh %725 : vector<8x128xbf16>
    %cst_42 = arith.constant 5.000000e-01 : bf16
    %727 = vector.broadcast %cst_42 : bf16 to vector<8x128xbf16>
    %728 = arith.mulf %727, %726 : vector<8x128xbf16>
    %cst_43 = arith.constant 5.000000e-01 : bf16
    %729 = vector.broadcast %cst_43 : bf16 to vector<8x128xbf16>
    %730 = arith.addf %728, %729 : vector<8x128xbf16>
    %c134 = arith.constant 134 : index
    %731 = memref.load %arg1[%c134] : memref<156xf32, #tpu.memory_space<smem>>
    %732 = arith.truncf %731 : f32 to bf16
    %733 = vector.broadcast %732 : bf16 to vector<8x128xbf16>
    %734 = arith.mulf %730, %733 : vector<8x128xbf16>
    %735 = arith.addf %718, %734 : vector<8x128xbf16>
    %c135 = arith.constant 135 : index
    %736 = memref.load %arg1[%c135] : memref<156xf32, #tpu.memory_space<smem>>
    %737 = arith.truncf %736 : f32 to bf16
    %738 = vector.broadcast %737 : bf16 to vector<8x128xbf16>
    %739 = arith.mulf %730, %738 : vector<8x128xbf16>
    %740 = arith.addf %723, %739 : vector<8x128xbf16>
    %cst_44 = arith.constant 5.000000e-01 : bf16
    %741 = vector.broadcast %cst_44 : bf16 to vector<8x128xbf16>
    %742 = arith.mulf %741, %653 : vector<8x128xbf16>
    %743 = math.tanh %742 : vector<8x128xbf16>
    %cst_45 = arith.constant 5.000000e-01 : bf16
    %744 = vector.broadcast %cst_45 : bf16 to vector<8x128xbf16>
    %745 = arith.mulf %744, %743 : vector<8x128xbf16>
    %cst_46 = arith.constant 5.000000e-01 : bf16
    %746 = vector.broadcast %cst_46 : bf16 to vector<8x128xbf16>
    %747 = arith.addf %745, %746 : vector<8x128xbf16>
    %c136 = arith.constant 136 : index
    %748 = memref.load %arg1[%c136] : memref<156xf32, #tpu.memory_space<smem>>
    %749 = arith.truncf %748 : f32 to bf16
    %750 = vector.broadcast %749 : bf16 to vector<8x128xbf16>
    %751 = arith.mulf %747, %750 : vector<8x128xbf16>
    %752 = arith.addf %735, %751 : vector<8x128xbf16>
    %c137 = arith.constant 137 : index
    %753 = memref.load %arg1[%c137] : memref<156xf32, #tpu.memory_space<smem>>
    %754 = arith.truncf %753 : f32 to bf16
    %755 = vector.broadcast %754 : bf16 to vector<8x128xbf16>
    %756 = arith.mulf %747, %755 : vector<8x128xbf16>
    %757 = arith.addf %740, %756 : vector<8x128xbf16>
    %cst_47 = arith.constant 5.000000e-01 : bf16
    %758 = vector.broadcast %cst_47 : bf16 to vector<8x128xbf16>
    %759 = arith.mulf %758, %658 : vector<8x128xbf16>
    %760 = math.tanh %759 : vector<8x128xbf16>
    %cst_48 = arith.constant 5.000000e-01 : bf16
    %761 = vector.broadcast %cst_48 : bf16 to vector<8x128xbf16>
    %762 = arith.mulf %761, %760 : vector<8x128xbf16>
    %cst_49 = arith.constant 5.000000e-01 : bf16
    %763 = vector.broadcast %cst_49 : bf16 to vector<8x128xbf16>
    %764 = arith.addf %762, %763 : vector<8x128xbf16>
    %c138 = arith.constant 138 : index
    %765 = memref.load %arg1[%c138] : memref<156xf32, #tpu.memory_space<smem>>
    %766 = arith.truncf %765 : f32 to bf16
    %767 = vector.broadcast %766 : bf16 to vector<8x128xbf16>
    %768 = arith.mulf %764, %767 : vector<8x128xbf16>
    %769 = arith.addf %752, %768 : vector<8x128xbf16>
    %c139 = arith.constant 139 : index
    %770 = memref.load %arg1[%c139] : memref<156xf32, #tpu.memory_space<smem>>
    %771 = arith.truncf %770 : f32 to bf16
    %772 = vector.broadcast %771 : bf16 to vector<8x128xbf16>
    %773 = arith.mulf %764, %772 : vector<8x128xbf16>
    %774 = arith.addf %757, %773 : vector<8x128xbf16>
    %cst_50 = arith.constant 5.000000e-01 : bf16
    %775 = vector.broadcast %cst_50 : bf16 to vector<8x128xbf16>
    %776 = arith.mulf %775, %663 : vector<8x128xbf16>
    %777 = math.tanh %776 : vector<8x128xbf16>
    %cst_51 = arith.constant 5.000000e-01 : bf16
    %778 = vector.broadcast %cst_51 : bf16 to vector<8x128xbf16>
    %779 = arith.mulf %778, %777 : vector<8x128xbf16>
    %cst_52 = arith.constant 5.000000e-01 : bf16
    %780 = vector.broadcast %cst_52 : bf16 to vector<8x128xbf16>
    %781 = arith.addf %779, %780 : vector<8x128xbf16>
    %c140 = arith.constant 140 : index
    %782 = memref.load %arg1[%c140] : memref<156xf32, #tpu.memory_space<smem>>
    %783 = arith.truncf %782 : f32 to bf16
    %784 = vector.broadcast %783 : bf16 to vector<8x128xbf16>
    %785 = arith.mulf %781, %784 : vector<8x128xbf16>
    %786 = arith.addf %769, %785 : vector<8x128xbf16>
    %c141 = arith.constant 141 : index
    %787 = memref.load %arg1[%c141] : memref<156xf32, #tpu.memory_space<smem>>
    %788 = arith.truncf %787 : f32 to bf16
    %789 = vector.broadcast %788 : bf16 to vector<8x128xbf16>
    %790 = arith.mulf %781, %789 : vector<8x128xbf16>
    %791 = arith.addf %774, %790 : vector<8x128xbf16>
    %cst_53 = arith.constant 5.000000e-01 : bf16
    %792 = vector.broadcast %cst_53 : bf16 to vector<8x128xbf16>
    %793 = arith.mulf %792, %668 : vector<8x128xbf16>
    %794 = math.tanh %793 : vector<8x128xbf16>
    %cst_54 = arith.constant 5.000000e-01 : bf16
    %795 = vector.broadcast %cst_54 : bf16 to vector<8x128xbf16>
    %796 = arith.mulf %795, %794 : vector<8x128xbf16>
    %cst_55 = arith.constant 5.000000e-01 : bf16
    %797 = vector.broadcast %cst_55 : bf16 to vector<8x128xbf16>
    %798 = arith.addf %796, %797 : vector<8x128xbf16>
    %c142 = arith.constant 142 : index
    %799 = memref.load %arg1[%c142] : memref<156xf32, #tpu.memory_space<smem>>
    %800 = arith.truncf %799 : f32 to bf16
    %801 = vector.broadcast %800 : bf16 to vector<8x128xbf16>
    %802 = arith.mulf %798, %801 : vector<8x128xbf16>
    %803 = arith.addf %786, %802 : vector<8x128xbf16>
    %c143 = arith.constant 143 : index
    %804 = memref.load %arg1[%c143] : memref<156xf32, #tpu.memory_space<smem>>
    %805 = arith.truncf %804 : f32 to bf16
    %806 = vector.broadcast %805 : bf16 to vector<8x128xbf16>
    %807 = arith.mulf %798, %806 : vector<8x128xbf16>
    %808 = arith.addf %791, %807 : vector<8x128xbf16>
    %cst_56 = arith.constant 5.000000e-01 : bf16
    %809 = vector.broadcast %cst_56 : bf16 to vector<8x128xbf16>
    %810 = arith.mulf %809, %673 : vector<8x128xbf16>
    %811 = math.tanh %810 : vector<8x128xbf16>
    %cst_57 = arith.constant 5.000000e-01 : bf16
    %812 = vector.broadcast %cst_57 : bf16 to vector<8x128xbf16>
    %813 = arith.mulf %812, %811 : vector<8x128xbf16>
    %cst_58 = arith.constant 5.000000e-01 : bf16
    %814 = vector.broadcast %cst_58 : bf16 to vector<8x128xbf16>
    %815 = arith.addf %813, %814 : vector<8x128xbf16>
    %c144 = arith.constant 144 : index
    %816 = memref.load %arg1[%c144] : memref<156xf32, #tpu.memory_space<smem>>
    %817 = arith.truncf %816 : f32 to bf16
    %818 = vector.broadcast %817 : bf16 to vector<8x128xbf16>
    %819 = arith.mulf %815, %818 : vector<8x128xbf16>
    %820 = arith.addf %803, %819 : vector<8x128xbf16>
    %c145 = arith.constant 145 : index
    %821 = memref.load %arg1[%c145] : memref<156xf32, #tpu.memory_space<smem>>
    %822 = arith.truncf %821 : f32 to bf16
    %823 = vector.broadcast %822 : bf16 to vector<8x128xbf16>
    %824 = arith.mulf %815, %823 : vector<8x128xbf16>
    %825 = arith.addf %808, %824 : vector<8x128xbf16>
    %cst_59 = arith.constant 5.000000e-01 : bf16
    %826 = vector.broadcast %cst_59 : bf16 to vector<8x128xbf16>
    %827 = arith.mulf %826, %678 : vector<8x128xbf16>
    %828 = math.tanh %827 : vector<8x128xbf16>
    %cst_60 = arith.constant 5.000000e-01 : bf16
    %829 = vector.broadcast %cst_60 : bf16 to vector<8x128xbf16>
    %830 = arith.mulf %829, %828 : vector<8x128xbf16>
    %cst_61 = arith.constant 5.000000e-01 : bf16
    %831 = vector.broadcast %cst_61 : bf16 to vector<8x128xbf16>
    %832 = arith.addf %830, %831 : vector<8x128xbf16>
    %c146 = arith.constant 146 : index
    %833 = memref.load %arg1[%c146] : memref<156xf32, #tpu.memory_space<smem>>
    %834 = arith.truncf %833 : f32 to bf16
    %835 = vector.broadcast %834 : bf16 to vector<8x128xbf16>
    %836 = arith.mulf %832, %835 : vector<8x128xbf16>
    %837 = arith.addf %820, %836 : vector<8x128xbf16>
    %c147 = arith.constant 147 : index
    %838 = memref.load %arg1[%c147] : memref<156xf32, #tpu.memory_space<smem>>
    %839 = arith.truncf %838 : f32 to bf16
    %840 = vector.broadcast %839 : bf16 to vector<8x128xbf16>
    %841 = arith.mulf %832, %840 : vector<8x128xbf16>
    %842 = arith.addf %825, %841 : vector<8x128xbf16>
    %cst_62 = arith.constant 5.000000e-01 : bf16
    %843 = vector.broadcast %cst_62 : bf16 to vector<8x128xbf16>
    %844 = arith.mulf %843, %683 : vector<8x128xbf16>
    %845 = math.tanh %844 : vector<8x128xbf16>
    %cst_63 = arith.constant 5.000000e-01 : bf16
    %846 = vector.broadcast %cst_63 : bf16 to vector<8x128xbf16>
    %847 = arith.mulf %846, %845 : vector<8x128xbf16>
    %cst_64 = arith.constant 5.000000e-01 : bf16
    %848 = vector.broadcast %cst_64 : bf16 to vector<8x128xbf16>
    %849 = arith.addf %847, %848 : vector<8x128xbf16>
    %c148 = arith.constant 148 : index
    %850 = memref.load %arg1[%c148] : memref<156xf32, #tpu.memory_space<smem>>
    %851 = arith.truncf %850 : f32 to bf16
    %852 = vector.broadcast %851 : bf16 to vector<8x128xbf16>
    %853 = arith.mulf %849, %852 : vector<8x128xbf16>
    %854 = arith.addf %837, %853 : vector<8x128xbf16>
    %c149 = arith.constant 149 : index
    %855 = memref.load %arg1[%c149] : memref<156xf32, #tpu.memory_space<smem>>
    %856 = arith.truncf %855 : f32 to bf16
    %857 = vector.broadcast %856 : bf16 to vector<8x128xbf16>
    %858 = arith.mulf %849, %857 : vector<8x128xbf16>
    %859 = arith.addf %842, %858 : vector<8x128xbf16>
    %860 = arith.extf %854 : vector<8x128xbf16> to vector<8x128xf32>
    %cst_65 = arith.constant 0.000000e+00 : f32
    %861 = vector.broadcast %cst_65 : f32 to vector<8x128xf32>
    %862 = arith.maximumf %860, %861 : vector<8x128xf32>
    %863 = arith.extf %859 : vector<8x128xbf16> to vector<8x128xf32>
    %cst_66 = arith.constant 0.000000e+00 : f32
    %864 = vector.broadcast %cst_66 : f32 to vector<8x128xf32>
    %865 = arith.maximumf %863, %864 : vector<8x128xf32>
    %c152 = arith.constant 152 : index
    %866 = memref.load %arg1[%c152] : memref<156xf32, #tpu.memory_space<smem>>
    %867 = vector.broadcast %866 : f32 to vector<8x128xf32>
    %868 = arith.mulf %2, %867 : vector<8x128xf32>
    %c153 = arith.constant 153 : index
    %869 = memref.load %arg1[%c153] : memref<156xf32, #tpu.memory_space<smem>>
    %870 = vector.broadcast %869 : f32 to vector<8x128xf32>
    %871 = arith.addf %868, %870 : vector<8x128xf32>
    %cst_67 = arith.constant 0.000000e+00 : f32
    %872 = vector.broadcast %cst_67 : f32 to vector<8x128xf32>
    %873 = arith.maximumf %871, %872 : vector<8x128xf32>
    %c154 = arith.constant 154 : index
    %874 = memref.load %arg1[%c154] : memref<156xf32, #tpu.memory_space<smem>>
    %875 = vector.broadcast %874 : f32 to vector<8x128xf32>
    %876 = arith.mulf %3, %875 : vector<8x128xf32>
    %c155 = arith.constant 155 : index
    %877 = memref.load %arg1[%c155] : memref<156xf32, #tpu.memory_space<smem>>
    %878 = vector.broadcast %877 : f32 to vector<8x128xf32>
    %879 = arith.addf %876, %878 : vector<8x128xf32>
    %cst_68 = arith.constant 0.000000e+00 : f32
    %880 = vector.broadcast %cst_68 : f32 to vector<8x128xf32>
    %881 = arith.maximumf %879, %880 : vector<8x128xf32>
    %882 = arith.cmpf olt, %873, %862 : vector<8x128xf32>
    %883 = arith.cmpf ogt, %881, %865 : vector<8x128xf32>
    %884 = arith.andi %882, %883 : vector<8x128xi1>
    %885 = arith.extui %884 : vector<8x128xi1> to vector<8x128xi32>
    %c0_69 = arith.constant 0 : index
    %c0_70 = arith.constant 0 : index
    %886 = vector.load %arg5[%c0_69, %c0_70] : memref<8x128xi32, #tpu.memory_space<vmem>>, vector<8x128xi32>
    tpu.vector_store %arg5[%c0_69, %c0_70], %885 {strides = array<i32>} : memref<8x128xi32, #tpu.memory_space<vmem>>, vector<8x128xi32>,
    return
  }
  func.func @transform_0(%arg0: i32) -> i32 {
    %c0_i32 = arith.constant 0 : i32
    %c0_i32_0 = arith.constant 0 : i32
    return %c0_i32 : i32
  }
  func.func @transform_1(%arg0: i32) -> (i32, i32) {
    %c0_i32 = arith.constant 0 : i32
    %c0_i32_0 = arith.constant 0 : i32
    return %arg0, %c0_i32 : i32, i32
  }
  func.func @transform_2(%arg0: i32) -> (i32, i32) {
    %c0_i32 = arith.constant 0 : i32
    %c0_i32_0 = arith.constant 0 : i32
    return %arg0, %c0_i32 : i32, i32
  }
  func.func @transform_3(%arg0: i32) -> (i32, i32) {
    %c0_i32 = arith.constant 0 : i32
    %c0_i32_0 = arith.constant 0 : i32
    return %arg0, %c0_i32 : i32, i32
  }
  func.func @transform_4(%arg0: i32) -> (i32, i32) {
    %c0_i32 = arith.constant 0 : i32
    %c0_i32_0 = arith.constant 0 : i32
    return %arg0, %c0_i32 : i32, i32
  }
}

</mosaic_0001>

<bundles_post_ra>
// kernel: tpu_custom_call.1
= control target key start
LH: loop header
LB: loop body
LE: loop exit
PB: predicated region body
PF: predicated region fallthrough
CT: control target
= control target key end

     0   :  { %s4173_s0 = inlined_call_operand.hbm [shape: f32[156], index: 0, kind: input, shape index: {}]   ;;  %s4174_s1 = inlined_call_operand.hbm [shape: f32[8,128], index: 1, kind: input, shape index: {}]   ;;  %s4175_s2 = inlined_call_operand.hbm [shape: f32[8,128], index: 2, kind: input, shape index: {}]   ;;  %s4176_s3 = inlined_call_operand.vmem [shape: f32[8,128], index: 3, kind: input, shape index: {}]   ;;  %s4177_s4 = inlined_call_operand.hbm [shape: s32[8,128], index: 4, kind: output, shape index: {}]  }
   0x1   :  { %4180 = sst [smem:[#allocation122_spill]] %s4176_s3 }
   0x2   :  { %4181 = sst [smem:[#allocation123_spill]] %s4177_s4 }
   0x3   :  { %9 = vsyncpa [#allocation5], 0 }
   0x4   :  { %10 = vsyncpa [#allocation3], 0 }
   0x5   :  { %11 = vsyncpa [#allocation8], 0 }
   0x6   :  { %12 = vsyncpa [#allocation4], 0  ;;  %s2918_s17 = scalar_lea.hbm %s4173_s0, 32 }
   0x7   :  { %p2919_p0 = scmp.ne.s32.totalorder %s4173_s0, %s2918_s17  ;;  %p2922_p1 = scmp.lt.u32.totalorder %s2918_s17, %s4173_s0 }
   0x9   :  { %p2924_p2 = pnand %p2922_p1, %p2919_p0 }
   0xb   :  { %2927 = shalt.err (!%p2924_p2)
}
   0xc   :  { %s3002_s22 = smov [#allocation2]   ;;  %s3003_s25 = smov [#allocation6]  }
   0xd   :  { %20 = dma.hbm_to_smem %s4173_s0, 32, %s3002_s22, [#allocation5]  }
   0xe   :  { %s27_s26 = sshll.u32 %s3003_s25, 4  ;;  %s3004_s27 = smov [#allocation7]   ;;  %s28_s26 = int_to_ptr.vmem [resolvable:$true] %s27_s26 }
   0xf   :  { %s37_s28 = sshll.u32 %s3004_s27, 4  ;;  %s2928_s5 = scalar_lea.hbm %s4174_s1, 128  ;;  %s38_s28 = int_to_ptr.vmem [resolvable:$true] %s37_s28 }
  0x10   :  { %p2929_p3 = scmp.ne.s32.totalorder %s4174_s1, %s2928_s5  ;;  %p2932_p4 = scmp.lt.u32.totalorder %s2928_s5, %s4174_s1 }
  0x12   :  { %p2934_p5 = pnand %p2932_p4, %p2929_p3 }
  0x14   :  { %2937 = shalt.err (!%p2934_p5)
}
  0x15   :  { %s2938_s0 = scalar_lea.vmem %s28_s26, 128  ;;  %p2943_p7 = scmp.lt.s32.totalorder %s28_s26, %s28_s26 }
  0x16   :  { %p2939_p6 = scmp.ne.s32.totalorder %s28_s26, %s2938_s0  ;;  %p2944_p8 = scmp.lt.s32.totalorder %s2938_s0, %s2938_s0 }
  0x18   :  { %p2945_p9 = por %p2944_p8, %p2943_p7 }
  0x1a   :  { %p2946_p10 = pnand %p2945_p9, %p2939_p6 }
  0x1c   :  { %2949 = shalt.err (!%p2946_p10)
}
  0x1d   :  { %30 = dma.hbm_to_vmem [thread:$0]  %s4174_s1, 128, %s28_s26, [#allocation3]  }
  0x1e   :  { %s2950_s14 = scalar_lea.hbm %s4175_s2, 128 }
  0x1f   :  { %p2951_p11 = scmp.ne.s32.totalorder %s4175_s2, %s2950_s14  ;;  %p2954_p12 = scmp.lt.u32.totalorder %s2950_s14, %s4175_s2 }
  0x21   :  { %p2956_p13 = pnand %p2954_p12, %p2951_p11 }
  0x23   :  { %2959 = shalt.err (!%p2956_p13)
}
  0x24   :  { %s2960_s19 = scalar_lea.vmem %s38_s28, 128  ;;  %p2965_p1 = scmp.lt.s32.totalorder %s38_s28, %s38_s28 }
  0x25   :  { %p2961_p0 = scmp.ne.s32.totalorder %s38_s28, %s2960_s19  ;;  %p2966_p2 = scmp.lt.s32.totalorder %s2960_s19, %s2960_s19 }
  0x27   :  { %p2967_p3 = por %p2966_p2, %p2965_p1 }
  0x29   :  { %p2968_p4 = pnand %p2967_p3, %p2961_p0 }
  0x2b   :  { %2971 = shalt.err (!%p2968_p4)
}
  0x2c   :  { %40 = dma.hbm_to_vmem [thread:$0]  %s4175_s2, 128, %s38_s28, [#allocation8]  }
  0x2d   :  { %2994 = dma.done.wait [#allocation5], 32  }
  0x2e   :  { %2995 = vsyncadd [#allocation5], 4294967264 }
  0x2f   :  { %2996 = dma.done.wait [#allocation3], 128  }
  0x30   :  { %2997 = vsyncadd [#allocation3], 4294967168 }
  0x31   :  { %2998 = dma.done.wait [#allocation8], 128  }
  0x32   :  { %2999 = vsyncadd [#allocation8], 4294967168 }
  0x33   :  { %52 = sfence }
  0x34   :  { %s58_s21 = sld [smem:[#allocation2]]  ;;  %s3068_s22 = sld [smem:[#allocation2 + $0xa]]  ;;  %v54_v0 = vld [vmem:[#allocation6] sm:$0xff] }
  0x35   :  { %s3070_s23 = sld [smem:[#allocation2 + $0x14]]  ;;  %s3072_s24 = sld [smem:[#allocation2 + $0x78]]  ;;  %v3404_v1 = vpack.c.bf16 %v54_v0, %v54_v0 }
  0x36   :  { %s3074_s25 = sld [smem:[#allocation2 + $0x15]]  ;;  %s3076_s26 = sld [smem:[#allocation2 + $0x79]] }
  0x37   :  { %s3078_s2 = sld [smem:[#allocation2 + $0x16]]  ;;  %s3080_s27 = sld [smem:[#allocation2 + $0x7a]] }
  0x38   :  { %s3082_s28 = sld [smem:[#allocation2 + $0x17]]  ;;  %s3084_s29 = sld [smem:[#allocation2 + $0x7b]] }
  0x39   :  { %s3086_s30 = sld [smem:[#allocation2 + $0x18]] }
  0x3a   :  { %p60_p5 = scmp.ne.f32.partialorder %s58_s21, %s58_s21  ;;  %s61_s5 = sshrl.u32 %s58_s21, 16 }
  0x3b   :  { %s62_s6 = sand.u32 1, %s61_s5  ;;  %p76_p6 = scmp.ne.f32.partialorder %s3068_s22, %s3068_s22 }
  0x3c   :  { %s63_s7 = sadd.s32 32767, %s62_s6  ;;  %s77_s8 = sshrl.u32 %s3068_s22, 16 }
  0x3d   :  { %s64_s9 = sadd.s32 %s63_s7, %s58_s21  ;;  %s78_s0 = sand.u32 1, %s77_s8 }
  0x3e   :  { %s65_s10 = sand.u32 4294901760, %s64_s9  ;;  %s79_s11 = sadd.s32 32767, %s78_s0 }
  0x3f   :  { %s4405_s10 = smov (%p60_p5, %s65_s10), 2143289344  ;;  %s80_s12 = sadd.s32 %s3068_s22, %s79_s11 }
  0x40   :  { %p96_p7 = scmp.ne.f32.partialorder %s3070_s23, %s3070_s23  ;;  %s68_s13 = sshrl.u32 %s4405_s10, 16 }
  0x41   :  { %s81_s14 = sand.u32 4294901760, %s80_s12  ;;  %s69_s15 = sshll.u32 %s68_s13, 16 }
  0x42   :  { %s97_s16 = sshrl.u32 %s3070_s23, 16  ;;  %s3095_s17 = sor.u32 %s69_s15, %s68_s13 }
  0x43   :  { %s98_s18 = sand.u32 1, %s97_s16  ;;  %s4407_s14 = smov (%p76_p6, %s81_s14), 2143289344  ;;  %v71_v2 = vstv %s3095_s17 }
  0x44   :  { %s99_s19 = sadd.s32 32767, %s98_s18  ;;  %p112_p8 = scmp.ne.f32.partialorder %s3072_s24, %s3072_s24  ;;  %v73_v3 = vmul.bf16 %v71_v2, %v3404_v1 }
  0x45   :  { %s84_s1 = sshrl.u32 %s4407_s14, 16  ;;  %s100_s20 = sadd.s32 %s3070_s23, %s99_s19 }
  0x46   :  { %s85_s21 = sshll.u32 %s84_s1, 16  ;;  %s101_s5 = sand.u32 4294901760, %s100_s20 }
  0x47   :  { %s3103_s6 = sor.u32 %s85_s21, %s84_s1  ;;  %s113_s7 = sshrl.u32 %s3072_s24, 16 }
  0x48   :  { %s4409_s5 = smov (%p96_p7, %s101_s5), 2143289344  ;;  %s114_s8 = sand.u32 1, %s113_s7  ;;  %v87_v4 = vstv %s3103_s6 }
  0x49   :  { %p128_p9 = scmp.ne.f32.partialorder %s3074_s25, %s3074_s25  ;;  %s104_s22 = sshrl.u32 %s4409_s5, 16  ;;  %v89_v5 = vadd.bf16 %v87_v4, %v73_v3 }
  0x4a   :  { %s115_s9 = sadd.s32 32767, %s114_s8  ;;  %s105_s0 = sshll.u32 %s104_s22, 16 }
  0x4b   :  { %s116_s10 = sadd.s32 %s3072_s24, %s115_s9  ;;  %s3112_s11 = sor.u32 %s105_s0, %s104_s22  ;;  %v90_v6 = vmul.bf16 1056980736, %v89_v5 }
  0x4c   :  { %s117_s12 = sand.u32 4294901760, %s116_s10  ;;  %s129_s13 = sshrl.u32 %s3074_s25, 16  ;;  %v107_v19 = vstv %s3112_s11 }
  0x4d   :  { %s4411_s12 = smov (%p112_p8, %s117_s12), 2143289344  ;;  %p144_p10 = scmp.ne.f32.partialorder %s3076_s26, %s3076_s26  ;;  %2878 = vtanh.bf16 %v90_v6 }
  0x4e   :  { %s120_s23 = sshrl.u32 %s4411_s12, 16  ;;  %s130_s14 = sand.u32 1, %s129_s13 }
  0x4f   :  { %s121_s15 = sshll.u32 %s120_s23, 16  ;;  %s131_s16 = sadd.s32 32767, %s130_s14 }
  0x50   :  { %s3120_s18 = sor.u32 %s121_s15, %s120_s23  ;;  %s132_s19 = sadd.s32 %s3074_s25, %s131_s16 }
  0x51   :  { %4182 = sst [smem:[#allocation14_spill]] %s3120_s18  ;;  %s133_s1 = sand.u32 4294901760, %s132_s19 }
  0x52   :  { %s145_s20 = sshrl.u32 %s3076_s26, 16  ;;  %s4413_s1 = smov (%p128_p9, %s133_s1), 2143289344 }
  0x53   :  { %s146_s24 = sand.u32 1, %s145_s20  ;;  %p160_p11 = scmp.ne.f32.partialorder %s3078_s2, %s3078_s2 }
  0x54   :  { %s136_s21 = sshrl.u32 %s4413_s1, 16  ;;  %s147_s5 = sadd.s32 32767, %s146_s24 }
  0x55   :  { %s137_s7 = sshll.u32 %s136_s21, 16  ;;  %s148_s8 = sadd.s32 %s3076_s26, %s147_s5 }
  0x56   :  { %s3130_s22 = sor.u32 %s137_s7, %s136_s21  ;;  %s149_s9 = sand.u32 4294901760, %s148_s8 }
  0x57   :  { %s4415_s9 = smov (%p144_p10, %s149_s9), 2143289344  ;;  %s161_s0 = sshrl.u32 %s3078_s2, 16  ;;  %v139_v20 = vstv %s3130_s22 }
  0x58   :  { %p176_p12 = scmp.ne.f32.partialorder %s3080_s27, %s3080_s27  ;;  %s152_s25 = sshrl.u32 %s4415_s9, 16  ;;  %v2879_v13 = vpop.eup %2878 }
  0x59   :  { %s162_s10 = sand.u32 1, %s161_s0  ;;  %s153_s12 = sshll.u32 %s152_s25, 16  ;;  %v92_v16 = vmul.bf16 1056980736, %v2879_v13 }
  0x5a   :  { %s163_s13 = sadd.s32 32767, %s162_s10  ;;  %s3138_s23 = sor.u32 %s153_s12, %s152_s25 }
  0x5b   :  { %4183 = sst [smem:[#allocation15_spill]] %s3138_s23  ;;  %s164_s14 = sadd.s32 %s3078_s2, %s163_s13  ;;  %v3450_v18 = vadd.bf16 1056980736, %v92_v16 }
  0x5c   :  { %s165_s15 = sand.u32 4294901760, %s164_s14  ;;  %s177_s16 = sshrl.u32 %s3080_s27, 16 }
  0x5d   :  { %s4417_s15 = smov (%p160_p11, %s165_s15), 2143289344  ;;  %s178_s26 = sand.u32 1, %s177_s16  ;;  %v109_v27 = vmul.bf16 %v107_v19, %v3450_v18  ;;  %v141_v29 = vmul.bf16 %v139_v20, %v3450_v18 }
  0x5e   :  { %p192_p13 = scmp.ne.f32.partialorder %s3082_s28, %s3082_s28  ;;  %s168_s19 = sshrl.u32 %s4417_s15, 16 }
  0x5f   :  { %s179_s1 = sadd.s32 32767, %s178_s26  ;;  %s169_s20 = sshll.u32 %s168_s19, 16 }
  0x60   :  { %s180_s24 = sadd.s32 %s3080_s27, %s179_s1  ;;  %s3148_s21 = sor.u32 %s169_s20, %s168_s19 }
  0x61   :  { %s181_s5 = sand.u32 4294901760, %s180_s24  ;;  %s193_s7 = sshrl.u32 %s3082_s28, 16  ;;  %v171_v22 = vstv %s3148_s21 }
  0x62   :  { %s4419_s5 = smov (%p176_p12, %s181_s5), 2143289344  ;;  %p208_p0 = scmp.ne.f32.partialorder %s3084_s29, %s3084_s29  ;;  %v173_v31 = vmul.bf16 %v171_v22, %v3450_v18 }
  0x63   :  { %s184_s2 = sshrl.u32 %s4419_s5, 16  ;;  %s194_s8 = sand.u32 1, %s193_s7 }
  0x64   :  { %s185_s9 = sshll.u32 %s184_s2, 16  ;;  %s195_s0 = sadd.s32 32767, %s194_s8 }
  0x65   :  { %s3156_s25 = sor.u32 %s185_s9, %s184_s2  ;;  %s196_s10 = sadd.s32 %s3082_s28, %s195_s0 }
  0x66   :  { %4184 = sst [smem:[#allocation16_spill]] %s3156_s25  ;;  %s197_s12 = sand.u32 4294901760, %s196_s10 }
  0x67   :  { %s209_s13 = sshrl.u32 %s3084_s29, 16  ;;  %s4421_s12 = smov (%p192_p13, %s197_s12), 2143289344 }
  0x68   :  { %s210_s27 = sand.u32 1, %s209_s13  ;;  %p224_p1 = scmp.ne.f32.partialorder %s3086_s30, %s3086_s30 }
  0x69   :  { %s200_s14 = sshrl.u32 %s4421_s12, 16  ;;  %s211_s15 = sadd.s32 32767, %s210_s27 }
  0x6a   :  { %s201_s16 = sshll.u32 %s200_s14, 16  ;;  %s212_s26 = sadd.s32 %s3084_s29, %s211_s15 }
  0x6b   :  { %s3166_s19 = sor.u32 %s201_s16, %s200_s14  ;;  %s213_s1 = sand.u32 4294901760, %s212_s26 }
  0x6c   :  { %s4423_s1 = smov (%p208_p0, %s213_s1), 2143289344  ;;  %s225_s20 = sshrl.u32 %s3086_s30, 16  ;;  %v203_v23 = vstv %s3166_s19 }
  0x6d   :  { %s2728_s24 = sld [smem:[#allocation2 + $0x7c]]  ;;  %s216_s5 = sshrl.u32 %s4423_s1, 16  ;;  %v205_v32 = vmul.bf16 %v203_v23, %v3450_v18 }
  0x6e   :  { %s226_s28 = sand.u32 1, %s225_s20  ;;  %s217_s7 = sshll.u32 %s216_s5, 16 }
  0x6f   :  { %s227_s2 = sadd.s32 32767, %s226_s28  ;;  %s3172_s8 = sor.u32 %s217_s7, %s216_s5 }
  0x70   :  { %4185 = sst [smem:[#allocation17_spill]] %s3172_s8  ;;  %s228_s9 = sadd.s32 %s3086_s30, %s227_s2 }
  0x71   :  { %s229_s0 = sand.u32 4294901760, %s228_s9  ;;  %s2729_s10 = sld [smem:[#allocation2 + $0x19]] }
  0x72   :  { %s4425_s0 = smov (%p224_p1, %s229_s0), 2143289344  ;;  %s2730_s20 = sld [smem:[#allocation2 + $0x7d]] }
  0x73   :  { %p240_p2 = scmp.ne.f32.partialorder %s2728_s24, %s2728_s24  ;;  %s241_s12 = sshrl.u32 %s2728_s24, 16 }
  0x74   :  { %s232_s13 = sshrl.u32 %s4425_s0, 16  ;;  %s242_s27 = sand.u32 1, %s241_s12 }
  0x75   :  { %s233_s14 = sshll.u32 %s232_s13, 16  ;;  %s243_s29 = sadd.s32 32767, %s242_s27 }
  0x76   :  { %s3178_s15 = sor.u32 %s233_s14, %s232_s13  ;;  %s244_s16 = sadd.s32 %s2728_s24, %s243_s29 }
  0x77   :  { %s245_s26 = sand.u32 4294901760, %s244_s16  ;;  %p256_p3 = scmp.ne.f32.partialorder %s2729_s10, %s2729_s10  ;;  %v235_v24 = vstv %s3178_s15 }
  0x78   :  { %s4427_s26 = smov (%p240_p2, %s245_s26), 2143289344  ;;  %s257_s1 = sshrl.u32 %s2729_s10, 16  ;;  %v237_v35 = vmul.bf16 %v235_v24, %v3450_v18 }
  0x79   :  { %s248_s5 = sshrl.u32 %s4427_s26, 16  ;;  %s258_s28 = sand.u32 1, %s257_s1 }
  0x7a   :  { %s249_s7 = sshll.u32 %s248_s5, 16  ;;  %s259_s2 = sadd.s32 32767, %s258_s28 }
  0x7b   :  { %s3180_s30 = sor.u32 %s249_s7, %s248_s5  ;;  %s260_s9 = sadd.s32 %s2729_s10, %s259_s2 }
  0x7c   :  { %4186 = sst [smem:[#allocation18_spill]] %s3180_s30  ;;  %s261_s4 = sand.u32 4294901760, %s260_s9 }
  0x7d   :  { %s2731_s0 = sld [smem:[#allocation2 + $0x1a]]  ;;  %s4429_s4 = smov (%p256_p3, %s261_s4), 2143289344 }
  0x7e   :  { %p272_p4 = scmp.ne.f32.partialorder %s2730_s20, %s2730_s20  ;;  %s273_s12 = sshrl.u32 %s2730_s20, 16 }
  0x7f   :  { %s264_s13 = sshrl.u32 %s4429_s4, 16  ;;  %s274_s27 = sand.u32 1, %s273_s12 }
  0x80   :  { %s265_s24 = sshll.u32 %s264_s13, 16  ;;  %s275_s14 = sadd.s32 32767, %s274_s27 }
  0x81   :  { %s3182_s29 = sor.u32 %s265_s24, %s264_s13  ;;  %s276_s16 = sadd.s32 %s2730_s20, %s275_s14 }
  0x82   :  { %4187 = sst [smem:[#allocation19_spill]] %s3182_s29  ;;  %s277_s3 = sand.u32 4294901760, %s276_s16 }
  0x83   :  { %p288_p5 = scmp.ne.f32.partialorder %s2731_s0, %s2731_s0  ;;  %s4431_s3 = smov (%p272_p4, %s277_s3), 2143289344 }
  0x84   :  { %s289_s26 = sshrl.u32 %s2731_s0, 16  ;;  %s2732_s1 = sld [smem:[#allocation2 + $0x7e]] }
  0x85   :  { %s280_s5 = sshrl.u32 %s4431_s3, 16  ;;  %s290_s28 = sand.u32 1, %s289_s26 }
  0x86   :  { %s281_s10 = sshll.u32 %s280_s5, 16  ;;  %s291_s7 = sadd.s32 32767, %s290_s28 }
  0x87   :  { %s3184_s2 = sor.u32 %s281_s10, %s280_s5  ;;  %s292_s9 = sadd.s32 %s2731_s0, %s291_s7 }
  0x88   :  { %4188 = sst [smem:[#allocation20_spill]] %s3184_s2  ;;  %s293_s30 = sand.u32 4294901760, %s292_s9 }
  0x89   :  { %s2733_s4 = sld [smem:[#allocation2 + $0x1b]]  ;;  %s4433_s30 = smov (%p288_p5, %s293_s30), 2143289344 }
  0x8a   :  { %p304_p6 = scmp.ne.f32.partialorder %s2732_s1, %s2732_s1  ;;  %s305_s12 = sshrl.u32 %s2732_s1, 16 }
  0x8b   :  { %s296_s13 = sshrl.u32 %s4433_s30, 16  ;;  %s306_s27 = sand.u32 1, %s305_s12 }
  0x8c   :  { %s297_s20 = sshll.u32 %s296_s13, 16  ;;  %s307_s24 = sadd.s32 32767, %s306_s27 }
  0x8d   :  { %s3186_s14 = sor.u32 %s297_s20, %s296_s13  ;;  %s308_s16 = sadd.s32 %s2732_s1, %s307_s24 }
  0x8e   :  { %4189 = sst [smem:[#allocation21_spill]] %s3186_s14  ;;  %s309_s29 = sand.u32 4294901760, %s308_s16 }
  0x8f   :  { %p320_p7 = scmp.ne.f32.partialorder %s2733_s4, %s2733_s4  ;;  %s4435_s29 = smov (%p304_p6, %s309_s29), 2143289344 }
  0x90   :  { %s321_s3 = sshrl.u32 %s2733_s4, 16  ;;  %s2734_s26 = sld [smem:[#allocation2 + $0x7f]] }
  0x91   :  { %s312_s5 = sshrl.u32 %s4435_s29, 16  ;;  %s322_s28 = sand.u32 1, %s321_s3 }
  0x92   :  { %s313_s0 = sshll.u32 %s312_s5, 16  ;;  %s323_s10 = sadd.s32 32767, %s322_s28 }
  0x93   :  { %s3188_s7 = sor.u32 %s313_s0, %s312_s5  ;;  %s324_s9 = sadd.s32 %s2733_s4, %s323_s10 }
  0x94   :  { %4190 = sst [smem:[#allocation22_spill]] %s3188_s7  ;;  %s325_s2 = sand.u32 4294901760, %s324_s9 }
  0x95   :  { %s2735_s30 = sld [smem:[#allocation2 + $0x1c]]  ;;  %s4437_s2 = smov (%p320_p7, %s325_s2), 2143289344 }
  0x96   :  { %p336_p8 = scmp.ne.f32.partialorder %s2734_s26, %s2734_s26  ;;  %s337_s12 = sshrl.u32 %s2734_s26, 16 }
  0x97   :  { %s328_s13 = sshrl.u32 %s4437_s2, 16  ;;  %s338_s27 = sand.u32 1, %s337_s12 }
  0x98   :  { %s329_s1 = sshll.u32 %s328_s13, 16  ;;  %s339_s20 = sadd.s32 32767, %s338_s27 }
  0x99   :  { %s3190_s24 = sor.u32 %s329_s1, %s328_s13  ;;  %s340_s16 = sadd.s32 %s2734_s26, %s339_s20 }
  0x9a   :  { %4191 = sst [smem:[#allocation23_spill]] %s3190_s24  ;;  %s341_s14 = sand.u32 4294901760, %s340_s16 }
  0x9b   :  { %p352_p9 = scmp.ne.f32.partialorder %s2735_s30, %s2735_s30  ;;  %s4439_s14 = smov (%p336_p8, %s341_s14), 2143289344 }
  0x9c   :  { %s353_s29 = sshrl.u32 %s2735_s30, 16  ;;  %s2736_s3 = sld [smem:[#allocation2 + $0x80]] }
  0x9d   :  { %s344_s5 = sshrl.u32 %s4439_s14, 16  ;;  %s354_s28 = sand.u32 1, %s353_s29 }
  0x9e   :  { %s345_s4 = sshll.u32 %s344_s5, 16  ;;  %s355_s0 = sadd.s32 32767, %s354_s28 }
  0x9f   :  { %s3192_s10 = sor.u32 %s345_s4, %s344_s5  ;;  %s356_s9 = sadd.s32 %s2735_s30, %s355_s0 }
  0xa0   :  { %4192 = sst [smem:[#allocation24_spill]] %s3192_s10  ;;  %s357_s7 = sand.u32 4294901760, %s356_s9 }
  0xa1   :  { %s2737_s2 = sld [smem:[#allocation2 + $0x1d]]  ;;  %s4441_s7 = smov (%p352_p9, %s357_s7), 2143289344 }
  0xa2   :  { %p368_p10 = scmp.ne.f32.partialorder %s2736_s3, %s2736_s3  ;;  %s369_s12 = sshrl.u32 %s2736_s3, 16 }
  0xa3   :  { %s360_s13 = sshrl.u32 %s4441_s7, 16  ;;  %s370_s27 = sand.u32 1, %s369_s12 }
  0xa4   :  { %s361_s26 = sshll.u32 %s360_s13, 16  ;;  %s371_s1 = sadd.s32 32767, %s370_s27 }
  0xa5   :  { %s3194_s20 = sor.u32 %s361_s26, %s360_s13  ;;  %s372_s16 = sadd.s32 %s2736_s3, %s371_s1 }
  0xa6   :  { %4193 = sst [smem:[#allocation25_spill]] %s3194_s20  ;;  %s373_s24 = sand.u32 4294901760, %s372_s16 }
  0xa7   :  { %p384_p11 = scmp.ne.f32.partialorder %s2737_s2, %s2737_s2  ;;  %s4443_s24 = smov (%p368_p10, %s373_s24), 2143289344 }
  0xa8   :  { %s385_s14 = sshrl.u32 %s2737_s2, 16  ;;  %s2738_s29 = sld [smem:[#allocation2 + $0x81]] }
  0xa9   :  { %s376_s5 = sshrl.u32 %s4443_s24, 16  ;;  %s386_s28 = sand.u32 1, %s385_s14 }
  0xaa   :  { %s377_s30 = sshll.u32 %s376_s5, 16  ;;  %s387_s4 = sadd.s32 32767, %s386_s28 }
  0xab   :  { %s3196_s0 = sor.u32 %s377_s30, %s376_s5  ;;  %s388_s9 = sadd.s32 %s2737_s2, %s387_s4 }
  0xac   :  { %4194 = sst [smem:[#allocation26_spill]] %s3196_s0  ;;  %s389_s10 = sand.u32 4294901760, %s388_s9 }
  0xad   :  { %s2739_s7 = sld [smem:[#allocation2 + $0x1]]  ;;  %s4445_s10 = smov (%p384_p11, %s389_s10), 2143289344 }
  0xae   :  { %p400_p12 = scmp.ne.f32.partialorder %s2738_s29, %s2738_s29  ;;  %s401_s12 = sshrl.u32 %s2738_s29, 16 }
  0xaf   :  { %s392_s13 = sshrl.u32 %s4445_s10, 16  ;;  %s402_s27 = sand.u32 1, %s401_s12 }
  0xb0   :  { %s393_s3 = sshll.u32 %s392_s13, 16  ;;  %s403_s26 = sadd.s32 32767, %s402_s27 }
  0xb1   :  { %s3198_s1 = sor.u32 %s393_s3, %s392_s13  ;;  %s404_s16 = sadd.s32 %s2738_s29, %s403_s26 }
  0xb2   :  { %4195 = sst [smem:[#allocation27_spill]] %s3198_s1  ;;  %s405_s20 = sand.u32 4294901760, %s404_s16 }
  0xb3   :  { %p416_p13 = scmp.ne.f32.partialorder %s2739_s7, %s2739_s7  ;;  %s4447_s20 = smov (%p400_p12, %s405_s20), 2143289344 }
  0xb4   :  { %s417_s24 = sshrl.u32 %s2739_s7, 16  ;;  %s2740_s14 = sld [smem:[#allocation2 + $0xb]] }
  0xb5   :  { %s408_s5 = sshrl.u32 %s4447_s20, 16  ;;  %s418_s28 = sand.u32 1, %s417_s24 }
  0xb6   :  { %s409_s2 = sshll.u32 %s408_s5, 16  ;;  %s419_s30 = sadd.s32 32767, %s418_s28 }
  0xb7   :  { %s3200_s4 = sor.u32 %s409_s2, %s408_s5  ;;  %s420_s9 = sadd.s32 %s2739_s7, %s419_s30 }
  0xb8   :  { %4196 = sst [smem:[#allocation28_spill]] %s3200_s4  ;;  %s421_s0 = sand.u32 4294901760, %s420_s9 }
  0xb9   :  { %s2741_s10 = sld [smem:[#allocation2 + $0x1e]]  ;;  %s4449_s0 = smov (%p416_p13, %s421_s0), 2143289344 }
  0xba   :  { %p432_p0 = scmp.ne.f32.partialorder %s2740_s14, %s2740_s14  ;;  %s433_s12 = sshrl.u32 %s2740_s14, 16 }
  0xbb   :  { %s424_s13 = sshrl.u32 %s4449_s0, 16  ;;  %s434_s27 = sand.u32 1, %s433_s12 }
  0xbc   :  { %s425_s29 = sshll.u32 %s424_s13, 16  ;;  %s435_s3 = sadd.s32 32767, %s434_s27 }
  0xbd   :  { %s3202_s26 = sor.u32 %s425_s29, %s424_s13  ;;  %s436_s16 = sadd.s32 %s2740_s14, %s435_s3 }
  0xbe   :  { %s437_s1 = sand.u32 4294901760, %s436_s16  ;;  %s2742_s24 = sld [smem:[#allocation2 + $0x1f]]  ;;  %v427_v7 = vstv %s3202_s26 }
  0xbf   :  { %p452_p1 = scmp.ne.f32.partialorder %s2741_s10, %s2741_s10  ;;  %s4451_s1 = smov (%p432_p0, %s437_s1), 2143289344  ;;  %v429_v8 = vmul.bf16 %v427_v7, %v3404_v1 }
  0xc0   :  { %s453_s20 = sshrl.u32 %s2741_s10, 16  ;;  %s440_s5 = sshrl.u32 %s4451_s1, 16 }
  0xc1   :  { %s454_s28 = sand.u32 1, %s453_s20  ;;  %s441_s7 = sshll.u32 %s440_s5, 16 }
  0xc2   :  { %s455_s2 = sadd.s32 32767, %s454_s28  ;;  %s3204_s30 = sor.u32 %s441_s7, %s440_s5 }
  0xc3   :  { %s456_s9 = sadd.s32 %s2741_s10, %s455_s2  ;;  %s2743_s0 = sld [smem:[#allocation2 + $0x20]]  ;;  %v443_v9 = vstv %s3204_s30 }
  0xc4   :  { %s457_s4 = sand.u32 4294901760, %s456_s9  ;;  %p469_p2 = scmp.ne.f32.partialorder %s2742_s24, %s2742_s24  ;;  %v445_v10 = vadd.bf16 %v443_v9, %v429_v8 }
  0xc5   :  { %s4453_s4 = smov (%p452_p1, %s457_s4), 2143289344  ;;  %s470_s12 = sshrl.u32 %s2742_s24, 16 }
  0xc6   :  { %s460_s13 = sshrl.u32 %s4453_s4, 16  ;;  %s471_s27 = sand.u32 1, %s470_s12  ;;  %v446_v11 = vmul.bf16 1056980736, %v445_v10 }
  0xc7   :  { %s461_s14 = sshll.u32 %s460_s13, 16  ;;  %s472_s29 = sadd.s32 32767, %s471_s27 }
  0xc8   :  { %s3206_s3 = sor.u32 %s461_s14, %s460_s13  ;;  %s473_s16 = sadd.s32 %s2742_s24, %s472_s29  ;;  %2880 = vtanh.bf16 %v446_v11 }
  0xc9   :  { %4197 = sst [smem:[#allocation29_spill]] %s3206_s3  ;;  %s474_s8 = sand.u32 4294901760, %s473_s16 }
  0xca   :  { %p486_p3 = scmp.ne.f32.partialorder %s2743_s0, %s2743_s0  ;;  %s4455_s8 = smov (%p469_p2, %s474_s8), 2143289344 }
  0xcb   :  { %s487_s1 = sshrl.u32 %s2743_s0, 16  ;;  %s2744_s20 = sld [smem:[#allocation2 + $0x21]] }
  0xcc   :  { %s477_s5 = sshrl.u32 %s4455_s8, 16  ;;  %s488_s28 = sand.u32 1, %s487_s1 }
  0xcd   :  { %s478_s10 = sshll.u32 %s477_s5, 16  ;;  %s489_s7 = sadd.s32 32767, %s488_s28 }
  0xce   :  { %s3208_s2 = sor.u32 %s478_s10, %s477_s5  ;;  %s490_s9 = sadd.s32 %s2743_s0, %s489_s7 }
  0xcf   :  { %4198 = sst [smem:[#allocation30_spill]] %s3208_s2  ;;  %s491_s25 = sand.u32 4294901760, %s490_s9 }
  0xd0   :  { %s2745_s4 = sld [smem:[#allocation2 + $0x22]]  ;;  %s4457_s25 = smov (%p486_p3, %s491_s25), 2143289344 }
  0xd1   :  { %p503_p4 = scmp.ne.f32.partialorder %s2744_s20, %s2744_s20  ;;  %s504_s12 = sshrl.u32 %s2744_s20, 16 }
  0xd2   :  { %s494_s13 = sshrl.u32 %s4457_s25, 16  ;;  %s505_s27 = sand.u32 1, %s504_s12 }
  0xd3   :  { %s495_s24 = sshll.u32 %s494_s13, 16  ;;  %s506_s14 = sadd.s32 32767, %s505_s27  ;;  %v2881_v26 = vpop.eup %2880 }
  0xd4   :  { %s3210_s29 = sor.u32 %s495_s24, %s494_s13  ;;  %s507_s16 = sadd.s32 %s2744_s20, %s506_s14  ;;  %v448_v38 = vmul.bf16 1056980736, %v2881_v26 }
  0xd5   :  { %4199 = sst [smem:[#allocation31_spill]] %s3210_s29  ;;  %s508_s3 = sand.u32 4294901760, %s507_s16 }
  0xd6   :  { %p520_p5 = scmp.ne.f32.partialorder %s2745_s4, %s2745_s4  ;;  %s4459_s3 = smov (%p503_p4, %s508_s3), 2143289344  ;;  %v3510_v54 = vadd.bf16 1056980736, %v448_v38 }
  0xd7   :  { %s521_s8 = sshrl.u32 %s2745_s4, 16  ;;  %s2746_s1 = sld [smem:[#allocation2 + $0x23]] }
  0xd8   :  { %s511_s5 = sshrl.u32 %s4459_s3, 16  ;;  %s522_s28 = sand.u32 1, %s521_s8 }
  0xd9   :  { %s512_s0 = sshll.u32 %s511_s5, 16  ;;  %s523_s10 = sadd.s32 32767, %s522_s28 }
  0xda   :  { %s3212_s7 = sor.u32 %s512_s0, %s511_s5  ;;  %s524_s9 = sadd.s32 %s2745_s4, %s523_s10 }
  0xdb   :  { %4200 = sst [smem:[#allocation32_spill]] %s3212_s7  ;;  %s525_s2 = sand.u32 4294901760, %s524_s9 }
  0xdc   :  { %s2747_s25 = sld [smem:[#allocation2 + $0x24]]  ;;  %s4461_s2 = smov (%p520_p5, %s525_s2), 2143289344 }
  0xdd   :  { %p537_p6 = scmp.ne.f32.partialorder %s2746_s1, %s2746_s1  ;;  %s538_s12 = sshrl.u32 %s2746_s1, 16 }
  0xde   :  { %s528_s13 = sshrl.u32 %s4461_s2, 16  ;;  %s539_s27 = sand.u32 1, %s538_s12 }
  0xdf   :  { %s529_s20 = sshll.u32 %s528_s13, 16  ;;  %s540_s24 = sadd.s32 32767, %s539_s27 }
  0xe0   :  { %s3214_s14 = sor.u32 %s529_s20, %s528_s13  ;;  %s541_s16 = sadd.s32 %s2746_s1, %s540_s24 }
  0xe1   :  { %4201 = sst [smem:[#allocation33_spill]] %s3214_s14  ;;  %s542_s29 = sand.u32 4294901760, %s541_s16 }
  0xe2   :  { %p554_p7 = scmp.ne.f32.partialorder %s2747_s25, %s2747_s25  ;;  %s4463_s29 = smov (%p537_p6, %s542_s29), 2143289344 }
  0xe3   :  { %s555_s3 = sshrl.u32 %s2747_s25, 16  ;;  %s2748_s8 = sld [smem:[#allocation2 + $0x25]] }
  0xe4   :  { %s545_s5 = sshrl.u32 %s4463_s29, 16  ;;  %s556_s28 = sand.u32 1, %s555_s3 }
  0xe5   :  { %s546_s4 = sshll.u32 %s545_s5, 16  ;;  %s557_s0 = sadd.s32 32767, %s556_s28 }
  0xe6   :  { %s3216_s10 = sor.u32 %s546_s4, %s545_s5  ;;  %s558_s9 = sadd.s32 %s2747_s25, %s557_s0 }
  0xe7   :  { %4202 = sst [smem:[#allocation34_spill]] %s3216_s10  ;;  %s559_s7 = sand.u32 4294901760, %s558_s9 }
  0xe8   :  { %s2749_s2 = sld [smem:[#allocation2 + $0x26]]  ;;  %s4465_s7 = smov (%p554_p7, %s559_s7), 2143289344 }
  0xe9   :  { %p571_p8 = scmp.ne.f32.partialorder %s2748_s8, %s2748_s8  ;;  %s572_s12 = sshrl.u32 %s2748_s8, 16 }
  0xea   :  { %s562_s13 = sshrl.u32 %s4465_s7, 16  ;;  %s573_s27 = sand.u32 1, %s572_s12 }
  0xeb   :  { %s563_s1 = sshll.u32 %s562_s13, 16  ;;  %s574_s20 = sadd.s32 32767, %s573_s27 }
  0xec   :  { %s3218_s24 = sor.u32 %s563_s1, %s562_s13  ;;  %s575_s16 = sadd.s32 %s2748_s8, %s574_s20 }
  0xed   :  { %4203 = sst [smem:[#allocation35_spill]] %s3218_s24  ;;  %s576_s14 = sand.u32 4294901760, %s575_s16 }
  0xee   :  { %p588_p9 = scmp.ne.f32.partialorder %s2749_s2, %s2749_s2  ;;  %s4467_s14 = smov (%p571_p8, %s576_s14), 2143289344 }
  0xef   :  { %s589_s29 = sshrl.u32 %s2749_s2, 16  ;;  %s2750_s3 = sld [smem:[#allocation2 + $0x27]] }
  0xf0   :  { %s579_s5 = sshrl.u32 %s4467_s14, 16  ;;  %s590_s28 = sand.u32 1, %s589_s29 }
  0xf1   :  { %s580_s25 = sshll.u32 %s579_s5, 16  ;;  %s591_s4 = sadd.s32 32767, %s590_s28 }
  0xf2   :  { %s3220_s0 = sor.u32 %s580_s25, %s579_s5  ;;  %s592_s9 = sadd.s32 %s2749_s2, %s591_s4 }
  0xf3   :  { %4204 = sst [smem:[#allocation36_spill]] %s3220_s0  ;;  %s593_s10 = sand.u32 4294901760, %s592_s9 }
  0xf4   :  { %s2751_s7 = sld [smem:[#allocation2 + $0x2]]  ;;  %s4469_s10 = smov (%p588_p9, %s593_s10), 2143289344 }
  0xf5   :  { %p605_p10 = scmp.ne.f32.partialorder %s2750_s3, %s2750_s3  ;;  %s606_s12 = sshrl.u32 %s2750_s3, 16 }
  0xf6   :  { %s596_s13 = sshrl.u32 %s4469_s10, 16  ;;  %s607_s27 = sand.u32 1, %s606_s12 }
  0xf7   :  { %s597_s8 = sshll.u32 %s596_s13, 16  ;;  %s608_s1 = sadd.s32 32767, %s607_s27 }
  0xf8   :  { %s3222_s20 = sor.u32 %s597_s8, %s596_s13  ;;  %s609_s16 = sadd.s32 %s2750_s3, %s608_s1 }
  0xf9   :  { %4205 = sst [smem:[#allocation37_spill]] %s3222_s20  ;;  %s610_s24 = sand.u32 4294901760, %s609_s16 }
  0xfa   :  { %p622_p11 = scmp.ne.f32.partialorder %s2751_s7, %s2751_s7  ;;  %s4471_s24 = smov (%p605_p10, %s610_s24), 2143289344 }
  0xfb   :  { %s623_s14 = sshrl.u32 %s2751_s7, 16  ;;  %s2752_s29 = sld [smem:[#allocation2 + $0xc]] }
  0xfc   :  { %s613_s5 = sshrl.u32 %s4471_s24, 16  ;;  %s624_s28 = sand.u32 1, %s623_s14 }
  0xfd   :  { %s614_s2 = sshll.u32 %s613_s5, 16  ;;  %s625_s25 = sadd.s32 32767, %s624_s28 }
  0xfe   :  { %s3224_s4 = sor.u32 %s614_s2, %s613_s5  ;;  %s626_s9 = sadd.s32 %s2751_s7, %s625_s25 }
  0xff   :  { %4206 = sst [smem:[#allocation38_spill]] %s3224_s4  ;;  %s627_s0 = sand.u32 4294901760, %s626_s9 }
 0x100   :  { %s2753_s10 = sld [smem:[#allocation2 + $0x28]]  ;;  %s4473_s0 = smov (%p622_p11, %s627_s0), 2143289344 }
 0x101   :  { %p638_p12 = scmp.ne.f32.partialorder %s2752_s29, %s2752_s29  ;;  %s639_s12 = sshrl.u32 %s2752_s29, 16 }
 0x102   :  { %s630_s13 = sshrl.u32 %s4473_s0, 16  ;;  %s640_s27 = sand.u32 1, %s639_s12 }
 0x103   :  { %s631_s3 = sshll.u32 %s630_s13, 16  ;;  %s641_s8 = sadd.s32 32767, %s640_s27 }
 0x104   :  { %s3226_s1 = sor.u32 %s631_s3, %s630_s13  ;;  %s642_s16 = sadd.s32 %s2752_s29, %s641_s8 }
 0x105   :  { %s643_s20 = sand.u32 4294901760, %s642_s16  ;;  %s2754_s14 = sld [smem:[#allocation2 + $0x29]]  ;;  %v633_v12 = vstv %s3226_s1 }
 0x106   :  { %p658_p13 = scmp.ne.f32.partialorder %s2753_s10, %s2753_s10  ;;  %s4475_s20 = smov (%p638_p12, %s643_s20), 2143289344  ;;  %v635_v14 = vmul.bf16 %v633_v12, %v3404_v1 }
 0x107   :  { %s659_s24 = sshrl.u32 %s2753_s10, 16  ;;  %s646_s5 = sshrl.u32 %s4475_s20, 16 }
 0x108   :  { %s660_s28 = sand.u32 1, %s659_s24  ;;  %s647_s7 = sshll.u32 %s646_s5, 16 }
 0x109   :  { %s661_s2 = sadd.s32 32767, %s660_s28  ;;  %s3228_s25 = sor.u32 %s647_s7, %s646_s5 }
 0x10a   :  { %s662_s9 = sadd.s32 %s2753_s10, %s661_s2  ;;  %s2755_s0 = sld [smem:[#allocation2 + $0x2a]]  ;;  %v649_v15 = vstv %s3228_s25 }
 0x10b   :  { %s663_s4 = sand.u32 4294901760, %s662_s9  ;;  %p675_p0 = scmp.ne.f32.partialorder %s2754_s14, %s2754_s14  ;;  %v651_v17 = vadd.bf16 %v649_v15, %v635_v14 }
 0x10c   :  { %s4477_s4 = smov (%p658_p13, %s663_s4), 2143289344  ;;  %s676_s12 = sshrl.u32 %s2754_s14, 16 }
 0x10d   :  { %s666_s13 = sshrl.u32 %s4477_s4, 16  ;;  %s677_s27 = sand.u32 1, %s676_s12  ;;  %v652_v21 = vmul.bf16 1056980736, %v651_v17 }
 0x10e   :  { %s667_s29 = sshll.u32 %s666_s13, 16  ;;  %s678_s3 = sadd.s32 32767, %s677_s27 }
 0x10f   :  { %s3230_s8 = sor.u32 %s667_s29, %s666_s13  ;;  %s679_s16 = sadd.s32 %s2754_s14, %s678_s3  ;;  %2882 = vtanh.bf16 %v652_v21 }
 0x110   :  { %4207 = sst [smem:[#allocation39_spill]] %s3230_s8  ;;  %s680_s23 = sand.u32 4294901760, %s679_s16 }
 0x111   :  { %p692_p1 = scmp.ne.f32.partialorder %s2755_s0, %s2755_s0  ;;  %s4479_s23 = smov (%p675_p0, %s680_s23), 2143289344 }
 0x112   :  { %s693_s20 = sshrl.u32 %s2755_s0, 16  ;;  %s2756_s24 = sld [smem:[#allocation2 + $0x2b]] }
 0x113   :  { %s683_s5 = sshrl.u32 %s4479_s23, 16  ;;  %s694_s28 = sand.u32 1, %s693_s20 }
 0x114   :  { %s684_s10 = sshll.u32 %s683_s5, 16  ;;  %s695_s7 = sadd.s32 32767, %s694_s28 }
 0x115   :  { %s3232_s2 = sor.u32 %s684_s10, %s683_s5  ;;  %s696_s9 = sadd.s32 %s2755_s0, %s695_s7 }
 0x116   :  { %4208 = sst [smem:[#allocation40_spill]] %s3232_s2  ;;  %s697_s18 = sand.u32 4294901760, %s696_s9 }
 0x117   :  { %s2757_s4 = sld [smem:[#allocation2 + $0x2c]]  ;;  %s4481_s18 = smov (%p692_p1, %s697_s18), 2143289344 }
 0x118   :  { %p709_p2 = scmp.ne.f32.partialorder %s2756_s24, %s2756_s24  ;;  %s710_s12 = sshrl.u32 %s2756_s24, 16 }
 0x119   :  { %s700_s13 = sshrl.u32 %s4481_s18, 16  ;;  %s711_s27 = sand.u32 1, %s710_s12 }
 0x11a   :  { %s701_s14 = sshll.u32 %s700_s13, 16  ;;  %s712_s29 = sadd.s32 32767, %s711_s27  ;;  %v2883_v8 = vpop.eup %2882 }
 0x11b   :  { %s3234_s3 = sor.u32 %s701_s14, %s700_s13  ;;  %s713_s16 = sadd.s32 %s2756_s24, %s712_s29  ;;  %v654_v23 = vmul.bf16 1056980736, %v2883_v8 }
 0x11c   :  { %4209 = sst [smem:[#allocation41_spill]] %s3234_s3  ;;  %s714_s8 = sand.u32 4294901760, %s713_s16 }
 0x11d   :  { %p726_p3 = scmp.ne.f32.partialorder %s2757_s4, %s2757_s4  ;;  %s4483_s8 = smov (%p709_p2, %s714_s8), 2143289344  ;;  %v3594_v38 = vadd.bf16 1056980736, %v654_v23 }
 0x11e   :  { %s727_s23 = sshrl.u32 %s2757_s4, 16  ;;  %s2758_s20 = sld [smem:[#allocation2 + $0x2d]] }
 0x11f   :  { %s717_s5 = sshrl.u32 %s4483_s8, 16  ;;  %s728_s28 = sand.u32 1, %s727_s23 }
 0x120   :  { %s718_s0 = sshll.u32 %s717_s5, 16  ;;  %s729_s10 = sadd.s32 32767, %s728_s28 }
 0x121   :  { %s3236_s7 = sor.u32 %s718_s0, %s717_s5  ;;  %s730_s9 = sadd.s32 %s2757_s4, %s729_s10 }
 0x122   :  { %4210 = sst [smem:[#allocation42_spill]] %s3236_s7  ;;  %s731_s2 = sand.u32 4294901760, %s730_s9 }
 0x123   :  { %s2759_s18 = sld [smem:[#allocation2 + $0x2e]]  ;;  %s4485_s2 = smov (%p726_p3, %s731_s2), 2143289344 }
 0x124   :  { %p743_p4 = scmp.ne.f32.partialorder %s2758_s20, %s2758_s20  ;;  %s744_s12 = sshrl.u32 %s2758_s20, 16 }
 0x125   :  { %s734_s13 = sshrl.u32 %s4485_s2, 16  ;;  %s745_s27 = sand.u32 1, %s744_s12 }
 0x126   :  { %s735_s24 = sshll.u32 %s734_s13, 16  ;;  %s746_s14 = sadd.s32 32767, %s745_s27 }
 0x127   :  { %s3238_s29 = sor.u32 %s735_s24, %s734_s13  ;;  %s747_s16 = sadd.s32 %s2758_s20, %s746_s14 }
 0x128   :  { %4211 = sst [smem:[#allocation43_spill]] %s3238_s29  ;;  %s748_s3 = sand.u32 4294901760, %s747_s16 }
 0x129   :  { %p760_p5 = scmp.ne.f32.partialorder %s2759_s18, %s2759_s18  ;;  %s4487_s3 = smov (%p743_p4, %s748_s3), 2143289344 }
 0x12a   :  { %s761_s8 = sshrl.u32 %s2759_s18, 16  ;;  %s2760_s23 = sld [smem:[#allocation2 + $0x2f]] }
 0x12b   :  { %s751_s5 = sshrl.u32 %s4487_s3, 16  ;;  %s762_s28 = sand.u32 1, %s761_s8 }
 0x12c   :  { %s752_s4 = sshll.u32 %s751_s5, 16  ;;  %s763_s0 = sadd.s32 32767, %s762_s28 }
 0x12d   :  { %s3240_s10 = sor.u32 %s752_s4, %s751_s5  ;;  %s764_s9 = sadd.s32 %s2759_s18, %s763_s0 }
 0x12e   :  { %4212 = sst [smem:[#allocation44_spill]] %s3240_s10  ;;  %s765_s7 = sand.u32 4294901760, %s764_s9 }
 0x12f   :  { %s2761_s2 = sld [smem:[#allocation2 + $0x30]]  ;;  %s4489_s7 = smov (%p760_p5, %s765_s7), 2143289344 }
 0x130   :  { %p777_p6 = scmp.ne.f32.partialorder %s2760_s23, %s2760_s23  ;;  %s778_s12 = sshrl.u32 %s2760_s23, 16 }
 0x131   :  { %s768_s13 = sshrl.u32 %s4489_s7, 16  ;;  %s779_s27 = sand.u32 1, %s778_s12 }
 0x132   :  { %s769_s20 = sshll.u32 %s768_s13, 16  ;;  %s780_s24 = sadd.s32 32767, %s779_s27 }
 0x133   :  { %s3242_s14 = sor.u32 %s769_s20, %s768_s13  ;;  %s781_s16 = sadd.s32 %s2760_s23, %s780_s24 }
 0x134   :  { %4213 = sst [smem:[#allocation45_spill]] %s3242_s14  ;;  %s782_s29 = sand.u32 4294901760, %s781_s16 }
 0x135   :  { %p794_p7 = scmp.ne.f32.partialorder %s2761_s2, %s2761_s2  ;;  %s4491_s29 = smov (%p777_p6, %s782_s29), 2143289344 }
 0x136   :  { %s795_s3 = sshrl.u32 %s2761_s2, 16  ;;  %s2762_s8 = sld [smem:[#allocation2 + $0x31]] }
 0x137   :  { %s785_s5 = sshrl.u32 %s4491_s29, 16  ;;  %s796_s28 = sand.u32 1, %s795_s3 }
 0x138   :  { %s786_s18 = sshll.u32 %s785_s5, 16  ;;  %s797_s4 = sadd.s32 32767, %s796_s28 }
 0x139   :  { %s3244_s0 = sor.u32 %s786_s18, %s785_s5  ;;  %s798_s9 = sadd.s32 %s2761_s2, %s797_s4 }
 0x13a   :  { %4214 = sst [smem:[#allocation46_spill]] %s3244_s0  ;;  %s799_s10 = sand.u32 4294901760, %s798_s9 }
 0x13b   :  { %s2763_s7 = sld [smem:[#allocation2 + $0x3]]  ;;  %s4493_s10 = smov (%p794_p7, %s799_s10), 2143289344 }
 0x13c   :  { %p811_p8 = scmp.ne.f32.partialorder %s2762_s8, %s2762_s8  ;;  %s812_s12 = sshrl.u32 %s2762_s8, 16 }
 0x13d   :  { %s802_s13 = sshrl.u32 %s4493_s10, 16  ;;  %s813_s27 = sand.u32 1, %s812_s12 }
 0x13e   :  { %s803_s23 = sshll.u32 %s802_s13, 16  ;;  %s814_s20 = sadd.s32 32767, %s813_s27 }
 0x13f   :  { %s3246_s24 = sor.u32 %s803_s23, %s802_s13  ;;  %s815_s16 = sadd.s32 %s2762_s8, %s814_s20 }
 0x140   :  { %4215 = sst [smem:[#allocation47_spill]] %s3246_s24  ;;  %s816_s14 = sand.u32 4294901760, %s815_s16 }
 0x141   :  { %p828_p9 = scmp.ne.f32.partialorder %s2763_s7, %s2763_s7  ;;  %s4495_s14 = smov (%p811_p8, %s816_s14), 2143289344 }
 0x142   :  { %s829_s29 = sshrl.u32 %s2763_s7, 16  ;;  %s2764_s3 = sld [smem:[#allocation2 + $0xd]] }
 0x143   :  { %s819_s5 = sshrl.u32 %s4495_s14, 16  ;;  %s830_s28 = sand.u32 1, %s829_s29 }
 0x144   :  { %s820_s2 = sshll.u32 %s819_s5, 16  ;;  %s831_s18 = sadd.s32 32767, %s830_s28 }
 0x145   :  { %s3248_s4 = sor.u32 %s820_s2, %s819_s5  ;;  %s832_s9 = sadd.s32 %s2763_s7, %s831_s18 }
 0x146   :  { %4216 = sst [smem:[#allocation48_spill]] %s3248_s4  ;;  %s833_s0 = sand.u32 4294901760, %s832_s9 }
 0x147   :  { %s2765_s10 = sld [smem:[#allocation2 + $0x32]]  ;;  %s4497_s0 = smov (%p828_p9, %s833_s0), 2143289344 }
 0x148   :  { %p844_p10 = scmp.ne.f32.partialorder %s2764_s3, %s2764_s3  ;;  %s845_s12 = sshrl.u32 %s2764_s3, 16 }
 0x149   :  { %s836_s13 = sshrl.u32 %s4497_s0, 16  ;;  %s846_s27 = sand.u32 1, %s845_s12 }
 0x14a   :  { %s837_s8 = sshll.u32 %s836_s13, 16  ;;  %s847_s23 = sadd.s32 32767, %s846_s27 }
 0x14b   :  { %s3250_s20 = sor.u32 %s837_s8, %s836_s13  ;;  %s848_s16 = sadd.s32 %s2764_s3, %s847_s23 }
 0x14c   :  { %4217 = sst [smem:[#allocation49_spill]] %s3250_s20  ;;  %s849_s24 = sand.u32 4294901760, %s848_s16 }
 0x14d   :  { %p864_p11 = scmp.ne.f32.partialorder %s2765_s10, %s2765_s10  ;;  %s4499_s24 = smov (%p844_p10, %s849_s24), 2143289344 }
 0x14e   :  { %s865_s14 = sshrl.u32 %s2765_s10, 16  ;;  %s2766_s29 = sld [smem:[#allocation2 + $0x33]] }
 0x14f   :  { %s852_s5 = sshrl.u32 %s4499_s24, 16  ;;  %s866_s28 = sand.u32 1, %s865_s14 }
 0x150   :  { %s853_s7 = sshll.u32 %s852_s5, 16  ;;  %s867_s2 = sadd.s32 32767, %s866_s28 }
 0x151   :  { %s3252_s18 = sor.u32 %s853_s7, %s852_s5  ;;  %s868_s9 = sadd.s32 %s2765_s10, %s867_s2 }
 0x152   :  { %4218 = sst [smem:[#allocation50_spill]] %s3252_s18  ;;  %s869_s4 = sand.u32 4294901760, %s868_s9 }
 0x153   :  { %s2767_s0 = sld [smem:[#allocation2 + $0x34]]  ;;  %s4501_s4 = smov (%p864_p11, %s869_s4), 2143289344 }
 0x154   :  { %p881_p12 = scmp.ne.f32.partialorder %s2766_s29, %s2766_s29  ;;  %s882_s12 = sshrl.u32 %s2766_s29, 16 }
 0x155   :  { %s872_s13 = sshrl.u32 %s4501_s4, 16  ;;  %s883_s27 = sand.u32 1, %s882_s12 }
 0x156   :  { %s873_s3 = sshll.u32 %s872_s13, 16  ;;  %s884_s8 = sadd.s32 32767, %s883_s27 }
 0x157   :  { %s3254_s23 = sor.u32 %s873_s3, %s872_s13  ;;  %s885_s16 = sadd.s32 %s2766_s29, %s884_s8 }
 0x158   :  { %4219 = sst [smem:[#allocation51_spill]] %s3254_s23  ;;  %s886_s20 = sand.u32 4294901760, %s885_s16 }
 0x159   :  { %p898_p13 = scmp.ne.f32.partialorder %s2767_s0, %s2767_s0  ;;  %s4503_s20 = smov (%p881_p12, %s886_s20), 2143289344 }
 0x15a   :  { %s899_s24 = sshrl.u32 %s2767_s0, 16  ;;  %s2768_s14 = sld [smem:[#allocation2 + $0x35]] }
 0x15b   :  { %s889_s5 = sshrl.u32 %s4503_s20, 16  ;;  %s900_s28 = sand.u32 1, %s899_s24 }
 0x15c   :  { %s890_s10 = sshll.u32 %s889_s5, 16  ;;  %s901_s7 = sadd.s32 32767, %s900_s28 }
 0x15d   :  { %s3256_s2 = sor.u32 %s890_s10, %s889_s5  ;;  %s902_s9 = sadd.s32 %s2767_s0, %s901_s7 }
 0x15e   :  { %4220 = sst [smem:[#allocation52_spill]] %s3256_s2  ;;  %s903_s18 = sand.u32 4294901760, %s902_s9 }
 0x15f   :  { %s2769_s4 = sld [smem:[#allocation2 + $0x36]]  ;;  %s4505_s18 = smov (%p898_p13, %s903_s18), 2143289344 }
 0x160   :  { %p915_p0 = scmp.ne.f32.partialorder %s2768_s14, %s2768_s14  ;;  %s916_s12 = sshrl.u32 %s2768_s14, 16 }
 0x161   :  { %s906_s13 = sshrl.u32 %s4505_s18, 16  ;;  %s917_s27 = sand.u32 1, %s916_s12 }
 0x162   :  { %s907_s29 = sshll.u32 %s906_s13, 16  ;;  %s918_s3 = sadd.s32 32767, %s917_s27 }
 0x163   :  { %s3258_s8 = sor.u32 %s907_s29, %s906_s13  ;;  %s919_s16 = sadd.s32 %s2768_s14, %s918_s3 }
 0x164   :  { %4221 = sst [smem:[#allocation53_spill]] %s3258_s8  ;;  %s920_s23 = sand.u32 4294901760, %s919_s16 }
 0x165   :  { %p932_p1 = scmp.ne.f32.partialorder %s2769_s4, %s2769_s4  ;;  %s4507_s23 = smov (%p915_p0, %s920_s23), 2143289344 }
 0x166   :  { %s933_s20 = sshrl.u32 %s2769_s4, 16  ;;  %s2770_s24 = sld [smem:[#allocation2 + $0x37]] }
 0x167   :  { %s923_s5 = sshrl.u32 %s4507_s23, 16  ;;  %s934_s28 = sand.u32 1, %s933_s20 }
 0x168   :  { %s924_s0 = sshll.u32 %s923_s5, 16  ;;  %s935_s10 = sadd.s32 32767, %s934_s28 }
 0x169   :  { %s3260_s7 = sor.u32 %s924_s0, %s923_s5  ;;  %s936_s9 = sadd.s32 %s2769_s4, %s935_s10 }
 0x16a   :  { %4222 = sst [smem:[#allocation54_spill]] %s3260_s7  ;;  %s937_s2 = sand.u32 4294901760, %s936_s9 }
 0x16b   :  { %s2771_s18 = sld [smem:[#allocation2 + $0x38]]  ;;  %s4509_s2 = smov (%p932_p1, %s937_s2), 2143289344 }
 0x16c   :  { %p949_p2 = scmp.ne.f32.partialorder %s2770_s24, %s2770_s24  ;;  %s950_s12 = sshrl.u32 %s2770_s24, 16 }
 0x16d   :  { %s940_s13 = sshrl.u32 %s4509_s2, 16  ;;  %s951_s27 = sand.u32 1, %s950_s12 }
 0x16e   :  { %s941_s14 = sshll.u32 %s940_s13, 16  ;;  %s952_s29 = sadd.s32 32767, %s951_s27 }
 0x16f   :  { %s3262_s3 = sor.u32 %s941_s14, %s940_s13  ;;  %s953_s16 = sadd.s32 %s2770_s24, %s952_s29 }
 0x170   :  { %4223 = sst [smem:[#allocation55_spill]] %s3262_s3  ;;  %s954_s8 = sand.u32 4294901760, %s953_s16 }
 0x171   :  { %p966_p3 = scmp.ne.f32.partialorder %s2771_s18, %s2771_s18  ;;  %s4511_s8 = smov (%p949_p2, %s954_s8), 2143289344 }
 0x172   :  { %s967_s23 = sshrl.u32 %s2771_s18, 16  ;;  %s2772_s20 = sld [smem:[#allocation2 + $0x39]] }
 0x173   :  { %s957_s5 = sshrl.u32 %s4511_s8, 16  ;;  %s968_s28 = sand.u32 1, %s967_s23 }
 0x174   :  { %s958_s4 = sshll.u32 %s957_s5, 16  ;;  %s969_s0 = sadd.s32 32767, %s968_s28 }
 0x175   :  { %s3264_s10 = sor.u32 %s958_s4, %s957_s5  ;;  %s970_s9 = sadd.s32 %s2771_s18, %s969_s0 }
 0x176   :  { %4224 = sst [smem:[#allocation56_spill]] %s3264_s10  ;;  %s971_s7 = sand.u32 4294901760, %s970_s9 }
 0x177   :  { %s2773_s2 = sld [smem:[#allocation2 + $0x3a]]  ;;  %s4513_s7 = smov (%p966_p3, %s971_s7), 2143289344 }
 0x178   :  { %p983_p4 = scmp.ne.f32.partialorder %s2772_s20, %s2772_s20  ;;  %s984_s12 = sshrl.u32 %s2772_s20, 16 }
 0x179   :  { %s974_s13 = sshrl.u32 %s4513_s7, 16  ;;  %s985_s27 = sand.u32 1, %s984_s12 }
 0x17a   :  { %s975_s24 = sshll.u32 %s974_s13, 16  ;;  %s986_s14 = sadd.s32 32767, %s985_s27 }
 0x17b   :  { %s3266_s29 = sor.u32 %s975_s24, %s974_s13  ;;  %s987_s16 = sadd.s32 %s2772_s20, %s986_s14 }
 0x17c   :  { %4225 = sst [smem:[#allocation57_spill]] %s3266_s29  ;;  %s988_s3 = sand.u32 4294901760, %s987_s16 }
 0x17d   :  { %p1000_p5 = scmp.ne.f32.partialorder %s2773_s2, %s2773_s2  ;;  %s4515_s3 = smov (%p983_p4, %s988_s3), 2143289344 }
 0x17e   :  { %s1001_s8 = sshrl.u32 %s2773_s2, 16  ;;  %s2774_s23 = sld [smem:[#allocation2 + $0x3b]] }
 0x17f   :  { %s991_s5 = sshrl.u32 %s4515_s3, 16  ;;  %s1002_s28 = sand.u32 1, %s1001_s8 }
 0x180   :  { %s992_s18 = sshll.u32 %s991_s5, 16  ;;  %s1003_s4 = sadd.s32 32767, %s1002_s28 }
 0x181   :  { %s3268_s0 = sor.u32 %s992_s18, %s991_s5  ;;  %s1004_s9 = sadd.s32 %s2773_s2, %s1003_s4 }
 0x182   :  { %4226 = sst [smem:[#allocation58_spill]] %s3268_s0  ;;  %s1005_s10 = sand.u32 4294901760, %s1004_s9 }
 0x183   :  { %s2775_s7 = sld [smem:[#allocation2 + $0x4]]  ;;  %s4517_s10 = smov (%p1000_p5, %s1005_s10), 2143289344 }
 0x184   :  { %p1017_p6 = scmp.ne.f32.partialorder %s2774_s23, %s2774_s23  ;;  %s1018_s12 = sshrl.u32 %s2774_s23, 16 }
 0x185   :  { %s1008_s13 = sshrl.u32 %s4517_s10, 16  ;;  %s1019_s27 = sand.u32 1, %s1018_s12 }
 0x186   :  { %s1009_s20 = sshll.u32 %s1008_s13, 16  ;;  %s1020_s24 = sadd.s32 32767, %s1019_s27 }
 0x187   :  { %s3270_s14 = sor.u32 %s1009_s20, %s1008_s13  ;;  %s1021_s16 = sadd.s32 %s2774_s23, %s1020_s24 }
 0x188   :  { %4227 = sst [smem:[#allocation59_spill]] %s3270_s14  ;;  %s1022_s29 = sand.u32 4294901760, %s1021_s16 }
 0x189   :  { %p1034_p7 = scmp.ne.f32.partialorder %s2775_s7, %s2775_s7  ;;  %s4519_s29 = smov (%p1017_p6, %s1022_s29), 2143289344 }
 0x18a   :  { %s1035_s3 = sshrl.u32 %s2775_s7, 16  ;;  %s2776_s8 = sld [smem:[#allocation2 + $0xe]] }
 0x18b   :  { %s1025_s5 = sshrl.u32 %s4519_s29, 16  ;;  %s1036_s28 = sand.u32 1, %s1035_s3 }
 0x18c   :  { %s1026_s2 = sshll.u32 %s1025_s5, 16  ;;  %s1037_s18 = sadd.s32 32767, %s1036_s28 }
 0x18d   :  { %s3272_s4 = sor.u32 %s1026_s2, %s1025_s5  ;;  %s1038_s9 = sadd.s32 %s2775_s7, %s1037_s18 }
 0x18e   :  { %4228 = sst [smem:[#allocation60_spill]] %s3272_s4  ;;  %s1039_s0 = sand.u32 4294901760, %s1038_s9 }
 0x18f   :  { %s2777_s10 = sld [smem:[#allocation2 + $0x3c]]  ;;  %s4521_s0 = smov (%p1034_p7, %s1039_s0), 2143289344 }
 0x190   :  { %p1050_p8 = scmp.ne.f32.partialorder %s2776_s8, %s2776_s8  ;;  %s1051_s12 = sshrl.u32 %s2776_s8, 16 }
 0x191   :  { %s1042_s13 = sshrl.u32 %s4521_s0, 16  ;;  %s1052_s27 = sand.u32 1, %s1051_s12 }
 0x192   :  { %s1043_s23 = sshll.u32 %s1042_s13, 16  ;;  %s1053_s20 = sadd.s32 32767, %s1052_s27 }
 0x193   :  { %s3274_s24 = sor.u32 %s1043_s23, %s1042_s13  ;;  %s1054_s16 = sadd.s32 %s2776_s8, %s1053_s20 }
 0x194   :  { %4229 = sst [smem:[#allocation61_spill]] %s3274_s24  ;;  %s1055_s14 = sand.u32 4294901760, %s1054_s16 }
 0x195   :  { %p1070_p9 = scmp.ne.f32.partialorder %s2777_s10, %s2777_s10  ;;  %s4523_s14 = smov (%p1050_p8, %s1055_s14), 2143289344 }
 0x196   :  { %s1071_s29 = sshrl.u32 %s2777_s10, 16  ;;  %s2778_s3 = sld [smem:[#allocation2 + $0x3d]] }
 0x197   :  { %s1058_s5 = sshrl.u32 %s4523_s14, 16  ;;  %s1072_s28 = sand.u32 1, %s1071_s29 }
 0x198   :  { %s1059_s7 = sshll.u32 %s1058_s5, 16  ;;  %s1073_s2 = sadd.s32 32767, %s1072_s28 }
 0x199   :  { %s3276_s18 = sor.u32 %s1059_s7, %s1058_s5  ;;  %s1074_s9 = sadd.s32 %s2777_s10, %s1073_s2 }
 0x19a   :  { %4230 = sst [smem:[#allocation62_spill]] %s3276_s18  ;;  %s1075_s4 = sand.u32 4294901760, %s1074_s9 }
 0x19b   :  { %s2779_s0 = sld [smem:[#allocation2 + $0x3e]]  ;;  %s4525_s4 = smov (%p1070_p9, %s1075_s4), 2143289344 }
 0x19c   :  { %p1087_p10 = scmp.ne.f32.partialorder %s2778_s3, %s2778_s3  ;;  %s1088_s12 = sshrl.u32 %s2778_s3, 16 }
 0x19d   :  { %s1078_s13 = sshrl.u32 %s4525_s4, 16  ;;  %s1089_s27 = sand.u32 1, %s1088_s12 }
 0x19e   :  { %s1079_s8 = sshll.u32 %s1078_s13, 16  ;;  %s1090_s23 = sadd.s32 32767, %s1089_s27 }
 0x19f   :  { %s3278_s20 = sor.u32 %s1079_s8, %s1078_s13  ;;  %s1091_s16 = sadd.s32 %s2778_s3, %s1090_s23 }
 0x1a0   :  { %4231 = sst [smem:[#allocation63_spill]] %s3278_s20  ;;  %s1092_s24 = sand.u32 4294901760, %s1091_s16 }
 0x1a1   :  { %p1104_p11 = scmp.ne.f32.partialorder %s2779_s0, %s2779_s0  ;;  %s4527_s24 = smov (%p1087_p10, %s1092_s24), 2143289344 }
 0x1a2   :  { %s1105_s14 = sshrl.u32 %s2779_s0, 16  ;;  %s2780_s29 = sld [smem:[#allocation2 + $0x3f]] }
 0x1a3   :  { %s1095_s5 = sshrl.u32 %s4527_s24, 16  ;;  %s1106_s28 = sand.u32 1, %s1105_s14 }
 0x1a4   :  { %s1096_s10 = sshll.u32 %s1095_s5, 16  ;;  %s1107_s7 = sadd.s32 32767, %s1106_s28 }
 0x1a5   :  { %s3280_s2 = sor.u32 %s1096_s10, %s1095_s5  ;;  %s1108_s9 = sadd.s32 %s2779_s0, %s1107_s7 }
 0x1a6   :  { %4232 = sst [smem:[#allocation64_spill]] %s3280_s2  ;;  %s1109_s18 = sand.u32 4294901760, %s1108_s9 }
 0x1a7   :  { %s2781_s4 = sld [smem:[#allocation2 + $0x40]]  ;;  %s4529_s18 = smov (%p1104_p11, %s1109_s18), 2143289344 }
 0x1a8   :  { %p1121_p12 = scmp.ne.f32.partialorder %s2780_s29, %s2780_s29  ;;  %s1122_s12 = sshrl.u32 %s2780_s29, 16 }
 0x1a9   :  { %s1112_s13 = sshrl.u32 %s4529_s18, 16  ;;  %s1123_s27 = sand.u32 1, %s1122_s12 }
 0x1aa   :  { %s1113_s3 = sshll.u32 %s1112_s13, 16  ;;  %s1124_s8 = sadd.s32 32767, %s1123_s27 }
 0x1ab   :  { %s3282_s23 = sor.u32 %s1113_s3, %s1112_s13  ;;  %s1125_s16 = sadd.s32 %s2780_s29, %s1124_s8 }
 0x1ac   :  { %4233 = sst [smem:[#allocation65_spill]] %s3282_s23  ;;  %s1126_s20 = sand.u32 4294901760, %s1125_s16 }
 0x1ad   :  { %p1138_p13 = scmp.ne.f32.partialorder %s2781_s4, %s2781_s4  ;;  %s4531_s20 = smov (%p1121_p12, %s1126_s20), 2143289344 }
 0x1ae   :  { %s1139_s24 = sshrl.u32 %s2781_s4, 16  ;;  %s2782_s14 = sld [smem:[#allocation2 + $0x41]] }
 0x1af   :  { %s1129_s5 = sshrl.u32 %s4531_s20, 16  ;;  %s1140_s28 = sand.u32 1, %s1139_s24 }
 0x1b0   :  { %s1130_s0 = sshll.u32 %s1129_s5, 16  ;;  %s1141_s10 = sadd.s32 32767, %s1140_s28 }
 0x1b1   :  { %s3284_s7 = sor.u32 %s1130_s0, %s1129_s5  ;;  %s1142_s9 = sadd.s32 %s2781_s4, %s1141_s10 }
 0x1b2   :  { %4234 = sst [smem:[#allocation66_spill]] %s3284_s7  ;;  %s1143_s2 = sand.u32 4294901760, %s1142_s9 }
 0x1b3   :  { %s2783_s18 = sld [smem:[#allocation2 + $0x42]]  ;;  %s4533_s2 = smov (%p1138_p13, %s1143_s2), 2143289344 }
 0x1b4   :  { %p1155_p0 = scmp.ne.f32.partialorder %s2782_s14, %s2782_s14  ;;  %s1156_s12 = sshrl.u32 %s2782_s14, 16 }
 0x1b5   :  { %s1146_s13 = sshrl.u32 %s4533_s2, 16  ;;  %s1157_s27 = sand.u32 1, %s1156_s12 }
 0x1b6   :  { %s1147_s29 = sshll.u32 %s1146_s13, 16  ;;  %s1158_s3 = sadd.s32 32767, %s1157_s27 }
 0x1b7   :  { %s3286_s8 = sor.u32 %s1147_s29, %s1146_s13  ;;  %s1159_s16 = sadd.s32 %s2782_s14, %s1158_s3 }
 0x1b8   :  { %4235 = sst [smem:[#allocation67_spill]] %s3286_s8  ;;  %s1160_s23 = sand.u32 4294901760, %s1159_s16 }
 0x1b9   :  { %p1172_p1 = scmp.ne.f32.partialorder %s2783_s18, %s2783_s18  ;;  %s4535_s23 = smov (%p1155_p0, %s1160_s23), 2143289344 }
 0x1ba   :  { %s1173_s20 = sshrl.u32 %s2783_s18, 16  ;;  %s2784_s24 = sld [smem:[#allocation2 + $0x43]] }
 0x1bb   :  { %s1163_s5 = sshrl.u32 %s4535_s23, 16  ;;  %s1174_s28 = sand.u32 1, %s1173_s20 }
 0x1bc   :  { %s1164_s4 = sshll.u32 %s1163_s5, 16  ;;  %s1175_s0 = sadd.s32 32767, %s1174_s28 }
 0x1bd   :  { %s3288_s10 = sor.u32 %s1164_s4, %s1163_s5  ;;  %s1176_s9 = sadd.s32 %s2783_s18, %s1175_s0 }
 0x1be   :  { %4236 = sst [smem:[#allocation68_spill]] %s3288_s10  ;;  %s1177_s7 = sand.u32 4294901760, %s1176_s9 }
 0x1bf   :  { %s2785_s2 = sld [smem:[#allocation2 + $0x44]]  ;;  %s4537_s7 = smov (%p1172_p1, %s1177_s7), 2143289344 }
 0x1c0   :  { %p1189_p2 = scmp.ne.f32.partialorder %s2784_s24, %s2784_s24  ;;  %s1190_s12 = sshrl.u32 %s2784_s24, 16 }
 0x1c1   :  { %s1180_s13 = sshrl.u32 %s4537_s7, 16  ;;  %s1191_s27 = sand.u32 1, %s1190_s12 }
 0x1c2   :  { %s1181_s14 = sshll.u32 %s1180_s13, 16  ;;  %s1192_s29 = sadd.s32 32767, %s1191_s27 }
 0x1c3   :  { %s3290_s3 = sor.u32 %s1181_s14, %s1180_s13  ;;  %s1193_s16 = sadd.s32 %s2784_s24, %s1192_s29 }
 0x1c4   :  { %4237 = sst [smem:[#allocation69_spill]] %s3290_s3  ;;  %s1194_s8 = sand.u32 4294901760, %s1193_s16 }
 0x1c5   :  { %p1206_p3 = scmp.ne.f32.partialorder %s2785_s2, %s2785_s2  ;;  %s4539_s8 = smov (%p1189_p2, %s1194_s8), 2143289344 }
 0x1c6   :  { %s1207_s23 = sshrl.u32 %s2785_s2, 16  ;;  %s2786_s20 = sld [smem:[#allocation2 + $0x45]] }
 0x1c7   :  { %s1197_s5 = sshrl.u32 %s4539_s8, 16  ;;  %s1208_s28 = sand.u32 1, %s1207_s23 }
 0x1c8   :  { %s1198_s18 = sshll.u32 %s1197_s5, 16  ;;  %s1209_s4 = sadd.s32 32767, %s1208_s28 }
 0x1c9   :  { %s3292_s0 = sor.u32 %s1198_s18, %s1197_s5  ;;  %s1210_s9 = sadd.s32 %s2785_s2, %s1209_s4 }
 0x1ca   :  { %4238 = sst [smem:[#allocation70_spill]] %s3292_s0  ;;  %s1211_s10 = sand.u32 4294901760, %s1210_s9 }
 0x1cb   :  { %s2787_s7 = sld [smem:[#allocation2 + $0x5]]  ;;  %s4541_s10 = smov (%p1206_p3, %s1211_s10), 2143289344 }
 0x1cc   :  { %p1223_p4 = scmp.ne.f32.partialorder %s2786_s20, %s2786_s20  ;;  %s1224_s12 = sshrl.u32 %s2786_s20, 16 }
 0x1cd   :  { %s1214_s13 = sshrl.u32 %s4541_s10, 16  ;;  %s1225_s27 = sand.u32 1, %s1224_s12 }
 0x1ce   :  { %s1215_s24 = sshll.u32 %s1214_s13, 16  ;;  %s1226_s14 = sadd.s32 32767, %s1225_s27 }
 0x1cf   :  { %s3294_s29 = sor.u32 %s1215_s24, %s1214_s13  ;;  %s1227_s16 = sadd.s32 %s2786_s20, %s1226_s14 }
 0x1d0   :  { %4239 = sst [smem:[#allocation71_spill]] %s3294_s29  ;;  %s1228_s3 = sand.u32 4294901760, %s1227_s16 }
 0x1d1   :  { %p1240_p5 = scmp.ne.f32.partialorder %s2787_s7, %s2787_s7  ;;  %s4543_s3 = smov (%p1223_p4, %s1228_s3), 2143289344 }
 0x1d2   :  { %s1241_s8 = sshrl.u32 %s2787_s7, 16  ;;  %s2788_s23 = sld [smem:[#allocation2 + $0xf]] }
 0x1d3   :  { %s1231_s5 = sshrl.u32 %s4543_s3, 16  ;;  %s1242_s28 = sand.u32 1, %s1241_s8 }
 0x1d4   :  { %s1232_s2 = sshll.u32 %s1231_s5, 16  ;;  %s1243_s18 = sadd.s32 32767, %s1242_s28 }
 0x1d5   :  { %s3296_s4 = sor.u32 %s1232_s2, %s1231_s5  ;;  %s1244_s9 = sadd.s32 %s2787_s7, %s1243_s18 }
 0x1d6   :  { %4240 = sst [smem:[#allocation72_spill]] %s3296_s4  ;;  %s1245_s0 = sand.u32 4294901760, %s1244_s9 }
 0x1d7   :  { %s2789_s10 = sld [smem:[#allocation2 + $0x46]]  ;;  %s4545_s0 = smov (%p1240_p5, %s1245_s0), 2143289344 }
 0x1d8   :  { %p1256_p6 = scmp.ne.f32.partialorder %s2788_s23, %s2788_s23  ;;  %s1257_s12 = sshrl.u32 %s2788_s23, 16 }
 0x1d9   :  { %s1248_s13 = sshrl.u32 %s4545_s0, 16  ;;  %s1258_s27 = sand.u32 1, %s1257_s12 }
 0x1da   :  { %s1249_s20 = sshll.u32 %s1248_s13, 16  ;;  %s1259_s24 = sadd.s32 32767, %s1258_s27 }
 0x1db   :  { %s3298_s14 = sor.u32 %s1249_s20, %s1248_s13  ;;  %s1260_s16 = sadd.s32 %s2788_s23, %s1259_s24 }
 0x1dc   :  { %4241 = sst [smem:[#allocation73_spill]] %s3298_s14  ;;  %s1261_s29 = sand.u32 4294901760, %s1260_s16 }
 0x1dd   :  { %p1276_p7 = scmp.ne.f32.partialorder %s2789_s10, %s2789_s10  ;;  %s4547_s29 = smov (%p1256_p6, %s1261_s29), 2143289344 }
 0x1de   :  { %s1277_s3 = sshrl.u32 %s2789_s10, 16  ;;  %s2790_s8 = sld [smem:[#allocation2 + $0x47]] }
 0x1df   :  { %s1264_s5 = sshrl.u32 %s4547_s29, 16  ;;  %s1278_s28 = sand.u32 1, %s1277_s3 }
 0x1e0   :  { %s1265_s7 = sshll.u32 %s1264_s5, 16  ;;  %s1279_s2 = sadd.s32 32767, %s1278_s28 }
 0x1e1   :  { %s3300_s18 = sor.u32 %s1265_s7, %s1264_s5  ;;  %s1280_s9 = sadd.s32 %s2789_s10, %s1279_s2 }
 0x1e2   :  { %4242 = sst [smem:[#allocation74_spill]] %s3300_s18  ;;  %s1281_s4 = sand.u32 4294901760, %s1280_s9 }
 0x1e3   :  { %s2791_s0 = sld [smem:[#allocation2 + $0x48]]  ;;  %s4549_s4 = smov (%p1276_p7, %s1281_s4), 2143289344 }
 0x1e4   :  { %p1293_p8 = scmp.ne.f32.partialorder %s2790_s8, %s2790_s8  ;;  %s1294_s12 = sshrl.u32 %s2790_s8, 16 }
 0x1e5   :  { %s1284_s13 = sshrl.u32 %s4549_s4, 16  ;;  %s1295_s27 = sand.u32 1, %s1294_s12 }
 0x1e6   :  { %s1285_s23 = sshll.u32 %s1284_s13, 16  ;;  %s1296_s20 = sadd.s32 32767, %s1295_s27 }
 0x1e7   :  { %s3302_s24 = sor.u32 %s1285_s23, %s1284_s13  ;;  %s1297_s16 = sadd.s32 %s2790_s8, %s1296_s20 }
 0x1e8   :  { %4243 = sst [smem:[#allocation75_spill]] %s3302_s24  ;;  %s1298_s14 = sand.u32 4294901760, %s1297_s16 }
 0x1e9   :  { %p1310_p9 = scmp.ne.f32.partialorder %s2791_s0, %s2791_s0  ;;  %s4551_s14 = smov (%p1293_p8, %s1298_s14), 2143289344 }
 0x1ea   :  { %s1311_s29 = sshrl.u32 %s2791_s0, 16  ;;  %s2792_s3 = sld [smem:[#allocation2 + $0x49]] }
 0x1eb   :  { %s1301_s5 = sshrl.u32 %s4551_s14, 16  ;;  %s1312_s28 = sand.u32 1, %s1311_s29 }
 0x1ec   :  { %s1302_s10 = sshll.u32 %s1301_s5, 16  ;;  %s1313_s7 = sadd.s32 32767, %s1312_s28 }
 0x1ed   :  { %s3304_s2 = sor.u32 %s1302_s10, %s1301_s5  ;;  %s1314_s9 = sadd.s32 %s2791_s0, %s1313_s7 }
 0x1ee   :  { %4244 = sst [smem:[#allocation76_spill]] %s3304_s2  ;;  %s1315_s18 = sand.u32 4294901760, %s1314_s9 }
 0x1ef   :  { %s2793_s4 = sld [smem:[#allocation2 + $0x4a]]  ;;  %s4553_s18 = smov (%p1310_p9, %s1315_s18), 2143289344 }
 0x1f0   :  { %p1327_p10 = scmp.ne.f32.partialorder %s2792_s3, %s2792_s3  ;;  %s1328_s12 = sshrl.u32 %s2792_s3, 16 }
 0x1f1   :  { %s1318_s13 = sshrl.u32 %s4553_s18, 16  ;;  %s1329_s27 = sand.u32 1, %s1328_s12 }
 0x1f2   :  { %s1319_s8 = sshll.u32 %s1318_s13, 16  ;;  %s1330_s23 = sadd.s32 32767, %s1329_s27 }
 0x1f3   :  { %s3306_s20 = sor.u32 %s1319_s8, %s1318_s13  ;;  %s1331_s16 = sadd.s32 %s2792_s3, %s1330_s23 }
 0x1f4   :  { %4245 = sst [smem:[#allocation77_spill]] %s3306_s20  ;;  %s1332_s24 = sand.u32 4294901760, %s1331_s16 }
 0x1f5   :  { %p1344_p11 = scmp.ne.f32.partialorder %s2793_s4, %s2793_s4  ;;  %s4555_s24 = smov (%p1327_p10, %s1332_s24), 2143289344 }
 0x1f6   :  { %s1345_s14 = sshrl.u32 %s2793_s4, 16  ;;  %s2794_s29 = sld [smem:[#allocation2 + $0x4b]] }
 0x1f7   :  { %s1335_s5 = sshrl.u32 %s4555_s24, 16  ;;  %s1346_s28 = sand.u32 1, %s1345_s14 }
 0x1f8   :  { %s1336_s0 = sshll.u32 %s1335_s5, 16  ;;  %s1347_s10 = sadd.s32 32767, %s1346_s28 }
 0x1f9   :  { %s3308_s7 = sor.u32 %s1336_s0, %s1335_s5  ;;  %s1348_s9 = sadd.s32 %s2793_s4, %s1347_s10 }
 0x1fa   :  { %4246 = sst [smem:[#allocation78_spill]] %s3308_s7  ;;  %s1349_s2 = sand.u32 4294901760, %s1348_s9 }
 0x1fb   :  { %s2795_s18 = sld [smem:[#allocation2 + $0x4c]]  ;;  %s4557_s2 = smov (%p1344_p11, %s1349_s2), 2143289344 }
 0x1fc   :  { %p1361_p12 = scmp.ne.f32.partialorder %s2794_s29, %s2794_s29  ;;  %s1362_s12 = sshrl.u32 %s2794_s29, 16 }
 0x1fd   :  { %s1352_s13 = sshrl.u32 %s4557_s2, 16  ;;  %s1363_s27 = sand.u32 1, %s1362_s12 }
 0x1fe   :  { %s1353_s3 = sshll.u32 %s1352_s13, 16  ;;  %s1364_s8 = sadd.s32 32767, %s1363_s27 }
 0x1ff   :  { %s3310_s23 = sor.u32 %s1353_s3, %s1352_s13  ;;  %s1365_s16 = sadd.s32 %s2794_s29, %s1364_s8 }
 0x200   :  { %4247 = sst [smem:[#allocation79_spill]] %s3310_s23  ;;  %s1366_s20 = sand.u32 4294901760, %s1365_s16 }
 0x201   :  { %p1378_p13 = scmp.ne.f32.partialorder %s2795_s18, %s2795_s18  ;;  %s4559_s20 = smov (%p1361_p12, %s1366_s20), 2143289344 }
 0x202   :  { %s1379_s24 = sshrl.u32 %s2795_s18, 16  ;;  %s2796_s14 = sld [smem:[#allocation2 + $0x4d]] }
 0x203   :  { %s1369_s5 = sshrl.u32 %s4559_s20, 16  ;;  %s1380_s28 = sand.u32 1, %s1379_s24 }
 0x204   :  { %s1370_s4 = sshll.u32 %s1369_s5, 16  ;;  %s1381_s0 = sadd.s32 32767, %s1380_s28 }
 0x205   :  { %s3312_s10 = sor.u32 %s1370_s4, %s1369_s5  ;;  %s1382_s9 = sadd.s32 %s2795_s18, %s1381_s0 }
 0x206   :  { %4248 = sst [smem:[#allocation80_spill]] %s3312_s10  ;;  %s1383_s7 = sand.u32 4294901760, %s1382_s9 }
 0x207   :  { %s2797_s2 = sld [smem:[#allocation2 + $0x4e]]  ;;  %s4561_s7 = smov (%p1378_p13, %s1383_s7), 2143289344 }
 0x208   :  { %p1395_p0 = scmp.ne.f32.partialorder %s2796_s14, %s2796_s14  ;;  %s1396_s12 = sshrl.u32 %s2796_s14, 16 }
 0x209   :  { %s1386_s13 = sshrl.u32 %s4561_s7, 16  ;;  %s1397_s27 = sand.u32 1, %s1396_s12 }
 0x20a   :  { %s1387_s29 = sshll.u32 %s1386_s13, 16  ;;  %s1398_s3 = sadd.s32 32767, %s1397_s27 }
 0x20b   :  { %s3314_s8 = sor.u32 %s1387_s29, %s1386_s13  ;;  %s1399_s16 = sadd.s32 %s2796_s14, %s1398_s3 }
 0x20c   :  { %4249 = sst [smem:[#allocation81_spill]] %s3314_s8  ;;  %s1400_s23 = sand.u32 4294901760, %s1399_s16 }
 0x20d   :  { %p1412_p1 = scmp.ne.f32.partialorder %s2797_s2, %s2797_s2  ;;  %s4563_s23 = smov (%p1395_p0, %s1400_s23), 2143289344 }
 0x20e   :  { %s1413_s20 = sshrl.u32 %s2797_s2, 16  ;;  %s2798_s24 = sld [smem:[#allocation2 + $0x4f]] }
 0x20f   :  { %s1403_s5 = sshrl.u32 %s4563_s23, 16  ;;  %s1414_s28 = sand.u32 1, %s1413_s20 }
 0x210   :  { %s1404_s18 = sshll.u32 %s1403_s5, 16  ;;  %s1415_s4 = sadd.s32 32767, %s1414_s28 }
 0x211   :  { %s3316_s0 = sor.u32 %s1404_s18, %s1403_s5  ;;  %s1416_s9 = sadd.s32 %s2797_s2, %s1415_s4 }
 0x212   :  { %4250 = sst [smem:[#allocation82_spill]] %s3316_s0  ;;  %s1417_s10 = sand.u32 4294901760, %s1416_s9 }
 0x213   :  { %s2799_s7 = sld [smem:[#allocation2 + $0x6]]  ;;  %s4565_s10 = smov (%p1412_p1, %s1417_s10), 2143289344 }
 0x214   :  { %p1429_p2 = scmp.ne.f32.partialorder %s2798_s24, %s2798_s24  ;;  %s1430_s12 = sshrl.u32 %s2798_s24, 16 }
 0x215   :  { %s1420_s13 = sshrl.u32 %s4565_s10, 16  ;;  %s1431_s27 = sand.u32 1, %s1430_s12 }
 0x216   :  { %s1421_s14 = sshll.u32 %s1420_s13, 16  ;;  %s1432_s29 = sadd.s32 32767, %s1431_s27 }
 0x217   :  { %s3318_s3 = sor.u32 %s1421_s14, %s1420_s13  ;;  %s1433_s16 = sadd.s32 %s2798_s24, %s1432_s29 }
 0x218   :  { %4251 = sst [smem:[#allocation83_spill]] %s3318_s3  ;;  %s1434_s8 = sand.u32 4294901760, %s1433_s16 }
 0x219   :  { %p1446_p3 = scmp.ne.f32.partialorder %s2799_s7, %s2799_s7  ;;  %s4567_s8 = smov (%p1429_p2, %s1434_s8), 2143289344 }
 0x21a   :  { %s1447_s23 = sshrl.u32 %s2799_s7, 16  ;;  %s2800_s20 = sld [smem:[#allocation2 + $0x10]] }
 0x21b   :  { %s1437_s5 = sshrl.u32 %s4567_s8, 16  ;;  %s1448_s28 = sand.u32 1, %s1447_s23 }
 0x21c   :  { %s1438_s2 = sshll.u32 %s1437_s5, 16  ;;  %s1449_s18 = sadd.s32 32767, %s1448_s28 }
 0x21d   :  { %s3320_s4 = sor.u32 %s1438_s2, %s1437_s5  ;;  %s1450_s9 = sadd.s32 %s2799_s7, %s1449_s18 }
 0x21e   :  { %4252 = sst [smem:[#allocation84_spill]] %s3320_s4  ;;  %s1451_s0 = sand.u32 4294901760, %s1450_s9 }
 0x21f   :  { %s2801_s10 = sld [smem:[#allocation2 + $0x50]]  ;;  %s4569_s0 = smov (%p1446_p3, %s1451_s0), 2143289344 }
 0x220   :  { %p1462_p4 = scmp.ne.f32.partialorder %s2800_s20, %s2800_s20  ;;  %s1463_s12 = sshrl.u32 %s2800_s20, 16 }
 0x221   :  { %s1454_s13 = sshrl.u32 %s4569_s0, 16  ;;  %s1464_s27 = sand.u32 1, %s1463_s12 }
 0x222   :  { %s1455_s24 = sshll.u32 %s1454_s13, 16  ;;  %s1465_s14 = sadd.s32 32767, %s1464_s27 }
 0x223   :  { %s3322_s29 = sor.u32 %s1455_s24, %s1454_s13  ;;  %s1466_s16 = sadd.s32 %s2800_s20, %s1465_s14 }
 0x224   :  { %4253 = sst [smem:[#allocation85_spill]] %s3322_s29  ;;  %s1467_s3 = sand.u32 4294901760, %s1466_s16 }
 0x225   :  { %p1482_p5 = scmp.ne.f32.partialorder %s2801_s10, %s2801_s10  ;;  %s4571_s3 = smov (%p1462_p4, %s1467_s3), 2143289344 }
 0x226   :  { %s1483_s8 = sshrl.u32 %s2801_s10, 16  ;;  %s2802_s23 = sld [smem:[#allocation2 + $0x51]] }
 0x227   :  { %s1470_s5 = sshrl.u32 %s4571_s3, 16  ;;  %s1484_s28 = sand.u32 1, %s1483_s8 }
 0x228   :  { %s1471_s7 = sshll.u32 %s1470_s5, 16  ;;  %s1485_s2 = sadd.s32 32767, %s1484_s28 }
 0x229   :  { %s3324_s18 = sor.u32 %s1471_s7, %s1470_s5  ;;  %s1486_s9 = sadd.s32 %s2801_s10, %s1485_s2 }
 0x22a   :  { %4254 = sst [smem:[#allocation86_spill]] %s3324_s18  ;;  %s1487_s4 = sand.u32 4294901760, %s1486_s9 }
 0x22b   :  { %s2803_s0 = sld [smem:[#allocation2 + $0x52]]  ;;  %s4573_s4 = smov (%p1482_p5, %s1487_s4), 2143289344 }
 0x22c   :  { %p1499_p6 = scmp.ne.f32.partialorder %s2802_s23, %s2802_s23  ;;  %s1500_s12 = sshrl.u32 %s2802_s23, 16 }
 0x22d   :  { %s1490_s13 = sshrl.u32 %s4573_s4, 16  ;;  %s1501_s27 = sand.u32 1, %s1500_s12 }
 0x22e   :  { %s1491_s20 = sshll.u32 %s1490_s13, 16  ;;  %s1502_s24 = sadd.s32 32767, %s1501_s27 }
 0x22f   :  { %s3326_s14 = sor.u32 %s1491_s20, %s1490_s13  ;;  %s1503_s16 = sadd.s32 %s2802_s23, %s1502_s24 }
 0x230   :  { %4255 = sst [smem:[#allocation87_spill]] %s3326_s14  ;;  %s1504_s29 = sand.u32 4294901760, %s1503_s16 }
 0x231   :  { %p1516_p7 = scmp.ne.f32.partialorder %s2803_s0, %s2803_s0  ;;  %s4575_s29 = smov (%p1499_p6, %s1504_s29), 2143289344 }
 0x232   :  { %s1517_s3 = sshrl.u32 %s2803_s0, 16  ;;  %s2804_s8 = sld [smem:[#allocation2 + $0x53]] }
 0x233   :  { %s1507_s5 = sshrl.u32 %s4575_s29, 16  ;;  %s1518_s28 = sand.u32 1, %s1517_s3 }
 0x234   :  { %s1508_s10 = sshll.u32 %s1507_s5, 16  ;;  %s1519_s7 = sadd.s32 32767, %s1518_s28 }
 0x235   :  { %s3328_s2 = sor.u32 %s1508_s10, %s1507_s5  ;;  %s1520_s9 = sadd.s32 %s2803_s0, %s1519_s7 }
 0x236   :  { %4256 = sst [smem:[#allocation88_spill]] %s3328_s2  ;;  %s1521_s18 = sand.u32 4294901760, %s1520_s9 }
 0x237   :  { %s2805_s4 = sld [smem:[#allocation2 + $0x54]]  ;;  %s4577_s18 = smov (%p1516_p7, %s1521_s18), 2143289344 }
 0x238   :  { %p1533_p8 = scmp.ne.f32.partialorder %s2804_s8, %s2804_s8  ;;  %s1534_s12 = sshrl.u32 %s2804_s8, 16 }
 0x239   :  { %s1524_s13 = sshrl.u32 %s4577_s18, 16  ;;  %s1535_s27 = sand.u32 1, %s1534_s12 }
 0x23a   :  { %s1525_s23 = sshll.u32 %s1524_s13, 16  ;;  %s1536_s20 = sadd.s32 32767, %s1535_s27 }
 0x23b   :  { %s3330_s24 = sor.u32 %s1525_s23, %s1524_s13  ;;  %s1537_s16 = sadd.s32 %s2804_s8, %s1536_s20 }
 0x23c   :  { %4257 = sst [smem:[#allocation89_spill]] %s3330_s24  ;;  %s1538_s14 = sand.u32 4294901760, %s1537_s16 }
 0x23d   :  { %p1550_p9 = scmp.ne.f32.partialorder %s2805_s4, %s2805_s4  ;;  %s4579_s14 = smov (%p1533_p8, %s1538_s14), 2143289344 }
 0x23e   :  { %s1551_s29 = sshrl.u32 %s2805_s4, 16  ;;  %s2806_s3 = sld [smem:[#allocation2 + $0x55]] }
 0x23f   :  { %s1541_s5 = sshrl.u32 %s4579_s14, 16  ;;  %s1552_s28 = sand.u32 1, %s1551_s29 }
 0x240   :  { %s1542_s0 = sshll.u32 %s1541_s5, 16  ;;  %s1553_s10 = sadd.s32 32767, %s1552_s28 }
 0x241   :  { %s3332_s7 = sor.u32 %s1542_s0, %s1541_s5  ;;  %s1554_s9 = sadd.s32 %s2805_s4, %s1553_s10 }
 0x242   :  { %4258 = sst [smem:[#allocation90_spill]] %s3332_s7  ;;  %s1555_s2 = sand.u32 4294901760, %s1554_s9 }
 0x243   :  { %s2807_s18 = sld [smem:[#allocation2 + $0x56]]  ;;  %s4581_s2 = smov (%p1550_p9, %s1555_s2), 2143289344 }
 0x244   :  { %p1567_p10 = scmp.ne.f32.partialorder %s2806_s3, %s2806_s3  ;;  %s1568_s12 = sshrl.u32 %s2806_s3, 16 }
 0x245   :  { %s1558_s13 = sshrl.u32 %s4581_s2, 16  ;;  %s1569_s27 = sand.u32 1, %s1568_s12 }
 0x246   :  { %s1559_s8 = sshll.u32 %s1558_s13, 16  ;;  %s1570_s23 = sadd.s32 32767, %s1569_s27 }
 0x247   :  { %s3334_s20 = sor.u32 %s1559_s8, %s1558_s13  ;;  %s1571_s16 = sadd.s32 %s2806_s3, %s1570_s23 }
 0x248   :  { %4259 = sst [smem:[#allocation91_spill]] %s3334_s20  ;;  %s1572_s24 = sand.u32 4294901760, %s1571_s16 }
 0x249   :  { %p1584_p11 = scmp.ne.f32.partialorder %s2807_s18, %s2807_s18  ;;  %s4583_s24 = smov (%p1567_p10, %s1572_s24), 2143289344 }
 0x24a   :  { %s1585_s14 = sshrl.u32 %s2807_s18, 16  ;;  %s2808_s29 = sld [smem:[#allocation2 + $0x57]] }
 0x24b   :  { %s1575_s5 = sshrl.u32 %s4583_s24, 16  ;;  %s1586_s28 = sand.u32 1, %s1585_s14 }
 0x24c   :  { %s1576_s4 = sshll.u32 %s1575_s5, 16  ;;  %s1587_s0 = sadd.s32 32767, %s1586_s28 }
 0x24d   :  { %s3336_s10 = sor.u32 %s1576_s4, %s1575_s5  ;;  %s1588_s9 = sadd.s32 %s2807_s18, %s1587_s0 }
 0x24e   :  { %4260 = sst [smem:[#allocation92_spill]] %s3336_s10  ;;  %s1589_s7 = sand.u32 4294901760, %s1588_s9 }
 0x24f   :  { %s2809_s2 = sld [smem:[#allocation2 + $0x58]]  ;;  %s4585_s7 = smov (%p1584_p11, %s1589_s7), 2143289344 }
 0x250   :  { %p1601_p12 = scmp.ne.f32.partialorder %s2808_s29, %s2808_s29  ;;  %s1602_s12 = sshrl.u32 %s2808_s29, 16 }
 0x251   :  { %s1592_s13 = sshrl.u32 %s4585_s7, 16  ;;  %s1603_s27 = sand.u32 1, %s1602_s12 }
 0x252   :  { %s1593_s3 = sshll.u32 %s1592_s13, 16  ;;  %s1604_s8 = sadd.s32 32767, %s1603_s27 }
 0x253   :  { %s3338_s23 = sor.u32 %s1593_s3, %s1592_s13  ;;  %s1605_s16 = sadd.s32 %s2808_s29, %s1604_s8 }
 0x254   :  { %4261 = sst [smem:[#allocation93_spill]] %s3338_s23  ;;  %s1606_s20 = sand.u32 4294901760, %s1605_s16 }
 0x255   :  { %p1618_p13 = scmp.ne.f32.partialorder %s2809_s2, %s2809_s2  ;;  %s4587_s20 = smov (%p1601_p12, %s1606_s20), 2143289344 }
 0x256   :  { %s1619_s24 = sshrl.u32 %s2809_s2, 16  ;;  %s2810_s14 = sld [smem:[#allocation2 + $0x59]] }
 0x257   :  { %s1609_s5 = sshrl.u32 %s4587_s20, 16  ;;  %s1620_s28 = sand.u32 1, %s1619_s24 }
 0x258   :  { %s1610_s18 = sshll.u32 %s1609_s5, 16  ;;  %s1621_s4 = sadd.s32 32767, %s1620_s28 }
 0x259   :  { %s3340_s0 = sor.u32 %s1610_s18, %s1609_s5  ;;  %s1622_s9 = sadd.s32 %s2809_s2, %s1621_s4 }
 0x25a   :  { %4262 = sst [smem:[#allocation94_spill]] %s3340_s0  ;;  %s1623_s10 = sand.u32 4294901760, %s1622_s9 }
 0x25b   :  { %s2811_s7 = sld [smem:[#allocation2 + $0x7]]  ;;  %s4589_s10 = smov (%p1618_p13, %s1623_s10), 2143289344 }
 0x25c   :  { %p1635_p0 = scmp.ne.f32.partialorder %s2810_s14, %s2810_s14  ;;  %s1636_s12 = sshrl.u32 %s2810_s14, 16 }
 0x25d   :  { %s1626_s13 = sshrl.u32 %s4589_s10, 16  ;;  %s1637_s27 = sand.u32 1, %s1636_s12 }
 0x25e   :  { %s1627_s29 = sshll.u32 %s1626_s13, 16  ;;  %s1638_s3 = sadd.s32 32767, %s1637_s27 }
 0x25f   :  { %s3342_s8 = sor.u32 %s1627_s29, %s1626_s13  ;;  %s1639_s16 = sadd.s32 %s2810_s14, %s1638_s3 }
 0x260   :  { %4263 = sst [smem:[#allocation95_spill]] %s3342_s8  ;;  %s1640_s23 = sand.u32 4294901760, %s1639_s16 }
 0x261   :  { %p1652_p1 = scmp.ne.f32.partialorder %s2811_s7, %s2811_s7  ;;  %s4591_s23 = smov (%p1635_p0, %s1640_s23), 2143289344 }
 0x262   :  { %s1653_s20 = sshrl.u32 %s2811_s7, 16  ;;  %s2812_s24 = sld [smem:[#allocation2 + $0x11]] }
 0x263   :  { %s1643_s5 = sshrl.u32 %s4591_s23, 16  ;;  %s1654_s28 = sand.u32 1, %s1653_s20 }
 0x264   :  { %s1644_s2 = sshll.u32 %s1643_s5, 16  ;;  %s1655_s18 = sadd.s32 32767, %s1654_s28 }
 0x265   :  { %s3344_s4 = sor.u32 %s1644_s2, %s1643_s5  ;;  %s1656_s9 = sadd.s32 %s2811_s7, %s1655_s18 }
 0x266   :  { %4264 = sst [smem:[#allocation96_spill]] %s3344_s4  ;;  %s1657_s0 = sand.u32 4294901760, %s1656_s9 }
 0x267   :  { %s2813_s10 = sld [smem:[#allocation2 + $0x5a]]  ;;  %s4593_s0 = smov (%p1652_p1, %s1657_s0), 2143289344 }
 0x268   :  { %p1668_p2 = scmp.ne.f32.partialorder %s2812_s24, %s2812_s24  ;;  %s1669_s12 = sshrl.u32 %s2812_s24, 16 }
 0x269   :  { %s1660_s13 = sshrl.u32 %s4593_s0, 16  ;;  %s1670_s27 = sand.u32 1, %s1669_s12 }
 0x26a   :  { %s1661_s14 = sshll.u32 %s1660_s13, 16  ;;  %s1671_s29 = sadd.s32 32767, %s1670_s27 }
 0x26b   :  { %s3346_s3 = sor.u32 %s1661_s14, %s1660_s13  ;;  %s1672_s16 = sadd.s32 %s2812_s24, %s1671_s29 }
 0x26c   :  { %4265 = sst [smem:[#allocation97_spill]] %s3346_s3  ;;  %s1673_s8 = sand.u32 4294901760, %s1672_s16 }
 0x26d   :  { %p1688_p3 = scmp.ne.f32.partialorder %s2813_s10, %s2813_s10  ;;  %s4595_s8 = smov (%p1668_p2, %s1673_s8), 2143289344 }
 0x26e   :  { %s1689_s23 = sshrl.u32 %s2813_s10, 16  ;;  %s2814_s20 = sld [smem:[#allocation2 + $0x5b]] }
 0x26f   :  { %s1676_s5 = sshrl.u32 %s4595_s8, 16  ;;  %s1690_s28 = sand.u32 1, %s1689_s23 }
 0x270   :  { %s1677_s7 = sshll.u32 %s1676_s5, 16  ;;  %s1691_s2 = sadd.s32 32767, %s1690_s28 }
 0x271   :  { %s3348_s18 = sor.u32 %s1677_s7, %s1676_s5  ;;  %s1692_s9 = sadd.s32 %s2813_s10, %s1691_s2 }
 0x272   :  { %4266 = sst [smem:[#allocation98_spill]] %s3348_s18  ;;  %s1693_s4 = sand.u32 4294901760, %s1692_s9 }
 0x273   :  { %s2815_s0 = sld [smem:[#allocation2 + $0x5c]]  ;;  %s4597_s4 = smov (%p1688_p3, %s1693_s4), 2143289344 }
 0x274   :  { %p1705_p4 = scmp.ne.f32.partialorder %s2814_s20, %s2814_s20  ;;  %s1706_s12 = sshrl.u32 %s2814_s20, 16 }
 0x275   :  { %s1696_s13 = sshrl.u32 %s4597_s4, 16  ;;  %s1707_s27 = sand.u32 1, %s1706_s12 }
 0x276   :  { %s1697_s24 = sshll.u32 %s1696_s13, 16  ;;  %s1708_s14 = sadd.s32 32767, %s1707_s27 }
 0x277   :  { %s3350_s29 = sor.u32 %s1697_s24, %s1696_s13  ;;  %s1709_s16 = sadd.s32 %s2814_s20, %s1708_s14 }
 0x278   :  { %4267 = sst [smem:[#allocation99_spill]] %s3350_s29  ;;  %s1710_s3 = sand.u32 4294901760, %s1709_s16 }
 0x279   :  { %p1722_p5 = scmp.ne.f32.partialorder %s2815_s0, %s2815_s0  ;;  %s4599_s3 = smov (%p1705_p4, %s1710_s3), 2143289344 }
 0x27a   :  { %s1723_s8 = sshrl.u32 %s2815_s0, 16  ;;  %s2816_s23 = sld [smem:[#allocation2 + $0x5d]] }
 0x27b   :  { %s1713_s5 = sshrl.u32 %s4599_s3, 16  ;;  %s1724_s28 = sand.u32 1, %s1723_s8 }
 0x27c   :  { %s1714_s10 = sshll.u32 %s1713_s5, 16  ;;  %s1725_s7 = sadd.s32 32767, %s1724_s28 }
 0x27d   :  { %s3352_s2 = sor.u32 %s1714_s10, %s1713_s5  ;;  %s1726_s9 = sadd.s32 %s2815_s0, %s1725_s7 }
 0x27e   :  { %4268 = sst [smem:[#allocation100_spill]] %s3352_s2  ;;  %s1727_s18 = sand.u32 4294901760, %s1726_s9 }
 0x27f   :  { %s2817_s4 = sld [smem:[#allocation2 + $0x5e]]  ;;  %s4601_s18 = smov (%p1722_p5, %s1727_s18), 2143289344 }
 0x280   :  { %p1739_p6 = scmp.ne.f32.partialorder %s2816_s23, %s2816_s23  ;;  %s1740_s12 = sshrl.u32 %s2816_s23, 16 }
 0x281   :  { %s1730_s13 = sshrl.u32 %s4601_s18, 16  ;;  %s1741_s27 = sand.u32 1, %s1740_s12 }
 0x282   :  { %s1731_s20 = sshll.u32 %s1730_s13, 16  ;;  %s1742_s24 = sadd.s32 32767, %s1741_s27 }
 0x283   :  { %s3354_s14 = sor.u32 %s1731_s20, %s1730_s13  ;;  %s1743_s16 = sadd.s32 %s2816_s23, %s1742_s24 }
 0x284   :  { %4269 = sst [smem:[#allocation101_spill]] %s3354_s14  ;;  %s1744_s29 = sand.u32 4294901760, %s1743_s16 }
 0x285   :  { %p1756_p7 = scmp.ne.f32.partialorder %s2817_s4, %s2817_s4  ;;  %s4603_s29 = smov (%p1739_p6, %s1744_s29), 2143289344 }
 0x286   :  { %s1757_s3 = sshrl.u32 %s2817_s4, 16  ;;  %s2818_s8 = sld [smem:[#allocation2 + $0x5f]] }
 0x287   :  { %s1747_s5 = sshrl.u32 %s4603_s29, 16  ;;  %s1758_s28 = sand.u32 1, %s1757_s3 }
 0x288   :  { %s1748_s0 = sshll.u32 %s1747_s5, 16  ;;  %s1759_s10 = sadd.s32 32767, %s1758_s28 }
 0x289   :  { %s3356_s7 = sor.u32 %s1748_s0, %s1747_s5  ;;  %s1760_s9 = sadd.s32 %s2817_s4, %s1759_s10 }
 0x28a   :  { %4270 = sst [smem:[#allocation102_spill]] %s3356_s7  ;;  %s1761_s2 = sand.u32 4294901760, %s1760_s9 }
 0x28b   :  { %s2819_s18 = sld [smem:[#allocation2 + $0x60]]  ;;  %s4605_s2 = smov (%p1756_p7, %s1761_s2), 2143289344 }
 0x28c   :  { %p1773_p8 = scmp.ne.f32.partialorder %s2818_s8, %s2818_s8  ;;  %s1774_s12 = sshrl.u32 %s2818_s8, 16 }
 0x28d   :  { %s1764_s13 = sshrl.u32 %s4605_s2, 16  ;;  %s1775_s27 = sand.u32 1, %s1774_s12 }
 0x28e   :  { %s1765_s23 = sshll.u32 %s1764_s13, 16  ;;  %s1776_s20 = sadd.s32 32767, %s1775_s27 }
 0x28f   :  { %s3358_s24 = sor.u32 %s1765_s23, %s1764_s13  ;;  %s1777_s16 = sadd.s32 %s2818_s8, %s1776_s20 }
 0x290   :  { %4271 = sst [smem:[#allocation103_spill]] %s3358_s24  ;;  %s1778_s14 = sand.u32 4294901760, %s1777_s16 }
 0x291   :  { %p1790_p9 = scmp.ne.f32.partialorder %s2819_s18, %s2819_s18  ;;  %s4607_s14 = smov (%p1773_p8, %s1778_s14), 2143289344 }
 0x292   :  { %s1791_s29 = sshrl.u32 %s2819_s18, 16  ;;  %s2820_s3 = sld [smem:[#allocation2 + $0x61]] }
 0x293   :  { %s1781_s5 = sshrl.u32 %s4607_s14, 16  ;;  %s1792_s28 = sand.u32 1, %s1791_s29 }
 0x294   :  { %s1782_s4 = sshll.u32 %s1781_s5, 16  ;;  %s1793_s0 = sadd.s32 32767, %s1792_s28 }
 0x295   :  { %s3360_s10 = sor.u32 %s1782_s4, %s1781_s5  ;;  %s1794_s9 = sadd.s32 %s2819_s18, %s1793_s0 }
 0x296   :  { %4272 = sst [smem:[#allocation104_spill]] %s3360_s10  ;;  %s1795_s7 = sand.u32 4294901760, %s1794_s9 }
 0x297   :  { %s2821_s2 = sld [smem:[#allocation2 + $0x62]]  ;;  %s4609_s7 = smov (%p1790_p9, %s1795_s7), 2143289344 }
 0x298   :  { %p1807_p10 = scmp.ne.f32.partialorder %s2820_s3, %s2820_s3  ;;  %s1808_s12 = sshrl.u32 %s2820_s3, 16 }
 0x299   :  { %s1798_s13 = sshrl.u32 %s4609_s7, 16  ;;  %s1809_s27 = sand.u32 1, %s1808_s12 }
 0x29a   :  { %s1799_s8 = sshll.u32 %s1798_s13, 16  ;;  %s1810_s23 = sadd.s32 32767, %s1809_s27 }
 0x29b   :  { %s3362_s20 = sor.u32 %s1799_s8, %s1798_s13  ;;  %s1811_s16 = sadd.s32 %s2820_s3, %s1810_s23 }
 0x29c   :  { %4273 = sst [smem:[#allocation105_spill]] %s3362_s20  ;;  %s1812_s24 = sand.u32 4294901760, %s1811_s16 }
 0x29d   :  { %p1824_p11 = scmp.ne.f32.partialorder %s2821_s2, %s2821_s2  ;;  %s4611_s24 = smov (%p1807_p10, %s1812_s24), 2143289344 }
 0x29e   :  { %s1825_s14 = sshrl.u32 %s2821_s2, 16  ;;  %s2822_s29 = sld [smem:[#allocation2 + $0x63]] }
 0x29f   :  { %s1815_s5 = sshrl.u32 %s4611_s24, 16  ;;  %s1826_s28 = sand.u32 1, %s1825_s14 }
 0x2a0   :  { %s1816_s18 = sshll.u32 %s1815_s5, 16  ;;  %s1827_s4 = sadd.s32 32767, %s1826_s28 }
 0x2a1   :  { %s3364_s0 = sor.u32 %s1816_s18, %s1815_s5  ;;  %s1828_s9 = sadd.s32 %s2821_s2, %s1827_s4 }
 0x2a2   :  { %4274 = sst [smem:[#allocation106_spill]] %s3364_s0  ;;  %s1829_s10 = sand.u32 4294901760, %s1828_s9 }
 0x2a3   :  { %s2823_s7 = sld [smem:[#allocation2 + $0x8]]  ;;  %s4613_s10 = smov (%p1824_p11, %s1829_s10), 2143289344 }
 0x2a4   :  { %p1841_p12 = scmp.ne.f32.partialorder %s2822_s29, %s2822_s29  ;;  %s1842_s12 = sshrl.u32 %s2822_s29, 16 }
 0x2a5   :  { %s1832_s13 = sshrl.u32 %s4613_s10, 16  ;;  %s1843_s27 = sand.u32 1, %s1842_s12 }
 0x2a6   :  { %s1833_s3 = sshll.u32 %s1832_s13, 16  ;;  %s1844_s8 = sadd.s32 32767, %s1843_s27 }
 0x2a7   :  { %s3366_s23 = sor.u32 %s1833_s3, %s1832_s13  ;;  %s1845_s16 = sadd.s32 %s2822_s29, %s1844_s8 }
 0x2a8   :  { %4275 = sst [smem:[#allocation107_spill]] %s3366_s23  ;;  %s1846_s20 = sand.u32 4294901760, %s1845_s16 }
 0x2a9   :  { %p1858_p13 = scmp.ne.f32.partialorder %s2823_s7, %s2823_s7  ;;  %s4615_s20 = smov (%p1841_p12, %s1846_s20), 2143289344 }
 0x2aa   :  { %s1859_s24 = sshrl.u32 %s2823_s7, 16  ;;  %s2824_s14 = sld [smem:[#allocation2 + $0x12]] }
 0x2ab   :  { %s1849_s5 = sshrl.u32 %s4615_s20, 16  ;;  %s1860_s28 = sand.u32 1, %s1859_s24 }
 0x2ac   :  { %s1850_s2 = sshll.u32 %s1849_s5, 16  ;;  %s1861_s18 = sadd.s32 32767, %s1860_s28 }
 0x2ad   :  { %s3368_s4 = sor.u32 %s1850_s2, %s1849_s5  ;;  %s1862_s9 = sadd.s32 %s2823_s7, %s1861_s18 }
 0x2ae   :  { %4276 = sst [smem:[#allocation108_spill]] %s3368_s4  ;;  %s1863_s0 = sand.u32 4294901760, %s1862_s9 }
 0x2af   :  { %s2825_s10 = sld [smem:[#allocation2 + $0x64]]  ;;  %s4617_s0 = smov (%p1858_p13, %s1863_s0), 2143289344 }
 0x2b0   :  { %p1874_p0 = scmp.ne.f32.partialorder %s2824_s14, %s2824_s14  ;;  %s1875_s12 = sshrl.u32 %s2824_s14, 16 }
 0x2b1   :  { %s1866_s13 = sshrl.u32 %s4617_s0, 16  ;;  %s1876_s27 = sand.u32 1, %s1875_s12 }
 0x2b2   :  { %s1867_s29 = sshll.u32 %s1866_s13, 16  ;;  %s1877_s3 = sadd.s32 32767, %s1876_s27 }
 0x2b3   :  { %s3370_s8 = sor.u32 %s1867_s29, %s1866_s13  ;;  %s1878_s16 = sadd.s32 %s2824_s14, %s1877_s3 }
 0x2b4   :  { %4277 = sst [smem:[#allocation109_spill]] %s3370_s8  ;;  %s1879_s23 = sand.u32 4294901760, %s1878_s16 }
 0x2b5   :  { %p1894_p1 = scmp.ne.f32.partialorder %s2825_s10, %s2825_s10  ;;  %s4619_s23 = smov (%p1874_p0, %s1879_s23), 2143289344 }
 0x2b6   :  { %s1895_s20 = sshrl.u32 %s2825_s10, 16  ;;  %s2826_s24 = sld [smem:[#allocation2 + $0x65]] }
 0x2b7   :  { %s1882_s5 = sshrl.u32 %s4619_s23, 16  ;;  %s1896_s28 = sand.u32 1, %s1895_s20 }
 0x2b8   :  { %s1883_s7 = sshll.u32 %s1882_s5, 16  ;;  %s1897_s2 = sadd.s32 32767, %s1896_s28 }
 0x2b9   :  { %s3372_s18 = sor.u32 %s1883_s7, %s1882_s5  ;;  %s1898_s9 = sadd.s32 %s2825_s10, %s1897_s2 }
 0x2ba   :  { %4278 = sst [smem:[#allocation110_spill]] %s3372_s18  ;;  %s1899_s4 = sand.u32 4294901760, %s1898_s9 }
 0x2bb   :  { %s2827_s0 = sld [smem:[#allocation2 + $0x66]]  ;;  %s4621_s4 = smov (%p1894_p1, %s1899_s4), 2143289344 }
 0x2bc   :  { %p1911_p2 = scmp.ne.f32.partialorder %s2826_s24, %s2826_s24  ;;  %s1912_s12 = sshrl.u32 %s2826_s24, 16 }
 0x2bd   :  { %s1902_s13 = sshrl.u32 %s4621_s4, 16  ;;  %s1913_s27 = sand.u32 1, %s1912_s12 }
 0x2be   :  { %s1903_s14 = sshll.u32 %s1902_s13, 16  ;;  %s1914_s29 = sadd.s32 32767, %s1913_s27 }
 0x2bf   :  { %s3374_s3 = sor.u32 %s1903_s14, %s1902_s13  ;;  %s1915_s16 = sadd.s32 %s2826_s24, %s1914_s29 }
 0x2c0   :  { %4279 = sst [smem:[#allocation111_spill]] %s3374_s3  ;;  %s1916_s8 = sand.u32 4294901760, %s1915_s16 }
 0x2c1   :  { %p1928_p3 = scmp.ne.f32.partialorder %s2827_s0, %s2827_s0  ;;  %s4623_s8 = smov (%p1911_p2, %s1916_s8), 2143289344 }
 0x2c2   :  { %s1929_s23 = sshrl.u32 %s2827_s0, 16  ;;  %s2828_s20 = sld [smem:[#allocation2 + $0x67]] }
 0x2c3   :  { %s1919_s5 = sshrl.u32 %s4623_s8, 16  ;;  %s1930_s28 = sand.u32 1, %s1929_s23 }
 0x2c4   :  { %s1920_s10 = sshll.u32 %s1919_s5, 16  ;;  %s1931_s7 = sadd.s32 32767, %s1930_s28 }
 0x2c5   :  { %s3376_s2 = sor.u32 %s1920_s10, %s1919_s5  ;;  %s1932_s9 = sadd.s32 %s2827_s0, %s1931_s7 }
 0x2c6   :  { %4280 = sst [smem:[#allocation112_spill]] %s3376_s2  ;;  %s1933_s18 = sand.u32 4294901760, %s1932_s9 }
 0x2c7   :  { %s2829_s4 = sld [smem:[#allocation2 + $0x68]]  ;;  %s4625_s18 = smov (%p1928_p3, %s1933_s18), 2143289344 }
 0x2c8   :  { %p1945_p4 = scmp.ne.f32.partialorder %s2828_s20, %s2828_s20  ;;  %s1946_s12 = sshrl.u32 %s2828_s20, 16 }
 0x2c9   :  { %s1936_s13 = sshrl.u32 %s4625_s18, 16  ;;  %s1947_s27 = sand.u32 1, %s1946_s12 }
 0x2ca   :  { %s1937_s24 = sshll.u32 %s1936_s13, 16  ;;  %s1948_s14 = sadd.s32 32767, %s1947_s27 }
 0x2cb   :  { %s3378_s29 = sor.u32 %s1937_s24, %s1936_s13  ;;  %s1949_s16 = sadd.s32 %s2828_s20, %s1948_s14 }
 0x2cc   :  { %4281 = sst [smem:[#allocation113_spill]] %s3378_s29  ;;  %s1950_s3 = sand.u32 4294901760, %s1949_s16 }
 0x2cd   :  { %p1962_p5 = scmp.ne.f32.partialorder %s2829_s4, %s2829_s4  ;;  %s4627_s3 = smov (%p1945_p4, %s1950_s3), 2143289344 }
 0x2ce   :  { %s1963_s8 = sshrl.u32 %s2829_s4, 16  ;;  %s2830_s23 = sld [smem:[#allocation2 + $0x69]] }
 0x2cf   :  { %s1953_s5 = sshrl.u32 %s4627_s3, 16  ;;  %s1964_s28 = sand.u32 1, %s1963_s8 }
 0x2d0   :  { %s1954_s0 = sshll.u32 %s1953_s5, 16  ;;  %s1965_s10 = sadd.s32 32767, %s1964_s28 }
 0x2d1   :  { %s3380_s7 = sor.u32 %s1954_s0, %s1953_s5  ;;  %s1966_s9 = sadd.s32 %s2829_s4, %s1965_s10 }
 0x2d2   :  { %4282 = sst [smem:[#allocation114_spill]] %s3380_s7  ;;  %s1967_s2 = sand.u32 4294901760, %s1966_s9 }
 0x2d3   :  { %s2831_s18 = sld [smem:[#allocation2 + $0x6a]]  ;;  %s4629_s2 = smov (%p1962_p5, %s1967_s2), 2143289344 }
 0x2d4   :  { %p1979_p6 = scmp.ne.f32.partialorder %s2830_s23, %s2830_s23  ;;  %s1980_s12 = sshrl.u32 %s2830_s23, 16 }
 0x2d5   :  { %s1970_s13 = sshrl.u32 %s4629_s2, 16  ;;  %s1981_s27 = sand.u32 1, %s1980_s12 }
 0x2d6   :  { %s1971_s20 = sshll.u32 %s1970_s13, 16  ;;  %s1982_s24 = sadd.s32 32767, %s1981_s27 }
 0x2d7   :  { %s3382_s14 = sor.u32 %s1971_s20, %s1970_s13  ;;  %s1983_s16 = sadd.s32 %s2830_s23, %s1982_s24 }
 0x2d8   :  { %4283 = sst [smem:[#allocation115_spill]] %s3382_s14  ;;  %s1984_s29 = sand.u32 4294901760, %s1983_s16 }
 0x2d9   :  { %p1996_p7 = scmp.ne.f32.partialorder %s2831_s18, %s2831_s18  ;;  %s4631_s29 = smov (%p1979_p6, %s1984_s29), 2143289344 }
 0x2da   :  { %s1997_s3 = sshrl.u32 %s2831_s18, 16  ;;  %s2832_s8 = sld [smem:[#allocation2 + $0x6b]] }
 0x2db   :  { %s1987_s5 = sshrl.u32 %s4631_s29, 16  ;;  %s1998_s28 = sand.u32 1, %s1997_s3 }
 0x2dc   :  { %s1988_s4 = sshll.u32 %s1987_s5, 16  ;;  %s1999_s0 = sadd.s32 32767, %s1998_s28 }
 0x2dd   :  { %s3384_s10 = sor.u32 %s1988_s4, %s1987_s5  ;;  %s2000_s9 = sadd.s32 %s2831_s18, %s1999_s0 }
 0x2de   :  { %4284 = sst [smem:[#allocation116_spill]] %s3384_s10  ;;  %s2001_s7 = sand.u32 4294901760, %s2000_s9 }
 0x2df   :  { %s2833_s2 = sld [smem:[#allocation2 + $0x6c]]  ;;  %s4633_s7 = smov (%p1996_p7, %s2001_s7), 2143289344 }
 0x2e0   :  { %p2013_p8 = scmp.ne.f32.partialorder %s2832_s8, %s2832_s8  ;;  %s2014_s12 = sshrl.u32 %s2832_s8, 16 }
 0x2e1   :  { %s2004_s13 = sshrl.u32 %s4633_s7, 16  ;;  %s2015_s27 = sand.u32 1, %s2014_s12 }
 0x2e2   :  { %s2005_s23 = sshll.u32 %s2004_s13, 16  ;;  %s2016_s20 = sadd.s32 32767, %s2015_s27 }
 0x2e3   :  { %s3386_s24 = sor.u32 %s2005_s23, %s2004_s13  ;;  %s2017_s16 = sadd.s32 %s2832_s8, %s2016_s20 }
 0x2e4   :  { %4285 = sst [smem:[#allocation117_spill]] %s3386_s24  ;;  %s2018_s14 = sand.u32 4294901760, %s2017_s16 }
 0x2e5   :  { %p2030_p9 = scmp.ne.f32.partialorder %s2833_s2, %s2833_s2  ;;  %s4635_s14 = smov (%p2013_p8, %s2018_s14), 2143289344 }
 0x2e6   :  { %s2031_s29 = sshrl.u32 %s2833_s2, 16  ;;  %s2834_s3 = sld [smem:[#allocation2 + $0x6d]] }
 0x2e7   :  { %s2021_s5 = sshrl.u32 %s4635_s14, 16  ;;  %s2032_s28 = sand.u32 1, %s2031_s29 }
 0x2e8   :  { %s2022_s18 = sshll.u32 %s2021_s5, 16  ;;  %s2033_s4 = sadd.s32 32767, %s2032_s28 }
 0x2e9   :  { %s3388_s0 = sor.u32 %s2022_s18, %s2021_s5  ;;  %s2034_s9 = sadd.s32 %s2833_s2, %s2033_s4 }
 0x2ea   :  { %4286 = sst [smem:[#allocation118_spill]] %s3388_s0  ;;  %s2035_s10 = sand.u32 4294901760, %s2034_s9 }
 0x2eb   :  { %s2835_s7 = sld [smem:[#allocation2 + $0x9]]  ;;  %s4637_s10 = smov (%p2030_p9, %s2035_s10), 2143289344 }
 0x2ec   :  { %p2047_p10 = scmp.ne.f32.partialorder %s2834_s3, %s2834_s3  ;;  %s2048_s12 = sshrl.u32 %s2834_s3, 16 }
 0x2ed   :  { %s2038_s13 = sshrl.u32 %s4637_s10, 16  ;;  %s2049_s27 = sand.u32 1, %s2048_s12 }
 0x2ee   :  { %s2039_s8 = sshll.u32 %s2038_s13, 16  ;;  %s2050_s23 = sadd.s32 32767, %s2049_s27 }
 0x2ef   :  { %s3390_s20 = sor.u32 %s2039_s8, %s2038_s13  ;;  %s2051_s16 = sadd.s32 %s2834_s3, %s2050_s23 }
 0x2f0   :  { %4287 = sst [smem:[#allocation119_spill]] %s3390_s20  ;;  %s2052_s24 = sand.u32 4294901760, %s2051_s16 }
 0x2f1   :  { %p2064_p11 = scmp.ne.f32.partialorder %s2835_s7, %s2835_s7  ;;  %s4639_s24 = smov (%p2047_p10, %s2052_s24), 2143289344 }
 0x2f2   :  { %s2065_s14 = sshrl.u32 %s2835_s7, 16  ;;  %s2836_s29 = sld [smem:[#allocation2 + $0x13]] }
 0x2f3   :  { %s2055_s5 = sshrl.u32 %s4639_s24, 16  ;;  %s2066_s28 = sand.u32 1, %s2065_s14 }
 0x2f4   :  { %s2056_s2 = sshll.u32 %s2055_s5, 16  ;;  %s2067_s18 = sadd.s32 32767, %s2066_s28 }
 0x2f5   :  { %s3392_s4 = sor.u32 %s2056_s2, %s2055_s5  ;;  %s2068_s9 = sadd.s32 %s2835_s7, %s2067_s18 }
 0x2f6   :  { %4288 = sst [smem:[#allocation120_spill]] %s3392_s4  ;;  %s2069_s0 = sand.u32 4294901760, %s2068_s9 }
 0x2f7   :  { %s2837_s10 = sld [smem:[#allocation2 + $0x6e]]  ;;  %s4641_s0 = smov (%p2064_p11, %s2069_s0), 2143289344 }
 0x2f8   :  { %p2080_p12 = scmp.ne.f32.partialorder %s2836_s29, %s2836_s29  ;;  %s2081_s12 = sshrl.u32 %s2836_s29, 16 }
 0x2f9   :  { %s2072_s13 = sshrl.u32 %s4641_s0, 16  ;;  %s2082_s27 = sand.u32 1, %s2081_s12 }
 0x2fa   :  { %s2073_s3 = sshll.u32 %s2072_s13, 16  ;;  %s2083_s8 = sadd.s32 32767, %s2082_s27 }
 0x2fb   :  { %s3394_s23 = sor.u32 %s2073_s3, %s2072_s13  ;;  %s2084_s16 = sadd.s32 %s2836_s29, %s2083_s8 }
 0x2fc   :  { %4289 = sst [smem:[#allocation121_spill]] %s3394_s23  ;;  %s2085_s20 = sand.u32 4294901760, %s2084_s16 }
 0x2fd   :  { %p2100_p13 = scmp.ne.f32.partialorder %s2837_s10, %s2837_s10  ;;  %s4643_s20 = smov (%p2080_p12, %s2085_s20), 2143289344 }
 0x2fe   :  { %s2101_s24 = sshrl.u32 %s2837_s10, 16  ;;  %s2838_s14 = sld [smem:[#allocation2 + $0x6f]] }
 0x2ff   :  { %s2088_s5 = sshrl.u32 %s4643_s20, 16  ;;  %s2102_s28 = sand.u32 1, %s2101_s24 }
 0x300   :  { %s2089_s7 = sshll.u32 %s2088_s5, 16  ;;  %s2103_s2 = sadd.s32 32767, %s2102_s28 }
 0x301   :  { %s3396_s18 = sor.u32 %s2089_s7, %s2088_s5  ;;  %s2104_s9 = sadd.s32 %s2837_s10, %s2103_s2 }
 0x302   :  { %s2105_s4 = sand.u32 4294901760, %s2104_s9  ;;  %s2839_s0 = sld [smem:[#allocation2 + $0x70]] }
 0x303   :  { %s4645_s4 = smov (%p2100_p13, %s2105_s4), 2143289344  ;;  %s2840_s24 = sld [smem:[#allocation2 + $0x71]] }
 0x304   :  { %p2117_p0 = scmp.ne.f32.partialorder %s2838_s14, %s2838_s14  ;;  %s2118_s12 = sshrl.u32 %s2838_s14, 16 }
 0x305   :  { %s2108_s13 = sshrl.u32 %s4645_s4, 16  ;;  %s2119_s27 = sand.u32 1, %s2118_s12 }
 0x306   :  { %s2109_s29 = sshll.u32 %s2108_s13, 16  ;;  %s2120_s3 = sadd.s32 32767, %s2119_s27 }
 0x307   :  { %s3398_s8 = sor.u32 %s2109_s29, %s2108_s13  ;;  %s2121_s16 = sadd.s32 %s2838_s14, %s2120_s3 }
 0x308   :  { %s2122_s23 = sand.u32 4294901760, %s2121_s16  ;;  %p2134_p1 = scmp.ne.f32.partialorder %s2839_s0, %s2839_s0 }
 0x309   :  { %s4647_s23 = smov (%p2117_p0, %s2122_s23), 2143289344  ;;  %s2135_s20 = sshrl.u32 %s2839_s0, 16 }
 0x30a   :  { %s2125_s5 = sshrl.u32 %s4647_s23, 16  ;;  %s2136_s10 = sand.u32 1, %s2135_s20 }
 0x30b   :  { %s2126_s28 = sshll.u32 %s2125_s5, 16  ;;  %s2137_s7 = sadd.s32 32767, %s2136_s10 }
 0x30c   :  { %s3400_s2 = sor.u32 %s2126_s28, %s2125_s5  ;;  %s2138_s4 = sadd.s32 %s2839_s0, %s2137_s7 }
 0x30d   :  { %s2139_s9 = sand.u32 4294901760, %s2138_s4  ;;  %s3402_s12 = sld [smem:[#allocation2 + $0x72]] }
 0x30e   :  { %s4649_s9 = smov (%p2134_p1, %s2139_s9), 2143289344  ;;  %p2151_p2 = scmp.ne.f32.partialorder %s2840_s24, %s2840_s24 }
 0x30f   :  { %s2152_s23 = sshrl.u32 %s2840_s24, 16  ;;  %s2142_s14 = sshrl.u32 %s4649_s9, 16 }
 0x310   :  { %s2153_s13 = sand.u32 1, %s2152_s23  ;;  %s2143_s27 = sshll.u32 %s2142_s14, 16 }
 0x311   :  { %s2154_s29 = sadd.s32 32767, %s2153_s13  ;;  %s3409_s3 = sor.u32 %s2143_s27, %s2142_s14 }
 0x312   :  { %s2155_s16 = sadd.s32 %s2840_s24, %s2154_s29  ;;  %s2842_s0 = sld [smem:[#allocation2 + $0x73]] }
 0x313   :  { %s2156_s20 = sand.u32 4294901760, %s2155_s16  ;;  %p2168_p3 = scmp.ne.f32.partialorder %s3402_s12, %s3402_s12 }
 0x314   :  { %s4651_s20 = smov (%p2151_p2, %s2156_s20), 2143289344  ;;  %s2169_s17 = sshrl.u32 %s3402_s12, 16 }
 0x315   :  { %s2159_s5 = sshrl.u32 %s4651_s20, 16  ;;  %s2170_s10 = sand.u32 1, %s2169_s17 }
 0x316   :  { %s2160_s28 = sshll.u32 %s2159_s5, 16  ;;  %s2171_s7 = sadd.s32 32767, %s2170_s10 }
 0x317   :  { %s3415_s4 = sor.u32 %s2160_s28, %s2159_s5  ;;  %s2172_s9 = sadd.s32 %s3402_s12, %s2171_s7 }
 0x318   :  { %s2173_s24 = sand.u32 4294901760, %s2172_s9  ;;  %s3418_s6 = sld [smem:[#allocation2 + $0x74]] }
 0x319   :  { %s4653_s24 = smov (%p2168_p3, %s2173_s24), 2143289344  ;;  %p2185_p4 = scmp.ne.f32.partialorder %s2842_s0, %s2842_s0 }
 0x31a   :  { %s2186_s23 = sshrl.u32 %s2842_s0, 16  ;;  %s2176_s14 = sshrl.u32 %s4653_s24, 16 }
 0x31b   :  { %s2187_s13 = sand.u32 1, %s2186_s23  ;;  %s2177_s27 = sshll.u32 %s2176_s14, 16 }
 0x31c   :  { %s2188_s29 = sadd.s32 32767, %s2187_s13  ;;  %s3426_s16 = sor.u32 %s2177_s27, %s2176_s14 }
 0x31d   :  { %s2189_s20 = sadd.s32 %s2842_s0, %s2188_s29  ;;  %s2844_s12 = sld [smem:[#allocation2 + $0x75]] }
 0x31e   :  { %s2190_s17 = sand.u32 4294901760, %s2189_s20  ;;  %p2202_p5 = scmp.ne.f32.partialorder %s3418_s6, %s3418_s6 }
 0x31f   :  { %s4655_s17 = smov (%p2185_p4, %s2190_s17), 2143289344  ;;  %s2203_s26 = sshrl.u32 %s3418_s6, 16 }
 0x320   :  { %s2193_s5 = sshrl.u32 %s4655_s17, 16  ;;  %s2204_s10 = sand.u32 1, %s2203_s26 }
 0x321   :  { %s2194_s28 = sshll.u32 %s2193_s5, 16  ;;  %s2205_s7 = sadd.s32 32767, %s2204_s10 }
 0x322   :  { %s3431_s9 = sor.u32 %s2194_s28, %s2193_s5  ;;  %s2206_s30 = sadd.s32 %s3418_s6, %s2205_s7 }
 0x323   :  { %s2207_s0 = sand.u32 4294901760, %s2206_s30  ;;  %s3434_s24 = sld [smem:[#allocation2 + $0x76]] }
 0x324   :  { %s4657_s0 = smov (%p2202_p5, %s2207_s0), 2143289344  ;;  %p2219_p6 = scmp.ne.f32.partialorder %s2844_s12, %s2844_s12 }
 0x325   :  { %s2220_s23 = sshrl.u32 %s2844_s12, 16  ;;  %s2210_s14 = sshrl.u32 %s4657_s0, 16 }
 0x326   :  { %s2221_s13 = sand.u32 1, %s2220_s23  ;;  %s2211_s27 = sshll.u32 %s2210_s14, 16 }
 0x327   :  { %s2222_s29 = sadd.s32 32767, %s2221_s13  ;;  %s3442_s20 = sor.u32 %s2211_s27, %s2210_s14 }
 0x328   :  { %s2223_s17 = sadd.s32 %s2844_s12, %s2222_s29  ;;  %s3448_s26 = sld [smem:[#allocation2 + $0x77]] }
 0x329   :  { %s2224_s1 = sand.u32 4294901760, %s2223_s17  ;;  %p2236_p7 = scmp.ne.f32.partialorder %s3434_s24, %s3434_s24 }
 0x32a   :  { %s4659_s1 = smov (%p2219_p6, %s2224_s1), 2143289344  ;;  %s2237_s6 = sshrl.u32 %s3434_s24, 16 }
 0x32b   :  { %s2227_s25 = sshrl.u32 %s4659_s1, 16  ;;  %s4290_s5 = sld [smem:[#allocation49_spill]] }
 0x32c   :  { %s2238_s10 = sand.u32 1, %s2237_s6  ;;  %s2228_s28 = sshll.u32 %s2227_s25, 16 }
 0x32d   :  { %s2239_s7 = sadd.s32 32767, %s2238_s10  ;;  %s3452_s12 = sor.u32 %s2228_s28, %s2227_s25 }
 0x32e   :  { %s4291_s30 = sld [smem:[#allocation14_spill]]  ;;  %s2240_s0 = sadd.s32 %s3434_s24, %s2239_s7 }
 0x32f   :  { %s4292_s23 = sld [smem:[#allocation15_spill]]  ;;  %s2241_s14 = sand.u32 4294901760, %s2240_s0 }
 0x330   :  { %s3457_s13 = sld [smem:[#allocation2 + $0x82]]  ;;  %s4661_s14 = smov (%p2236_p7, %s2241_s14), 2143289344 }
 0x331   :  { %s4293_s27 = sld [smem:[#allocation16_spill]]  ;;  %v839_v25 = vstv %s4290_s5  ;;  %s4294_s29 = sld [smem:[#allocation17_spill]] }
 0x332   :  { %p2253_p8 = scmp.ne.f32.partialorder %s3448_s26, %s3448_s26  ;;  %s2254_s17 = sshrl.u32 %s3448_s26, 16  ;;  %v841_v36 = vmul.bf16 %v839_v25, %v3404_v1 }
 0x333   :  { %s4295_s11 = sld [smem:[#allocation18_spill]]  ;;  %s2244_s22 = sshrl.u32 %s4661_s14, 16 }
 0x334   :  { %v123_v28 = vstv %s4291_s30  ;;  %s4296_s21 = sld [smem:[#allocation50_spill]]  ;;  %s2255_s19 = sand.u32 1, %s2254_s17 }
 0x335   :  { %v155_v30 = vstv %s4292_s23  ;;  %s4297_s15 = sld [smem:[#allocation19_spill]]  ;;  %s4298_s24 = sld [smem:[#allocation21_spill]]  ;;  %v3486_v40 = vadd.bf16 %v123_v28, %v109_v27 }
 0x336   :  { %s2245_s1 = sshll.u32 %s2244_s22, 16  ;;  %s2256_s6 = sadd.s32 32767, %s2255_s19  ;;  %v3493_v43 = vadd.bf16 %v155_v30, %v141_v29 }
 0x337   :  { %v187_v33 = vstv %s4293_s27  ;;  %v219_v34 = vstv %s4294_s29  ;;  %s4299_s25 = sld [smem:[#allocation61_spill]]  ;;  %s3479_s5 = sor.u32 %s2245_s1, %s2244_s22 }
 0x338   :  { %s2257_s10 = sadd.s32 %s3448_s26, %s2256_s6  ;;  %s4300_s28 = sld [smem:[#allocation23_spill]]  ;;  %v3495_v44 = vadd.bf16 %v187_v33, %v173_v31  ;;  %v3497_v45 = vadd.bf16 %v219_v34, %v205_v32 }
 0x339   :  { %v251_v37 = vstv %s4295_s11  ;;  %s4301_s7 = sld [smem:[#allocation25_spill]]  ;;  %s2258_s30 = sand.u32 4294901760, %s2257_s10 }
 0x33a   :  { %v855_v39 = vstv %s4296_s21  ;;  %p2274_p9 = scmp.ne.f32.partialorder %s3457_s13, %s3457_s13  ;;  %s4302_s0 = sld [smem:[#allocation20_spill]]  ;;  %v3503_v47 = vadd.bf16 %v251_v37, %v237_v35 }
 0x33b   :  { %v267_v41 = vstv %s4297_s15  ;;  %v299_v42 = vstv %s4298_s24  ;;  %s4663_s30 = smov (%p2253_p8, %s2258_s30), 2143289344  ;;  %s4303_s23 = sld [smem:[#allocation22_spill]]  ;;  %v857_v50 = vadd.bf16 %v855_v39, %v841_v36 }
 0x33c   :  { %s4304_s14 = sld [smem:[#allocation27_spill]]  ;;  %s2275_s27 = sshrl.u32 %s3457_s13, 16  ;;  %v269_v51 = vmul.bf16 %v267_v41, %v3450_v18  ;;  %v301_v53 = vmul.bf16 %v299_v42, %v3450_v18 }
 0x33d   :  { %v1045_v46 = vstv %s4299_s25  ;;  %s4305_s29 = sld [smem:[#allocation29_spill]]  ;;  %s3501_s17 = sld [smem:[#allocation2 + $0x96]]  ;;  %v858_v2 = vmul.bf16 1056980736, %v857_v50 }
 0x33e   :  { %v331_v48 = vstv %s4300_s28  ;;  %s2261_s26 = sshrl.u32 %s4663_s30, 16  ;;  %s4306_s11 = sld [smem:[#allocation30_spill]]  ;;  %v1047_v58 = vmul.bf16 %v1045_v46, %v3404_v1 }
 0x33f   :  { %v363_v49 = vstv %s4301_s7  ;;  %s2276_s22 = sand.u32 1, %s2275_s27  ;;  %s4307_s21 = sld [smem:[#allocation62_spill]]  ;;  %v333_v59 = vmul.bf16 %v331_v48, %v3450_v18  ;;  %2884 = vtanh.bf16 %v858_v2 }
 0x340   :  { %v283_v52 = vstv %s4302_s0  ;;  %s4308_s19 = sld [smem:[#allocation24_spill]]  ;;  %s4309_s15 = sld [smem:[#allocation26_spill]]  ;;  %v365_v60 = vmul.bf16 %v363_v49, %v3450_v18 }
 0x341   :  { %s2262_s24 = sshll.u32 %s2261_s26, 16  ;;  %s2277_s1 = sadd.s32 32767, %s2276_s22  ;;  %v315_v55 = vstv %s4303_s23  ;;  %v3531_v4 = vadd.bf16 %v283_v52, %v269_v51 }
 0x342   :  { %s4310_s6 = sld [smem:[#allocation73_spill]]  ;;  %v395_v56 = vstv %s4304_s14  ;;  %s3516_s25 = sor.u32 %s2262_s24, %s2261_s26  ;;  %v3541_v9 = vadd.bf16 %v315_v55, %v301_v53 }
 0x343   :  { %v463_v57 = vstv %s4305_s29  ;;  %s4311_s10 = sld [smem:[#allocation31_spill]]  ;;  %s2278_s28 = sadd.s32 %s3457_s13, %s2277_s1  ;;  %v397_v5 = vmul.bf16 %v395_v56, %v3450_v18 }
 0x344   :  { %v480_v61 = vstv %s4306_s11  ;;  %s4312_s7 = sld [smem:[#allocation28_spill]]  ;;  %s2279_s30 = sand.u32 4294901760, %s2278_s28  ;;  %v3535_v6 = vmul.bf16 %v463_v57, %v3510_v54 }
 0x345   :  { %v1061_v62 = vstv %s4307_s21  ;;  %s3523_s0 = sld [smem:[#allocation2 + $0x83]]  ;;  %s4665_s30 = smov (%p2274_p9, %s2279_s30), 2143289344  ;;  %v3545_v11 = vmul.bf16 %v480_v61, %v3510_v54 }
 0x346   :  { %v347_v63 = vstv %s4308_s19  ;;  %v379_v0 = vstv %s4309_s15  ;;  %s4313_s23 = sld [smem:[#allocation32_spill]]  ;;  %p2290_p10 = scmp.ne.f32.partialorder %s3501_s17, %s3501_s17  ;;  %v1063_v12 = vadd.bf16 %v1061_v62, %v1047_v58  ;;  %v466_v21 = vadd.bf16 %v3535_v6, %v3486_v40 }
 0x347   :  { %s2291_s14 = sshrl.u32 %s3501_s17, 16  ;;  %s4314_s27 = sld [smem:[#allocation74_spill]]  ;;  %v3547_v13 = vadd.bf16 %v347_v63, %v333_v59  ;;  %v3549_v14 = vadd.bf16 %v379_v0, %v365_v60  ;;  %v483_v24 = vadd.bf16 %v3545_v11, %v3493_v43 }
 0x348   :  { %v1251_v3 = vstv %s4310_s6  ;;  %s4315_s29 = sld [smem:[#allocation85_spill]]  ;;  %s2282_s13 = sshrl.u32 %s4665_s30, 16  ;;  %v1064_v27 = vmul.bf16 1056980736, %v1063_v12 }
 0x349   :  { %v497_v7 = vstv %s4311_s10  ;;  %s4316_s26 = sld [smem:[#allocation33_spill]]  ;;  %s2292_s11 = sand.u32 1, %s2291_s14  ;;  %v1253_v16 = vmul.bf16 %v1251_v3, %v3404_v1 }
 0x34a   :  { %v411_v10 = vstv %s4312_s7  ;;  %s2283_s22 = sshll.u32 %s2282_s13, 16  ;;  %s4317_s21 = sld [smem:[#allocation34_spill]]  ;;  %v3554_v17 = vmul.bf16 %v497_v7, %v3510_v54  ;;  %2886 = vtanh.bf16 %v1064_v27  ;;  %v2885_v0 = vpop.eup %2884 }
 0x34b   :  { %s2293_s19 = sadd.s32 32767, %s2292_s11  ;;  %s4318_s15 = sld [smem:[#allocation35_spill]]  ;;  %v3561_v20 = vadd.bf16 %v411_v10, %v397_v5  ;;  %v860_v27 = vmul.bf16 1056980736, %v2885_v0 }
 0x34c   :  { %v514_v15 = vstv %s4313_s23  ;;  %s4319_s24 = sld [smem:[#allocation36_spill]]  ;;  %s3558_s1 = sor.u32 %s2283_s22, %s2282_s13  ;;  %v500_v32 = vadd.bf16 %v3554_v17, %v3495_v44 }
 0x34d   :  { %v1267_v18 = vstv %s4314_s27  ;;  %s2294_s6 = sadd.s32 %s3501_s17, %s2293_s19  ;;  %s4320_s10 = sld [smem:[#allocation37_spill]]  ;;  %v3571_v25 = vmul.bf16 %v514_v15, %v3510_v54 }
 0x34e   :  { %v1457_v19 = vstv %s4315_s29  ;;  %s2295_s28 = sand.u32 4294901760, %s2294_s6  ;;  %s4321_s7 = sld [smem:[#allocation86_spill]]  ;;  %v1269_v30 = vadd.bf16 %v1267_v18, %v1253_v16 }
 0x34f   :  { %v531_v22 = vstv %s4316_s26  ;;  %p2306_p11 = scmp.ne.f32.partialorder %s3523_s0, %s3523_s0  ;;  %s4322_s30 = sld [smem:[#allocation38_spill]]  ;;  %v1459_v31 = vmul.bf16 %v1457_v19, %v3404_v1  ;;  %v517_v48 = vadd.bf16 %v3571_v25, %v3497_v45 }
 0x350   :  { %v548_v26 = vstv %s4317_s21  ;;  %s4667_s28 = smov (%p2290_p10, %s2295_s28), 2143289344  ;;  %s4323_s23 = sld [smem:[#allocation97_spill]]  ;;  %v3586_v33 = vmul.bf16 %v531_v22, %v3510_v54  ;;  %v1270_v50 = vmul.bf16 1056980736, %v1269_v30 }
 0x351   :  { %v565_v28 = vstv %s4318_s15  ;;  %s2307_s14 = sshrl.u32 %s3523_s0, 16  ;;  %s4324_s27 = sld [smem:[#allocation39_spill]]  ;;  %v3591_v36 = vmul.bf16 %v548_v26, %v3510_v54 }
 0x352   :  { %v582_v29 = vstv %s4319_s24  ;;  %s3581_s29 = sld [smem:[#allocation2 + $0x97]]  ;;  %s2298_s17 = sshrl.u32 %s4667_s28, 16  ;;  %v3598_v41 = vmul.bf16 %v565_v28, %v3510_v54  ;;  %v534_v57 = vadd.bf16 %v3586_v33, %v3503_v47  ;;  %2888 = vtanh.bf16 %v1270_v50 }
 0x353   :  { %v599_v34 = vstv %s4320_s10  ;;  %s2308_s13 = sand.u32 1, %s2307_s14  ;;  %s4325_s26 = sld [smem:[#allocation40_spill]]  ;;  %v3601_v42 = vmul.bf16 %v582_v29, %v3510_v54 }
 0x354   :  { %v1473_v35 = vstv %s4321_s7  ;;  %s2299_s11 = sshll.u32 %s2298_s17, 16  ;;  %s4326_s22 = sld [smem:[#allocation41_spill]]  ;;  %v3610_v49 = vmul.bf16 %v599_v34, %v3510_v54  ;;  %v568_v61 = vadd.bf16 %v3598_v41, %v3541_v9 }
 0x355   :  { %v616_v37 = vstv %s4322_s30  ;;  %s2309_s21 = sadd.s32 32767, %s2308_s13  ;;  %s4327_s19 = sld [smem:[#allocation98_spill]]  ;;  %v1475_v51 = vadd.bf16 %v1473_v35, %v1459_v31  ;;  %v585_v62 = vadd.bf16 %v3601_v42, %v3547_v13  ;;  %v2887_v44 = vpop.eup %2886  ;;  %v2091_v31 = vstv %s3396_s18 }
 0x356   :  { %v1663_v39 = vstv %s4323_s23  ;;  %s3604_s15 = sor.u32 %s2299_s11, %s2298_s17  ;;  %s4328_s24 = sld [smem:[#allocation109_spill]]  ;;  %v3615_v52 = vmul.bf16 %v616_v37, %v3510_v54  ;;  %v551_v54 = vadd.bf16 %v3591_v36, %v3531_v4  ;;  %v602_v7 = vadd.bf16 %v3610_v49, %v3549_v14 }
 0x357   :  { %v669_v46 = vstv %s4324_s27  ;;  %s2310_s6 = sadd.s32 %s3523_s0, %s2309_s21  ;;  %s4329_s28 = sld [smem:[#allocation42_spill]]  ;;  %v1665_v56 = vmul.bf16 %v1663_v39, %v3404_v1  ;;  %v1476_v5 = vmul.bf16 1056980736, %v1475_v51  ;;  %v3691_v35 = vadd.bf16 1056980736, %v860_v27 }
 0x358   :  { %s2311_s10 = sand.u32 4294901760, %s2310_s6  ;;  %s3612_s7 = sld [smem:[#allocation2 + $0x84]]  ;;  %v671_v58 = vmul.bf16 %v669_v46, %v3594_v38  ;;  %v619_v8 = vadd.bf16 %v3615_v52, %v3561_v20  ;;  %v1066_v45 = vmul.bf16 1056980736, %v2887_v44 }
 0x359   :  { %v686_v53 = vstv %s4325_s26  ;;  %s4669_s10 = smov (%p2306_p11, %s2311_s10), 2143289344  ;;  %p2322_p12 = scmp.ne.f32.partialorder %s3581_s29, %s3581_s29  ;;  %2890 = vtanh.bf16 %v1476_v5 }
 0x35a   :  { %v703_v55 = vstv %s4326_s22  ;;  %s2323_s30 = sshrl.u32 %s3581_s29, 16  ;;  %s2314_s0 = sshrl.u32 %s4669_s10, 16  ;;  %v688_v2 = vmul.bf16 %v686_v53, %v3594_v38  ;;  %v3651_v15 = vadd.bf16 %v671_v58, %v466_v21  ;;  %v3745_v58 = vadd.bf16 1056980736, %v1066_v45 }
 0x35b   :  { %v1679_v59 = vstv %s4327_s19  ;;  %s2324_s23 = sand.u32 1, %s2323_s30  ;;  %s4330_s14 = sld [smem:[#allocation110_spill]]  ;;  %v705_v3 = vmul.bf16 %v703_v55, %v3594_v38 }
 0x35c   :  { %v1869_v60 = vstv %s4328_s24  ;;  %s4331_s27 = sld [smem:[#allocation121_spill]]  ;;  %s4332_s17 = sld [smem:[#allocation43_spill]]  ;;  %v1681_v10 = vadd.bf16 %v1679_v59, %v1665_v56  ;;  %v3667_v40 = vadd.bf16 %v688_v2, %v483_v24 }
 0x35d   :  { %v720_v63 = vstv %s4329_s28  ;;  %s4333_s13 = sld [smem:[#allocation44_spill]]  ;;  %s2315_s26 = sshll.u32 %s2314_s0, 16  ;;  %v1871_v12 = vmul.bf16 %v1869_v60, %v3404_v1  ;;  %v3672_v6 = vadd.bf16 %v705_v3, %v500_v32  ;;  %v2889_v47 = vpop.eup %2888 }
 0x35e   :  { %s4334_s11 = sld [smem:[#allocation45_spill]]  ;;  %s2325_s22 = sadd.s32 32767, %s2324_s23  ;;  %v722_v16 = vmul.bf16 %v720_v63, %v3594_v38  ;;  %v1682_v29 = vmul.bf16 1056980736, %v1681_v10 }
 0x35f   :  { %s4335_s21 = sld [smem:[#allocation46_spill]]  ;;  %s3645_s19 = sor.u32 %s2315_s26, %s2314_s0 }
 0x360   :  { %s2326_s24 = sadd.s32 %s3581_s29, %s2325_s22  ;;  %s4336_s6 = sld [smem:[#allocation47_spill]]  ;;  %v3687_v32 = vadd.bf16 %v722_v16, %v517_v48  ;;  %2892 = vtanh.bf16 %v1682_v29 }
 0x361   :  { %v1885_v18 = vstv %s4330_s14  ;;  %s2327_s10 = sand.u32 4294901760, %s2326_s24  ;;  %p2342_p13 = scmp.ne.f32.partialorder %s3612_s7, %s3612_s7 }
 0x362   :  { %v2075_v19 = vstv %s4331_s27  ;;  %v737_v22 = vstv %s4332_s17  ;;  %s4671_s10 = smov (%p2322_p12, %s2327_s10), 2143289344  ;;  %s2343_s28 = sshrl.u32 %s3612_s7, 16  ;;  %v1887_v30 = vadd.bf16 %v1885_v18, %v1871_v12 }
 0x363   :  { %v754_v23 = vstv %s4333_s13  ;;  %s3676_s30 = sld [smem:[#allocation2 + $0x85]]  ;;  %s4337_s0 = sld [smem:[#allocation48_spill]]  ;;  %v2077_v43 = vmul.bf16 %v2075_v19, %v3404_v1  ;;  %v739_v11 = vmul.bf16 %v737_v22, %v3594_v38 }
 0x364   :  { %v771_v26 = vstv %s4334_s11  ;;  %s2330_s29 = sshrl.u32 %s4671_s10, 16  ;;  %s4338_s23 = sld [smem:[#allocation51_spill]]  ;;  %v756_v17 = vmul.bf16 %v754_v23, %v3594_v38  ;;  %v1888_v25 = vmul.bf16 1056980736, %v1887_v30 }
 0x365   :  { %v788_v21 = vstv %s4335_s21  ;;  %s2344_s14 = sand.u32 1, %s2343_s28  ;;  %s4339_s27 = sld [smem:[#allocation52_spill]]  ;;  %v773_v24 = vmul.bf16 %v771_v26, %v3594_v38  ;;  %v2093_v48 = vadd.bf16 %v2091_v31, %v2077_v43  ;;  %v3708_v51 = vadd.bf16 %v739_v11, %v534_v57 }
 0x366   :  { %v805_v28 = vstv %s4336_s6  ;;  %s4340_s17 = sld [smem:[#allocation53_spill]]  ;;  %s2331_s13 = sshll.u32 %s2330_s29, 16  ;;  %v790_v1 = vmul.bf16 %v788_v21, %v3594_v38  ;;  %v3713_v53 = vadd.bf16 %v756_v17, %v551_v54  ;;  %2894 = vtanh.bf16 %v1888_v25 }
 0x367   :  { %s2345_s26 = sadd.s32 32767, %s2344_s14  ;;  %s3693_s11 = sor.u32 %s2331_s13, %s2330_s29  ;;  %v807_v37 = vmul.bf16 %v805_v28, %v3594_v38  ;;  %v3718_v55 = vadd.bf16 %v773_v24, %v568_v61  ;;  %v2094_v59 = vmul.bf16 1056980736, %v2093_v48  ;;  %v1272_v54 = vmul.bf16 1056980736, %v2889_v47  ;;  %v2891_v61 = vpop.eup %2890 }
 0x368   :  { %s2346_s22 = sadd.s32 %s3612_s7, %s2345_s26  ;;  %s3700_s21 = sld [smem:[#allocation2 + $0x86]]  ;;  %v3727_v33 = vadd.bf16 %v790_v1, %v585_v62  ;;  %v1478_v18 = vmul.bf16 1056980736, %v2891_v61 }
 0x369   :  { %v822_v34 = vstv %s4337_s0  ;;  %s2347_s18 = sand.u32 4294901760, %s2346_s22  ;;  %s4341_s24 = sld [smem:[#allocation54_spill]]  ;;  %2896 = vtanh.bf16 %v2094_v59  ;;  %v3789_v16 = vadd.bf16 1056980736, %v1272_v54 }
 0x36a   :  { %v875_v39 = vstv %s4338_s23  ;;  %s4673_s18 = smov (%p2342_p13, %s2347_s18), 2143289344  ;;  %s4342_s6 = sld [smem:[#allocation55_spill]]  ;;  %v824_v56 = vmul.bf16 %v822_v34, %v3594_v38  ;;  %v3737_v38 = vadd.bf16 %v807_v37, %v602_v7  ;;  %v3822_v31 = vadd.bf16 1056980736, %v1478_v18 }
 0x36b   :  { %v892_v46 = vstv %s4339_s27  ;;  %s4343_s10 = sld [smem:[#allocation56_spill]]  ;;  %s4344_s7 = sld [smem:[#allocation57_spill]]  ;;  %v877_v4 = vmul.bf16 %v875_v39, %v3691_v35  ;;  %v2893_v27 = vpop.eup %2892 }
 0x36c   :  { %v909_v50 = vstv %s4340_s17  ;;  %p2359_p0 = scmp.ne.f32.partialorder %s3676_s30, %s3676_s30  ;;  %s2360_s28 = sshrl.u32 %s3676_s30, 16  ;;  %v3731_v36 = vmul.bf16 %v892_v46, %v3691_v35  ;;  %v3753_v14 = vadd.bf16 %v824_v56, %v619_v8 }
 0x36d   :  { %s2350_s0 = sshrl.u32 %s4673_s18, 16  ;;  %s4345_s29 = sld [smem:[#allocation63_spill]]  ;;  %v3740_v41 = vmul.bf16 %v909_v50, %v3691_v35  ;;  %v878_v62 = vadd.bf16 %v877_v4, %v3651_v15 }
 0x36e   :  { %s2361_s23 = sand.u32 1, %s2360_s28  ;;  %s2351_s14 = sshll.u32 %s2350_s0, 16  ;;  %v895_v20 = vadd.bf16 %v3731_v36, %v3667_v40 }
 0x36f   :  { %v926_v9 = vstv %s4341_s24  ;;  %s2362_s27 = sadd.s32 32767, %s2361_s23  ;;  %s3747_s17 = sor.u32 %s2351_s14, %s2350_s0  ;;  %v912_v0 = vadd.bf16 %v3740_v41, %v3672_v6 }
 0x370   :  { %v943_v13 = vstv %s4342_s6  ;;  %s4346_s13 = sld [smem:[#allocation58_spill]]  ;;  %s2363_s26 = sadd.s32 %s3676_s30, %s2362_s27  ;;  %v3756_v49 = vmul.bf16 %v926_v9, %v3691_v35 }
 0x371   :  { %v960_v42 = vstv %s4343_s10  ;;  %v977_v57 = vstv %s4344_s7  ;;  %s4347_s22 = sld [smem:[#allocation59_spill]]  ;;  %s4348_s18 = sld [smem:[#allocation60_spill]]  ;;  %v3765_v52 = vmul.bf16 %v943_v13, %v3691_v35  ;;  %v2895_v37 = vpop.eup %2894 }
 0x372   :  { %s2364_s24 = sand.u32 4294901760, %s2363_s26  ;;  %s4349_s6 = sld [smem:[#allocation64_spill]]  ;;  %v3768_v63 = vmul.bf16 %v960_v42, %v3691_v35  ;;  %v3776_v2 = vmul.bf16 %v977_v57, %v3691_v35  ;;  %v929_v12 = vadd.bf16 %v3756_v49, %v3687_v32  ;;  %v1890_v13 = vmul.bf16 1056980736, %v2895_v37 }
 0x373   :  { %v1081_v60 = vstv %s4345_s29  ;;  %p2380_p1 = scmp.ne.f32.partialorder %s3700_s21, %s3700_s21  ;;  %s4350_s10 = sld [smem:[#allocation65_spill]]  ;;  %v946_v19 = vadd.bf16 %v3765_v52, %v3708_v51 }
 0x374   :  { %s4675_s24 = smov (%p2359_p0, %s2364_s24), 2143289344  ;;  %s2381_s7 = sshrl.u32 %s3700_s21, 16  ;;  %v1083_v8 = vmul.bf16 %v1081_v60, %v3745_v58  ;;  %v963_v22 = vadd.bf16 %v3768_v63, %v3713_v53  ;;  %v980_v29 = vadd.bf16 %v3776_v2, %v3718_v55  ;;  %v2897_v42 = vpop.eup %2896 }
 0x375   :  { %s3781_s28 = sld [smem:[#allocation2 + $0x87]]  ;;  %s4351_s0 = sld [smem:[#allocation75_spill]] }
 0x376   :  { %v994_v3 = vstv %s4346_s13  ;;  %s2367_s30 = sshrl.u32 %s4675_s24, 16  ;;  %s2382_s29 = sand.u32 1, %s2381_s7  ;;  %v1084_v30 = vadd.bf16 %v1083_v8, %v878_v62  ;;  %v3874_v8 = vadd.bf16 1056980736, %v1890_v13 }
 0x377   :  { %v1011_v5 = vstv %s4347_s22  ;;  %v1028_v7 = vstv %s4348_s18  ;;  %s4352_s23 = sld [smem:[#allocation66_spill]]  ;;  %s2368_s14 = sshll.u32 %s2367_s30, 16  ;;  %v3796_v23 = vmul.bf16 %v994_v3, %v3691_v35 }
 0x378   :  { %v1098_v10 = vstv %s4349_s6  ;;  %s2383_s27 = sadd.s32 32767, %s2382_s29  ;;  %s4353_s13 = sld [smem:[#allocation67_spill]]  ;;  %v3803_v40 = vmul.bf16 %v1011_v5, %v3691_v35  ;;  %v3806_v6 = vmul.bf16 %v1028_v7, %v3691_v35  ;;  %v1684_v35 = vmul.bf16 1056980736, %v2893_v27 }
 0x379   :  { %v1115_v15 = vstv %s4350_s10  ;;  %s4354_s26 = sld [smem:[#allocation68_spill]]  ;;  %s3799_s22 = sor.u32 %s2368_s14, %s2367_s30  ;;  %v1100_v21 = vmul.bf16 %v1098_v10, %v3745_v58  ;;  %v997_v32 = vadd.bf16 %v3796_v23, %v3727_v33  ;;  %v2096_v10 = vmul.bf16 1056980736, %v2897_v42 }
 0x37a   :  { %4355 = sst [smem:[#allocation49_spill]] %s3799_s22  ;;  %s4356_s18 = sld [smem:[#allocation76_spill]]  ;;  %v1117_v43 = vmul.bf16 %v1115_v15, %v3745_v58  ;;  %v1014_v39 = vadd.bf16 %v3803_v40, %v3737_v38  ;;  %v1031_v46 = vadd.bf16 %v3806_v6, %v3753_v14  ;;  %v3852_v41 = vadd.bf16 1056980736, %v1684_v35 }
 0x37b   :  { %v1287_v26 = vstv %s4351_s0  ;;  %s2384_s24 = sadd.s32 %s3700_s21, %s2383_s27  ;;  %s4357_s6 = sld [smem:[#allocation87_spill]]  ;;  %v1101_v50 = vadd.bf16 %v1100_v21, %v895_v20 }
 0x37c   :  { %s2385_s10 = sand.u32 4294901760, %s2384_s24  ;;  %s3810_s7 = sld [smem:[#allocation2 + $0x88]]  ;;  %v1289_v17 = vmul.bf16 %v1287_v26, %v3789_v16  ;;  %v3843_v56 = vadd.bf16 %v1117_v43, %v912_v0 }
 0x37d   :  { %v1132_v28 = vstv %s4352_s23  ;;  %s4677_s10 = smov (%p2380_p1, %s2385_s10), 2143289344  ;;  %p2397_p2 = scmp.ne.f32.partialorder %s3781_s28, %s3781_s28 }
 0x37e   :  { %v1149_v44 = vstv %s4353_s13  ;;  %s4358_s0 = sld [smem:[#allocation69_spill]]  ;;  %s2398_s30 = sshrl.u32 %s3781_s28, 16  ;;  %v1134_v1 = vmul.bf16 %v1132_v28, %v3745_v58  ;;  %v1290_v47 = vadd.bf16 %v1289_v17, %v1084_v30 }
 0x37f   :  { %v1166_v11 = vstv %s4354_s26  ;;  %s4359_s29 = sld [smem:[#allocation70_spill]]  ;;  %s2388_s21 = sshrl.u32 %s4677_s10, 16  ;;  %v1151_v45 = vmul.bf16 %v1149_v44, %v3745_v58  ;;  %v3905_v44 = vadd.bf16 1056980736, %v2096_v10 }
 0x380   :  { %v1304_v24 = vstv %s4356_s18  ;;  %s2399_s23 = sand.u32 1, %s2398_s30  ;;  %s4360_s14 = sld [smem:[#allocation77_spill]]  ;;  %v1168_v25 = vmul.bf16 %v1166_v11, %v3745_v58  ;;  %v3849_v36 = vadd.bf16 %v1134_v1, %v929_v12 }
 0x381   :  { %v1493_v34 = vstv %s4357_s6  ;;  %s4361_s27 = sld [smem:[#allocation88_spill]]  ;;  %s2389_s13 = sshll.u32 %s2388_s21, 16  ;;  %v1306_v53 = vmul.bf16 %v1304_v24, %v3789_v16  ;;  %v3857_v57 = vadd.bf16 %v1151_v45, %v946_v19 }
 0x382   :  { %s2400_s26 = sadd.s32 32767, %s2399_s23  ;;  %s3840_s18 = sor.u32 %s2389_s13, %s2388_s21  ;;  %v1495_v4 = vmul.bf16 %v1493_v34, %v3822_v31  ;;  %v3865_v54 = vadd.bf16 %v1168_v25, %v963_v22 }
 0x383   :  { %s2401_s24 = sadd.s32 %s3781_s28, %s2400_s26  ;;  %s4362_s6 = sld [smem:[#allocation99_spill]]  ;;  %v1307_v62 = vadd.bf16 %v1306_v53, %v1101_v50 }
 0x384   :  { %v1183_v48 = vstv %s4358_s0  ;;  %s4363_s10 = sld [smem:[#allocation71_spill]]  ;;  %s2402_s30 = sand.u32 4294901760, %s2401_s24  ;;  %v1496_v63 = vadd.bf16 %v1495_v4, %v1290_v47 }
 0x385   :  { %v1200_v51 = vstv %s4359_s29  ;;  %p2418_p3 = scmp.ne.f32.partialorder %s3810_s7, %s3810_s7  ;;  %s4364_s0 = sld [smem:[#allocation78_spill]]  ;;  %v1185_v59 = vmul.bf16 %v1183_v48, %v3745_v58 }
 0x386   :  { %v1321_v33 = vstv %s4360_s14  ;;  %s4679_s30 = smov (%p2397_p2, %s2402_s30), 2143289344  ;;  %s4365_s29 = sld [smem:[#allocation89_spill]]  ;;  %v1202_v49 = vmul.bf16 %v1200_v51, %v3745_v58 }
 0x387   :  { %v1510_v9 = vstv %s4361_s27  ;;  %s4366_s21 = sld [smem:[#allocation100_spill]]  ;;  %s2419_s23 = sshrl.u32 %s3810_s7, 16  ;;  %v1323_v20 = vmul.bf16 %v1321_v33, %v3789_v16  ;;  %v3882_v12 = vadd.bf16 %v1185_v59, %v980_v29  ;;  %v2128_v33 = vstv %s3400_s2 }
 0x388   :  { %s3863_s14 = sld [smem:[#allocation2 + $0x89]]  ;;  %s2405_s28 = sshrl.u32 %s4679_s30, 16  ;;  %v1512_v0 = vmul.bf16 %v1510_v9, %v3822_v31  ;;  %v3884_v15 = vadd.bf16 %v1202_v49, %v997_v32  ;;  %v2111_v32 = vstv %s3398_s8 }
 0x389   :  { %v1699_v60 = vstv %s4362_s6  ;;  %s2420_s27 = sand.u32 1, %s2419_s23  ;;  %s4367_s13 = sld [smem:[#allocation111_spill]]  ;;  %v1324_v22 = vadd.bf16 %v1323_v20, %v3843_v56  ;;  %v2113_v51 = vmul.bf16 %v2111_v32, %v3905_v44 }
 0x38a   :  { %v1217_v61 = vstv %s4363_s10  ;;  %s2406_s26 = sshll.u32 %s2405_s28, 16  ;;  %s4368_s24 = sld [smem:[#allocation79_spill]]  ;;  %v1701_v5 = vmul.bf16 %v1699_v60, %v3852_v41  ;;  %v1513_v55 = vadd.bf16 %v1512_v0, %v1307_v62  ;;  %v2130_v62 = vmul.bf16 %v2128_v33, %v3905_v44 }
 0x38b   :  { %v1338_v52 = vstv %s4364_s0  ;;  %s2421_s6 = sadd.s32 32767, %s2420_s27  ;;  %s4369_s22 = sld [smem:[#allocation80_spill]]  ;;  %v1219_v18 = vmul.bf16 %v1217_v61, %v3745_v58  ;;  %v2145_v0 = vstv %s3409_s3 }
 0x38c   :  { %v1527_v3 = vstv %s4365_s29  ;;  %s4370_s10 = sld [smem:[#allocation90_spill]]  ;;  %s3876_s30 = sor.u32 %s2406_s26, %s2405_s28  ;;  %v1340_v23 = vmul.bf16 %v1338_v52, %v3789_v16  ;;  %v1702_v29 = vadd.bf16 %v1701_v5, %v1496_v63 }
 0x38d   :  { %v1716_v7 = vstv %s4366_s21  ;;  %4371 = sst [smem:[#allocation14_spill]] %s3876_s30  ;;  %s2422_s0 = sadd.s32 %s3810_s7, %s2421_s6  ;;  %v1529_v2 = vmul.bf16 %v1527_v3, %v3822_v31  ;;  %v3910_v11 = vadd.bf16 %v1219_v18, %v1014_v39 }
 0x38e   :  { %s4372_s29 = sld [smem:[#allocation101_spill]]  ;;  %s2423_s21 = sand.u32 4294901760, %s2422_s0  ;;  %v1718_v28 = vmul.bf16 %v1716_v7, %v3852_v41  ;;  %v1341_v1 = vadd.bf16 %v1340_v23, %v3849_v36 }
 0x38f   :  { %v1905_v19 = vstv %s4367_s13  ;;  %s3888_s23 = sld [smem:[#allocation2 + $0x8a]]  ;;  %s4681_s21 = smov (%p2418_p3, %s2423_s21), 2143289344  ;;  %v1530_v35 = vadd.bf16 %v1529_v2, %v1324_v22 }
 0x390   :  { %v1355_v26 = vstv %s4368_s24  ;;  %s4373_s28 = sld [smem:[#allocation112_spill]]  ;;  %p2435_p4 = scmp.ne.f32.partialorder %s3863_s14, %s3863_s14  ;;  %v1907_v43 = vmul.bf16 %v1905_v19, %v3874_v8  ;;  %v1719_v37 = vadd.bf16 %v1718_v28, %v1513_v55  ;;  %v2162_v55 = vstv %s3415_s4 }
 0x391   :  { %v1372_v27 = vstv %s4369_s22  ;;  %s2436_s27 = sshrl.u32 %s3863_s14, 16  ;;  %s4374_s13 = sld [smem:[#allocation91_spill]]  ;;  %v1357_v17 = vmul.bf16 %v1355_v26, %v3789_v16 }
 0x392   :  { %v1544_v21 = vstv %s4370_s10  ;;  %s2426_s22 = sshrl.u32 %s4681_s21, 16  ;;  %s2437_s7 = sand.u32 1, %s2436_s27  ;;  %v3917_v34 = vmul.bf16 %v1372_v27, %v3789_v16  ;;  %v1908_v45 = vadd.bf16 %v1907_v43, %v1702_v29  ;;  %v2147_v27 = vmul.bf16 %v2145_v0, %v3905_v44 }
 0x393   :  { %s4375_s26 = sld [smem:[#allocation102_spill]]  ;;  %s2427_s24 = sshll.u32 %s2426_s22, 16  ;;  %v1546_v38 = vmul.bf16 %v1544_v21, %v3822_v31  ;;  %v1358_v56 = vadd.bf16 %v1357_v17, %v3857_v57 }
 0x394   :  { %v1733_v30 = vstv %s4372_s29  ;;  %s4376_s6 = sld [smem:[#allocation113_spill]]  ;;  %s2438_s10 = sadd.s32 32767, %s2437_s7  ;;  %v1375_v4 = vadd.bf16 %v3917_v34, %v3865_v54  ;;  %v2114_v61 = vadd.bf16 %v2113_v51, %v1908_v45 }
 0x395   :  { %s4377_s0 = sld [smem:[#allocation72_spill]]  ;;  %s3921_s29 = sor.u32 %s2427_s24, %s2426_s22  ;;  %v1735_v39 = vmul.bf16 %v1733_v30, %v3852_v41  ;;  %v1547_v9 = vadd.bf16 %v1546_v38, %v1341_v1  ;;  %v2164_v38 = vmul.bf16 %v2162_v55, %v3905_v44 }
 0x396   :  { %v1922_v24 = vstv %s4373_s28  ;;  %s2439_s21 = sadd.s32 %s3863_s14, %s2438_s10  ;;  %s4378_s8 = sld [smem:[#allocation81_spill]]  ;;  %v2268_v2 = vmul.bf16 1056980736, %v2114_v61 }
 0x397   :  { %v1561_v40 = vstv %s4374_s13  ;;  %s2440_s28 = sand.u32 4294901760, %s2439_s21  ;;  %p2456_p5 = scmp.ne.f32.partialorder %s3888_s23, %s3888_s23  ;;  %v1924_v25 = vmul.bf16 %v1922_v24, %v3874_v8  ;;  %v1736_v57 = vadd.bf16 %v1735_v39, %v1530_v35 }
 0x398   :  { %s4379_s27 = sld [smem:[#allocation92_spill]]  ;;  %s4380_s13 = sld [smem:[#allocation103_spill]]  ;;  %v1563_v47 = vmul.bf16 %v1561_v40, %v3822_v31  ;;  %2898 = vtanh.bf16 %v2268_v2 }
 0x399   :  { %v1750_v50 = vstv %s4375_s26  ;;  %s4683_s28 = smov (%p2435_p4, %s2440_s28), 2143289344  ;;  %s4381_s22 = sld [smem:[#allocation114_spill]]  ;;  %v1925_v60 = vadd.bf16 %v1924_v25, %v1719_v37  ;;  %v2179_v25 = vstv %s3426_s16 }
 0x39a   :  { %v1939_v48 = vstv %s4376_s6  ;;  %s2457_s7 = sshrl.u32 %s3888_s23, 16  ;;  %s3939_s26 = sld [smem:[#allocation2 + $0x8b]]  ;;  %v1752_v13 = vmul.bf16 %v1750_v50, %v3852_v41  ;;  %v1564_v63 = vadd.bf16 %v1563_v47, %v1358_v56 }
 0x39b   :  { %v1234_v53 = vstv %s4377_s0  ;;  %s4382_s14 = sld [smem:[#allocation82_spill]]  ;;  %s2443_s24 = sshrl.u32 %s4683_s28, 16  ;;  %v1941_v49 = vmul.bf16 %v1939_v48, %v3874_v8  ;;  %v2131_v26 = vadd.bf16 %v2130_v62, %v1925_v60 }
 0x39c   :  { %v1389_v36 = vstv %s4378_s8  ;;  %s2458_s6 = sand.u32 1, %s2457_s7  ;;  %s4383_s2 = sld [smem:[#allocation93_spill]]  ;;  %v1753_v7 = vadd.bf16 %v1752_v13, %v1547_v9  ;;  %v2181_v9 = vmul.bf16 %v2179_v25, %v3905_v44  ;;  %v2196_v13 = vstv %s3431_s9 }
 0x39d   :  { %s2444_s10 = sshll.u32 %s2443_s24, 16  ;;  %s2459_s21 = sadd.s32 32767, %s2458_s6  ;;  %v1391_v20 = vmul.bf16 %v1389_v36, %v3789_v16  ;;  %v1942_v19 = vadd.bf16 %v1941_v49, %v1736_v57  ;;  %v2336_v37 = vmul.bf16 1056980736, %v2131_v26  ;;  %v1236_v57 = vmul.bf16 %v1234_v53, %v3745_v58 }
 0x39e   :  { %v1578_v42 = vstv %s4379_s27  ;;  %v1767_v59 = vstv %s4380_s13  ;;  %s4384_s8 = sld [smem:[#allocation104_spill]]  ;;  %s3950_s30 = sor.u32 %s2444_s10, %s2443_s24 }
 0x39f   :  { %v1956_v54 = vstv %s4381_s22  ;;  %s4385_s28 = sld [smem:[#allocation115_spill]]  ;;  %s2460_s7 = sadd.s32 %s3888_s23, %s2459_s21  ;;  %v1580_v3 = vmul.bf16 %v1578_v42, %v3822_v31  ;;  %v1769_v10 = vmul.bf16 %v1767_v59, %v3852_v41  ;;  %v1392_v21 = vadd.bf16 %v1391_v20, %v3882_v12 }
 0x3a0   :  { %s2461_s27 = sand.u32 4294901760, %s2460_s7  ;;  %s3956_s13 = sld [smem:[#allocation2 + $0x8c]]  ;;  %v1958_v22 = vmul.bf16 %v1956_v54, %v3874_v8  ;;  %v2148_v35 = vadd.bf16 %v2147_v27, %v1942_v19  ;;  %2900 = vtanh.bf16 %v2336_v37 }
 0x3a1   :  { %v1406_v52 = vstv %s4382_s14  ;;  %s4386_s22 = sld [smem:[#allocation83_spill]]  ;;  %s4685_s27 = smov (%p2456_p5, %s2461_s27), 2143289344  ;;  %v1581_v43 = vadd.bf16 %v1580_v3, %v1375_v4  ;;  %v1770_v24 = vadd.bf16 %v1769_v10, %v1564_v63  ;;  %v2213_v10 = vstv %s3442_s20 }
 0x3a2   :  { %v1595_v5 = vstv %s4383_s2  ;;  %s4387_s3 = sld [smem:[#allocation94_spill]]  ;;  %p2473_p6 = scmp.ne.f32.partialorder %s3939_s26, %s3939_s26  ;;  %v1408_v28 = vmul.bf16 %v1406_v52, %v3789_v16  ;;  %v1959_v1 = vadd.bf16 %v1958_v22, %v1753_v7  ;;  %v2374_v42 = vmul.bf16 1056980736, %v2148_v35 }
 0x3a3   :  { %s2474_s14 = sshrl.u32 %s3939_s26, 16  ;;  %s4388_s24 = sld [smem:[#allocation105_spill]]  ;;  %v1597_v30 = vmul.bf16 %v1595_v5, %v3822_v31  ;;  %v1237_v5 = vadd.bf16 %v1236_v57, %v1031_v46  ;;  %v2215_v26 = vmul.bf16 %v2213_v10, %v3905_v44 }
 0x3a4   :  { %v1784_v18 = vstv %s4384_s8  ;;  %s2464_s6 = sshrl.u32 %s4685_s27, 16  ;;  %s2475_s23 = sand.u32 1, %s2474_s14  ;;  %v1409_v39 = vadd.bf16 %v1408_v28, %v3884_v15  ;;  %v2165_v36 = vadd.bf16 %v2164_v38, %v1959_v1  ;;  %2902 = vtanh.bf16 %v2374_v42 }
 0x3a5   :  { %v1973_v23 = vstv %s4385_s28  ;;  %s4389_s2 = sld [smem:[#allocation116_spill]]  ;;  %s2465_s10 = sshll.u32 %s2464_s6, 16  ;;  %v1786_v32 = vmul.bf16 %v1784_v18, %v3852_v41  ;;  %v3992_v45 = vadd.bf16 %v1597_v30, %v1392_v21  ;;  %v2230_v28 = vstv %s3452_s12 }
 0x3a6   :  { %s2476_s21 = sadd.s32 32767, %s2475_s23  ;;  %s3978_s4 = sor.u32 %s2465_s10, %s2464_s6  ;;  %v1975_v34 = vmul.bf16 %v1973_v23, %v3874_v8  ;;  %v2412_v52 = vmul.bf16 1056980736, %v2165_v36  ;;  %v2899_v23 = vpop.eup %2898  ;;  %v2232_v1 = vmul.bf16 %v2230_v28, %v3905_v44  ;;  %v2353_v42 = vstv %s3747_s17 }
 0x3a7   :  { %v1423_v29 = vstv %s4386_s22  ;;  %s2477_s8 = sadd.s32 %s3939_s26, %s2476_s21  ;;  %s4390_s28 = sld [smem:[#allocation95_spill]]  ;;  %v1787_v56 = vadd.bf16 %v1786_v32, %v1581_v43  ;;  %v2270_v30 = vmul.bf16 1056980736, %v2899_v23 }
 0x3a8   :  { %v1612_v17 = vstv %s4387_s3  ;;  %s2478_s7 = sand.u32 4294901760, %s2477_s8  ;;  %p2494_p7 = scmp.ne.f32.partialorder %s3956_s13, %s3956_s13  ;;  %v1425_v50 = vmul.bf16 %v1423_v29, %v3789_v16  ;;  %v1976_v33 = vadd.bf16 %v1975_v34, %v1770_v24  ;;  %2904 = vtanh.bf16 %v2412_v52 }
 0x3a9   :  { %v1801_v12 = vstv %s4388_s24  ;;  %s4391_s27 = sld [smem:[#allocation106_spill]]  ;;  %s4687_s7 = smov (%p2473_p6, %s2478_s7), 2143289344  ;;  %v1614_v48 = vmul.bf16 %v1612_v17, %v3822_v31  ;;  %v2271_v37 = vadd.bf16 1056980736, %v2270_v30  ;;  %v2333_v52 = vstv %s3693_s11 }
 0x3aa   :  { %s2495_s22 = sshrl.u32 %s3956_s13, 16  ;;  %s3996_s3 = sld [smem:[#allocation2 + $0x8d]]  ;;  %v1803_v47 = vmul.bf16 %v1801_v12, %v3852_v41  ;;  %v1426_v59 = vadd.bf16 %v1425_v50, %v3910_v11  ;;  %v2198_v11 = vmul.bf16 %v2196_v13, %v3905_v44  ;;  %v2182_v3 = vadd.bf16 %v2181_v9, %v1976_v33 }
 0x3ab   :  { %v1990_v40 = vstv %s4389_s2  ;;  %s2481_s26 = sshrl.u32 %s4687_s7, 16  ;;  %s4392_s14 = sld [smem:[#allocation84_spill]]  ;;  %v1615_v54 = vadd.bf16 %v1614_v48, %v1409_v39  ;;  %v2901_v43 = vpop.eup %2900  ;;  %v2264_v9 = vstv %s3516_s25  ;;  %v2301_v13 = vstv %s3604_s15 }
 0x3ac   :  { %s2496_s24 = sand.u32 1, %s2495_s22  ;;  %s4393_s6 = sld [smem:[#allocation117_spill]]  ;;  %v1992_v4 = vmul.bf16 %v1990_v40, %v3874_v8  ;;  %v1804_v62 = vadd.bf16 %v1803_v47, %v3992_v45  ;;  %v2450_v27 = vmul.bf16 1056980736, %v2182_v3  ;;  %v2247_v40 = vstv %s3479_s5 }
 0x3ad   :  { %v1629_v51 = vstv %s4390_s28  ;;  %s2482_s16 = sshll.u32 %s2481_s26, 16  ;;  %s2497_s23 = sadd.s32 32767, %s2496_s24  ;;  %v2338_v39 = vmul.bf16 1056980736, %v2901_v43  ;;  %v2285_v45 = vstv %s3558_s1 }
 0x3ae   :  { %s4394_s2 = sld [smem:[#allocation107_spill]]  ;;  %s4005_s10 = sor.u32 %s2482_s16, %s2481_s26  ;;  %v1631_v61 = vmul.bf16 %v1629_v51, %v3822_v31  ;;  %v1993_v53 = vadd.bf16 %v1992_v4, %v1787_v56  ;;  %2906 = vtanh.bf16 %v2450_v27  ;;  %v2287_v33 = vmul.bf16 %v2285_v45, %v2271_v37 }
 0x3af   :  { %v1818_v15 = vstv %s4391_s27  ;;  %s2498_s21 = sadd.s32 %s3956_s13, %s2497_s23  ;;  %s4395_s8 = sld [smem:[#allocation118_spill]]  ;;  %v2903_v50 = vpop.eup %2902  ;;  %v2339_v4 = vadd.bf16 1056980736, %v2338_v39 }
 0x3b0   :  { %s2499_s28 = sand.u32 4294901760, %s2498_s21  ;;  %s4014_s7 = sld [smem:[#allocation2 + $0x8e]]  ;;  %v1820_v20 = vmul.bf16 %v1818_v15, %v3852_v41  ;;  %v1632_v18 = vadd.bf16 %v1631_v61, %v1426_v59  ;;  %v2199_v6 = vadd.bf16 %v2198_v11, %v1993_v53  ;;  %v2376_v36 = vmul.bf16 1056980736, %v2903_v50 }
 0x3b1   :  { %v1440_v49 = vstv %s4392_s14  ;;  %s4689_s28 = smov (%p2494_p7, %s2499_s28), 2143289344  ;;  %s4396_s9 = sld [smem:[#allocation96_spill]]  ;;  %v2303_v61 = vadd.bf16 %v2301_v13, %v2287_v33  ;;  %v2391_v53 = vstv %s3840_s18 }
 0x3b2   :  { %v2007_v60 = vstv %s4393_s6  ;;  %p2511_p8 = scmp.ne.f32.partialorder %s3996_s3, %s3996_s3  ;;  %s2512_s0 = sshrl.u32 %s3996_s3, 16  ;;  %v1442_v7 = vmul.bf16 %v1440_v49, %v3789_v16  ;;  %v1821_v22 = vadd.bf16 %v1820_v20, %v1615_v54  ;;  %v2488_v32 = vmul.bf16 1056980736, %v2199_v6 }
 0x3b3   :  { %v2009_v63 = vmul.bf16 %v2007_v60, %v3874_v8  ;;  %s2502_s27 = sshrl.u32 %s4689_s28, 16  ;;  %s2513_s22 = sand.u32 1, %s2512_s0  ;;  %v2905_v15 = vpop.eup %2904  ;;  %v2317_v49 = vstv %s3645_s19  ;;  %v2266_v54 = vmul.bf16 %v2264_v9, %v3905_v44  ;;  %v2377_v20 = vadd.bf16 1056980736, %v2376_v36 }
 0x3b4   :  { %v1835_v58 = vstv %s4394_s2  ;;  %s2503_s13 = sshll.u32 %s2502_s27, 16  ;;  %s2514_s26 = sadd.s32 32767, %s2513_s22  ;;  %v1443_v55 = vadd.bf16 %v1442_v7, %v1237_v5  ;;  %2908 = vtanh.bf16 %v2488_v32  ;;  %v2414_v60 = vmul.bf16 1056980736, %v2905_v15 }
 0x3b5   :  { %v2024_v0 = vstv %s4395_s8  ;;  %s4397_s14 = sld [smem:[#allocation119_spill]]  ;;  %s4035_s24 = sor.u32 %s2503_s13, %s2502_s27  ;;  %v1837_v14 = vmul.bf16 %v1835_v58, %v3852_v41  ;;  %v2010_v46 = vadd.bf16 %v2009_v63, %v1804_v62  ;;  %v2355_v62 = vmul.bf16 %v2353_v42, %v2339_v4 }
 0x3b6   :  { %s2515_s6 = sadd.s32 %s3996_s3, %s2514_s26  ;;  %s4398_s16 = sld [smem:[#allocation108_spill]]  ;;  %v2026_v16 = vmul.bf16 %v2024_v0, %v3874_v8  ;;  %v2319_v11 = vmul.bf16 %v2317_v49, %v2271_v37  ;;  %v2415_v0 = vadd.bf16 1056980736, %v2414_v60  ;;  %v2393_v10 = vmul.bf16 %v2391_v53, %v2377_v20 }
 0x3b7   :  { %v1646_v19 = vstv %s4396_s9  ;;  %s2516_s20 = sand.u32 4294901760, %s2515_s6  ;;  %p2532_p9 = scmp.ne.f32.partialorder %s4014_s7, %s4014_s7  ;;  %v1838_v17 = vadd.bf16 %v1837_v14, %v1632_v18  ;;  %v2216_v12 = vadd.bf16 %v2215_v26, %v2010_v46  ;;  %v2356_v7 = vadd.bf16 %v2355_v62, %v2303_v61 }
 0x3b8   :  { %s4691_s20 = smov (%p2511_p8, %s2516_s20), 2143289344  ;;  %v1648_v2 = vmul.bf16 %v1646_v19, %v3822_v31  ;;  %s2533_s23 = sshrl.u32 %s4014_s7, 16  ;;  %v2027_v24 = vadd.bf16 %v2026_v16, %v1821_v22  ;;  %v2429_v19 = vstv %s3921_s29  ;;  %v2335_v22 = vadd.bf16 %v2333_v52, %v2319_v11  ;;  %v56_v52 = vld [vmem:[#allocation7] sm:$0xff] }
 0x3b9   :  { %s4050_s2 = sld [smem:[#allocation2 + $0x8f]]  ;;  %s2519_s21 = sshrl.u32 %s4691_s20, 16  ;;  %v2526_v51 = vmul.bf16 1056980736, %v2216_v12  ;;  %v2907_v58 = vpop.eup %2906  ;;  %v2394_v6 = vadd.bf16 %v2393_v10, %v2356_v7  ;;  %v2431_v46 = vmul.bf16 %v2429_v19, %v2415_v0 }
 0x3ba   :  { %s2534_s8 = sand.u32 1, %s2533_s23  ;;  %s4399_s28 = sld [smem:[#allocation120_spill]]  ;;  %v1649_v34 = vadd.bf16 %v1648_v2, %v1443_v55  ;;  %v2233_v48 = vadd.bf16 %v2232_v1, %v2027_v24  ;;  %v2452_v18 = vmul.bf16 1056980736, %v2907_v58  ;;  %v2467_v2 = vstv %s3978_s4 }
 0x3bb   :  { %v2041_v21 = vstv %s4397_s14  ;;  %s2520_s3 = sshll.u32 %s2519_s21, 16  ;;  %s2535_s9 = sadd.s32 32767, %s2534_s8  ;;  %2910 = vtanh.bf16 %v2526_v51  ;;  %v2432_v43 = vadd.bf16 %v2431_v46, %v2394_v6 }
 0x3bc   :  { %v1852_v29 = vstv %s4398_s16  ;;  %v2043_v31 = vmul.bf16 %v2041_v21, %v3874_v8  ;;  %s4055_s12 = sor.u32 %s2520_s3, %s2519_s21  ;;  %s2536_s0 = sadd.s32 %s4014_s7, %s2535_s9  ;;  %v2564_v57 = vmul.bf16 1056980736, %v2233_v48  ;;  %v2453_v26 = vadd.bf16 1056980736, %v2452_v18 }
 0x3bd   :  { %v1854_v38 = vmul.bf16 %v1852_v29, %v3852_v41  ;;  %s2537_s27 = sand.u32 4294901760, %s2536_s0  ;;  %s4060_s22 = sld [smem:[#allocation2 + $0x90]]  ;;  %v2249_v41 = vmul.bf16 %v2247_v40, %v3905_v44  ;;  %v2446_v29 = vstv %s3950_s30  ;;  %v2522_v48 = vstv %s4055_s12 }
 0x3be   :  { %s4693_s27 = smov (%p2532_p9, %s2537_s27), 2143289344  ;;  %v2044_v25 = vadd.bf16 %v2043_v31, %v1838_v17  ;;  %s4085_s23 = sld [smem:[#allocation2 + $0x91]]  ;;  %2912 = vtanh.bf16 %v2564_v57  ;;  %v2469_v17 = vmul.bf16 %v2467_v2, %v2453_v26  ;;  %v2505_v31 = vstv %s4035_s24 }
 0x3bf   :  { %p2549_p10 = scmp.ne.f32.partialorder %s4050_s2, %s4050_s2  ;;  %s2550_s13 = sshrl.u32 %s4050_s2, 16  ;;  %v1855_v56 = vadd.bf16 %v1854_v38, %v1649_v34  ;;  %v2909_v3 = vpop.eup %2908  ;;  %v2448_v1 = vmul.bf16 %v2446_v29, %v2415_v0  ;;  %v2484_v34 = vstv %s4005_s10 }
 0x3c0   :  { %v2058_v35 = vstv %s4399_s28  ;;  %s2540_s5 = sshrl.u32 %s4693_s27, 16  ;;  %s2551_s26 = sand.u32 1, %s2550_s13  ;;  %v2490_v16 = vmul.bf16 1056980736, %v2909_v3  ;;  %v2470_v38 = vadd.bf16 %v2469_v17, %v2432_v43 }
 0x3c1   :  { %v2060_v47 = vmul.bf16 %v2058_v35, %v3874_v8  ;;  %s2541_s1 = sshll.u32 %s2540_s5, 16  ;;  %s2552_s7 = sadd.s32 32767, %s2551_s26  ;;  %v2250_v8 = vadd.bf16 %v2249_v41, %v2044_v25  ;;  %v2486_v25 = vmul.bf16 %v2484_v34, %v2453_v26 }
 0x3c2   :  { %s4072_s14 = sor.u32 %s2541_s1, %s2540_s5  ;;  %s2553_s6 = sadd.s32 %s4050_s2, %s2552_s7  ;;  %v2491_v30 = vadd.bf16 1056980736, %v2490_v16 }
 0x3c3   :  { %s2554_s16 = sand.u32 4294901760, %s2553_s6  ;;  %p2570_p11 = scmp.ne.f32.partialorder %s4060_s22, %s4060_s22  ;;  %v2061_v59 = vadd.bf16 %v2060_v47, %v1855_v56  ;;  %v2602_v44 = vmul.bf16 1056980736, %v2250_v8  ;;  %v2543_v50 = vstv %s4072_s14 }
 0x3c4   :  { %s4695_s16 = smov (%p2549_p10, %s2554_s16), 2143289344  ;;  %s2571_s20 = sshrl.u32 %s4060_s22, 16  ;;  %v2507_v40 = vmul.bf16 %v2505_v31, %v2491_v30 }
 0x3c5   :  { %s4400_s25 = sld [smem:[#allocation49_spill]]  ;;  %s2557_s15 = sshrl.u32 %s4695_s16, 16  ;;  %v2267_v5 = vadd.bf16 %v2266_v54, %v2061_v59  ;;  %2914 = vtanh.bf16 %v2602_v44 }
 0x3c6   :  { %s2572_s17 = sand.u32 1, %s2571_s20  ;;  %s2558_s2 = sshll.u32 %s2557_s15, 16  ;;  %v2911_v55 = vpop.eup %2910  ;;  %v2508_v41 = vadd.bf16 %v2507_v40, %v2470_v38 }
 0x3c7   :  { %s2573_s21 = sadd.s32 32767, %s2572_s17  ;;  %s4089_s19 = sor.u32 %s2558_s2, %s2557_s15  ;;  %v2640_v27 = vmul.bf16 1056980736, %v2267_v5  ;;  %v2528_v24 = vmul.bf16 1056980736, %v2911_v55 }
 0x3c8   :  { %s2574_s8 = sadd.s32 %s4060_s22, %s2573_s21  ;;  %s4401_s3 = sld [smem:[#allocation14_spill]]  ;;  %v2560_v9 = vstv %s4089_s19 }
 0x3c9   :  { %s2575_s28 = sand.u32 4294901760, %s2574_s8  ;;  %s4094_s9 = sld [smem:[#allocation2 + $0x92]]  ;;  %2916 = vtanh.bf16 %v2640_v27  ;;  %v2913_v32 = vpop.eup %2912  ;;  %v2529_v35 = vadd.bf16 1056980736, %v2528_v24  ;;  %v3006_v24 = vmov 0  }
 0x3ca   :  { %s4697_s28 = smov (%p2570_p11, %s2575_s28), 2143289344  ;;  %p2587_p12 = scmp.ne.f32.partialorder %s4085_s23, %s4085_s23  ;;  %v2566_v37 = vmul.bf16 1056980736, %v2913_v32 }
 0x3cb   :  { %v2370_v63 = vstv %s4400_s25  ;;  %s2588_s18 = sshrl.u32 %s4085_s23, 16  ;;  %s2578_s11 = sshrl.u32 %s4697_s28, 16  ;;  %v2545_v51 = vmul.bf16 %v2543_v50, %v2529_v35  ;;  %v2562_v49 = vmul.bf16 %v2560_v9, %v2529_v35 }
 0x3cc   :  { %v2372_v23 = vmul.bf16 %v2370_v63, %v2339_v4  ;;  %s2589_s0 = sand.u32 1, %s2588_s18  ;;  %s2579_s27 = sshll.u32 %s2578_s11, 16  ;;  %v2567_v56 = vadd.bf16 1056980736, %v2566_v37  ;;  %v2524_v4 = vmul.bf16 %v2522_v48, %v2491_v30 }
 0x3cd   :  { %s2590_s22 = sadd.s32 32767, %s2589_s0  ;;  %s4104_s29 = sor.u32 %s2579_s27, %s2578_s11  ;;  %v2546_v13 = vadd.bf16 %v2545_v51, %v2508_v41 }
 0x3ce   :  { %v2408_v14 = vstv %s4401_s3  ;;  %s2591_s13 = sadd.s32 %s4085_s23, %s2590_s22  ;;  %v2373_v21 = vadd.bf16 %v2372_v23, %v2335_v22  ;;  %s4115_s1 = sld [smem:[#allocation2 + $0x93]]  ;;  %v2581_v15 = vstv %s4104_s29 }
 0x3cf   :  { %s2592_s5 = sand.u32 4294901760, %s2591_s13  ;;  %p2608_p13 = scmp.ne.f32.partialorder %s4094_s9, %s4094_s9  ;;  %v2410_v28 = vmul.bf16 %v2408_v14, %v2377_v20  ;;  %v2583_v42 = vmul.bf16 %v2581_v15, %v2567_v56 }
 0x3d0   :  { %s4699_s5 = smov (%p2587_p12, %s2592_s5), 2143289344  ;;  %s2609_s26 = sshrl.u32 %s4094_s9, 16  ;;  %v2915_v39 = vpop.eup %2914 }
 0x3d1   :  { %s2595_s7 = sshrl.u32 %s4699_s5, 16  ;;  %s2610_s4 = sand.u32 1, %s2609_s26  ;;  %v2411_v12 = vadd.bf16 %v2410_v28, %v2373_v21  ;;  %v2604_v47 = vmul.bf16 1056980736, %v2915_v39  ;;  %v2584_v61 = vadd.bf16 %v2583_v42, %v2546_v13 }
 0x3d2   :  { %s2596_s6 = sshll.u32 %s2595_s7, 16  ;;  %s2611_s30 = sadd.s32 32767, %s2610_s4 }
 0x3d3   :  { %s4118_s16 = sor.u32 %s2596_s6, %s2595_s7  ;;  %s2612_s20 = sadd.s32 %s4094_s9, %s2611_s30  ;;  %v2449_v45 = vadd.bf16 %v2448_v1, %v2411_v12  ;;  %v2605_v8 = vadd.bf16 1056980736, %v2604_v47 }
 0x3d4   :  { %s2613_s23 = sand.u32 4294901760, %s2612_s20  ;;  %s4122_s25 = sld [smem:[#allocation2 + $0x94]]  ;;  %v2917_v36 = vpop.eup %2916  ;;  %v2598_v54 = vstv %s4118_s16 }
 0x3d5   :  { %s4701_s23 = smov (%p2608_p13, %s2613_s23), 2143289344  ;;  %p2625_p0 = scmp.ne.f32.partialorder %s4115_s1, %s4115_s1  ;;  %v2487_v33 = vadd.bf16 %v2486_v25, %v2449_v45  ;;  %v2642_v60 = vmul.bf16 1056980736, %v2917_v36  ;;  %v2600_v58 = vmul.bf16 %v2598_v54, %v2567_v56 }
 0x3d6   :  { %s2626_s24 = sshrl.u32 %s4115_s1, 16  ;;  %s2616_s10 = sshrl.u32 %s4701_s23, 16 }
 0x3d7   :  { %s2627_s15 = sand.u32 1, %s2626_s24  ;;  %s2617_s17 = sshll.u32 %s2616_s10, 16  ;;  %v2525_v59 = vadd.bf16 %v2524_v4, %v2487_v33  ;;  %v2643_v53 = vadd.bf16 1056980736, %v2642_v60 }
 0x3d8   :  { %s2628_s2 = sadd.s32 32767, %s2627_s15  ;;  %s2618_s14 = sor.u32 %s2617_s17, %s2616_s10 }
 0x3d9   :  { %s2629_s21 = sadd.s32 %s4115_s1, %s2628_s2  ;;  %s4141_s28 = sld [smem:[#allocation2 + $0x95]]  ;;  %v2619_v57 = vstv %s2618_s14  ;;  %v2563_v20 = vadd.bf16 %v2562_v49, %v2525_v59 }
 0x3da   :  { %s2630_s8 = sand.u32 4294901760, %s2629_s21  ;;  %p2646_p1 = scmp.ne.f32.partialorder %s4122_s25, %s4122_s25  ;;  %v2621_v62 = vmul.bf16 %v2619_v57, %v2605_v8 }
 0x3db   :  { %s4703_s8 = smov (%p2625_p0, %s2630_s8), 2143289344  ;;  %s2647_s12 = sshrl.u32 %s4122_s25, 16  ;;  %v2601_v3 = vadd.bf16 %v2600_v58, %v2563_v20 }
 0x3dc   :  { %s2633_s3 = sshrl.u32 %s4703_s8, 16  ;;  %s2648_s9 = sand.u32 1, %s2647_s12  ;;  %v2622_v44 = vadd.bf16 %v2621_v62, %v2584_v61 }
 0x3dd   :  { %s2634_s18 = sshll.u32 %s2633_s3, 16  ;;  %s2649_s11 = sadd.s32 32767, %s2648_s9 }
 0x3de   :  { %s2635_s0 = sor.u32 %s2634_s18, %s2633_s3  ;;  %s2650_s19 = sadd.s32 %s4122_s25, %s2649_s11 }
 0x3df   :  { %s2651_s27 = sand.u32 4294901760, %s2650_s19  ;;  %s4145_s22 = sld [smem:[#allocation2 + $0x98]]  ;;  %v2636_v11 = vstv %s2635_s0 }
 0x3e0   :  { %s4705_s27 = smov (%p2646_p1, %s2651_s27), 2143289344  ;;  %p2663_p2 = scmp.ne.f32.partialorder %s4141_s28, %s4141_s28  ;;  %v2638_v5 = vmul.bf16 %v2636_v11, %v2605_v8 }
 0x3e1   :  { %s2664_s29 = sshrl.u32 %s4141_s28, 16  ;;  %s2654_s13 = sshrl.u32 %s4705_s27, 16 }
 0x3e2   :  { %s2665_s5 = sand.u32 1, %s2664_s29  ;;  %s2655_s26 = sshll.u32 %s2654_s13, 16  ;;  %v2639_v19 = vadd.bf16 %v2638_v5, %v2601_v3 }
 0x3e3   :  { %s2666_s1 = sadd.s32 32767, %s2665_s5  ;;  %s2656_s7 = sor.u32 %s2655_s26, %s2654_s13 }
 0x3e4   :  { %s2667_s4 = sadd.s32 %s4141_s28, %s2666_s1  ;;  %v2657_v63 = vstv %s2656_s7  ;;  %s2870_s30 = sld [smem:[#allocation2 + $0x99]] }
 0x3e5   :  { %s2668_s6 = sand.u32 4294901760, %s2667_s4  ;;  %v2683_v0 = vstv %s4145_s22  ;;  %v2659_v7 = vmul.bf16 %v2657_v63, %v2643_v53  ;;  %s2871_s16 = sld [smem:[#allocation2 + $0x9a]] }
 0x3e6   :  { %s4707_s6 = smov (%p2663_p2, %s2668_s6), 2143289344  ;;  %s2872_s20 = sld [smem:[#allocation2 + $0x9b]]  ;;  %v2684_v18 = vmul.f32 %v2683_v0, %v56_v52 }
 0x3e7   :  { %v2660_v10 = vadd.bf16 %v2659_v7, %v2622_v44  ;;  %s2671_s23 = sshrl.u32 %s4707_s6, 16  ;;  %s4402_s17 = sld [smem:[#allocation122_spill]] }
 0x3e8   :  { %s2672_s25 = sshll.u32 %s2671_s23, 16  ;;  %s3005_s2 = smov [#allocation9]  }
 0x3e9   :  { %s2673_s24 = sor.u32 %s2672_s25, %s2671_s23  ;;  %v2678_v22 = vunpack.c.l.bf16 %v2660_v10  ;;  %s2707_s14 = sshll.u32 %s3005_s2, 4  ;;  %s2708_s14 = int_to_ptr.vmem [resolvable:$true] %s2707_s14 }
 0x3ea   :  { %v2674_v14 = vstv %s2673_s24  ;;  %v2686_v16 = vstv %s2870_s30  ;;  %s2972_s21 = scalar_lea.vmem %s2708_s14, 128  ;;  %p2977_p4 = scmp.lt.s32.totalorder %s2708_s14, %s2708_s14 }
 0x3eb   :  { %v2676_v6 = vmul.bf16 %v2674_v14, %v2643_v53  ;;  %v2687_v46 = vadd.f32 %v2686_v16, %v2684_v18  ;;  %v2690_v26 = vstv %s2871_s16  ;;  %v2679_v2 = vmax.f32 %v2678_v22, 0.0  ;;  %p2973_p3 = scmp.ne.s32.totalorder %s2708_s14, %s2972_s21  ;;  %p2978_p5 = scmp.lt.s32.totalorder %s2972_s21, %s2972_s21 }
 0x3ec   :  { %v2693_v27 = vstv %s2872_s20 }
 0x3ed   :  { %v57_v23 = vld [vmem:[%s4402_s17] sm:$0xff]  ;;  %v2677_v55 = vadd.bf16 %v2676_v6, %v2639_v19  ;;  %v2688_v21 = vmax.f32 %v2687_v46, 0.0  ;;  %p2979_p6 = por %p2978_p5, %p2977_p4 }
 0x3ee   :  { %v2691_v28 = vmul.f32 %v2690_v26, %v57_v23 }
 0x3ef   :  { %v2680_v29 = vunpack.c.l.bf16 %v2677_v55  ;;  %vm2696_vm0 = vcmp.lt.f32.partialorder %v2688_v21, %v2679_v2  ;;  %p2980_p7 = pnand %p2979_p6, %p2973_p3 }
 0x3f0   :  { %v2694_v30 = vadd.f32 %v2693_v27, %v2691_v28 }
 0x3f1   :  { %v2681_v43 = vmax.f32 %v2680_v29, 0.0 }
 0x3f2   :  { %v2695_v17 = vmax.f32 %v2694_v30, 0.0 }
 0x3f4   :  { %vm2697_vm1 = vcmp.gt.f32.partialorder %v2695_v17, %v2681_v43 }
 0x3f5   :  { %vm2698_vm2 = vmand %vm2696_vm0, %vm2697_vm1 }
 0x3f6   :  { %v2699_v32 = vsel %vm2698_vm2, 1, %v3006_v24 }
 0x3f7   :  { %2700 = vst [vmem:[#allocation9] sm:$0xff] %v2699_v32 }
 0x3f8   :  { %2983 = shalt.err (!%p2980_p7)
}
 0x3f9   :  { %s4403_s28 = sld [smem:[#allocation123_spill]] }
 0x3ff   :  { %s2984_s3 = scalar_lea.hbm %s4403_s28, 128 }
 0x400   :  { %p2985_p8 = scmp.ne.s32.totalorder %s4403_s28, %s2984_s3  ;;  %p2988_p9 = scmp.lt.u32.totalorder %s2984_s3, %s4403_s28 }
 0x402   :  { %p2990_p10 = pnand %p2988_p9, %p2985_p8 }
 0x404   :  { %2993 = shalt.err (!%p2990_p10)
}
 0x405   :  { %2710 = dma.vmem_to_hbm [thread:$0]  %s2708_s14, 128, %s4403_s28, [#allocation4]  }
 0x406   :  { %3000 = dma.done.wait [#allocation4], 128  }
 0x407   :  { %3001 = vsyncadd [#allocation4], 4294967168 }
 0x408   :  { %2714 = vsyncpa [#allocation3], 1 }
 0x409   :  { %2715 = vsyncpa [#allocation8], 1 }
 0x40a   :  { %2716 = vsyncpa [#allocation4], 1 }
 0x40b   :  { %2717 = vsyncpa [#allocation5], 1 }

</bundles_post_ra>
